<compile_context>
chip_gen: v7x
topology: tpu7x:2x2x1
jax: 0.10.0
libtpu: 0.0.40
codegen_flags: <defaults>
</compile_context>

<pallas_src>
import functools

import jax
import jax.numpy as jnp
from jax.experimental import pallas as pl
from jax.experimental.pallas import tpu as pltpu

_BN_EPS = 1e-5


# ----------------------------------------------------------------------------
# Fused Pallas kernel
# ----------------------------------------------------------------------------
def _conv_block_res_kernel(x_ref, masks_ref, w1_ref, a1_ref, b1_ref,
                           w2_ref, a2_ref, b2_ref, w3_ref, b3_ref,
                           o_ref, xpad_ref, rpad_ref, *, H, W, OFF):
    """Fused conv_blockRes for one image.

    x_ref:     (1, H*W, Cin)  f32   flattened row-major NHWC image
    masks_ref: (2, H*W, 1)    f32   [0]: valid when dx=-1, [1]: valid when dx=+1
    w1_ref:    (9, Cin, C)    bf16  conv1 taps (row-major over ky, kx)
    a1/b1:     (1, C)         f32   folded BN1 scale / bias
    w2_ref:    (9, C, C)      bf16  conv2 taps
    a2/b2:     (1, C)         f32   folded BN2 scale / bias
    w3_ref:    (Cin, C)       bf16  1x1 residual conv
    b3_ref:    (1, C)         f32
    o_ref:     (1, H*W, C)    f32
    xpad_ref:  (OFF+H*W+W+1, Cin) VMEM scratch (flattened zero-padded input)
    rpad_ref:  (OFF+H*W+W+1, C)   VMEM scratch (flattened zero-padded mid act)
    """
    HW = H * W
    C = o_ref.shape[-1]

    # Hoist mask loads (shared by both convs).
    m_left = masks_ref[0]        # (HW, 1): 0 where w == 0      (used for dx=-1)
    m_right = masks_ref[1]       # (HW, 1): 0 where w == W - 1  (used for dx=+1)

    def conv3x3(pad_ref, w_ref, cout):
        # 9 full-tile MXU matmuls: (HW, cin) x (cin, cout), f32 accumulation.
        acc = jnp.zeros((HW, cout), jnp.float32)
        for t in range(9):                         # static unroll
            dy, dx = t // 3 - 1, t % 3 - 1
            src = pad_ref[pl.ds(OFF + dy * W + dx, HW), :]
            if dx == -1:
                src = src * m_left
            elif dx == 1:
                src = src * m_right
            acc = acc + jnp.dot(src.astype(jnp.bfloat16), w_ref[t],
                                preferred_element_type=jnp.float32)
        return acc

    x = x_ref[0]                                   # (HW, Cin) f32

    # --- conv1 + folded BN1 + ReLU (halo staged in VMEM) ---------------------
    xpad_ref[...] = jnp.zeros_like(xpad_ref)
    xpad_ref[pl.ds(OFF, HW), :] = x                # sublane-aligned store
    r = conv3x3(xpad_ref, w1_ref, C) * a1_ref[...] + b1_ref[...]
    r = jnp.maximum(r, 0.0)

    # --- conv2 + folded BN2 + ReLU -------------------------------------------
    rpad_ref[...] = jnp.zeros_like(rpad_ref)
    rpad_ref[pl.ds(OFF, HW), :] = r
    r = conv3x3(rpad_ref, w2_ref, C) * a2_ref[...] + b2_ref[...]
    r = jnp.maximum(r, 0.0)

    # --- 1x1 residual path + add; single full-block store --------------------
    res = jnp.dot(x.astype(jnp.bfloat16), w3_ref[...],
                  preferred_element_type=jnp.float32) + b3_ref[...]
    o_ref[0] = (r + res).astype(o_ref.dtype)


# ----------------------------------------------------------------------------
# pallas_call wrapper (NCHW public interface, NHWC/flattened internally)
# ----------------------------------------------------------------------------
def conv_block_res_forward(params, x_nchw):
    """x_nchw: (N, Cin, H, W) -> (N, Cout, H, W).  Matches conv_blockRes.forward."""
    N, Cin, H, W = x_nchw.shape
    Cout = params["w1"].shape[-1]
    HW = H * W
    OFF = ((W + 1 + 7) // 8) * 8          # >= halo (W+1), 8-aligned staging offset
    HWP = OFF + HW + W + 1                # flattened padded length

    # layout: NCHW -> NHWC -> (N, H*W, C); channels map to the TPU lane dim.
    x = jnp.transpose(x_nchw, (0, 2, 3, 1)).astype(jnp.float32).reshape(N, HW, Cin)

    # Column-validity masks (remove horizontal wrap-around of the flat shifts).
    col = jnp.arange(HW, dtype=jnp.int32) % W
    masks = jnp.stack([(col != 0), (col != W - 1)], axis=0)
    masks = masks.astype(jnp.float32).reshape(2, HW, 1)

    kernel = functools.partial(_conv_block_res_kernel, H=H, W=W, OFF=OFF)
    full2 = lambda n: (0, 0)
    full3 = lambda n: (0, 0, 0)

    out = pl.pallas_call(
        kernel,
        out_shape=jax.ShapeDtypeStruct((N, HW, Cout), jnp.float32),
        grid_spec=pltpu.PrefetchScalarGridSpec(
            num_scalar_prefetch=0,
            grid=(N,),
            in_specs=[
                pl.BlockSpec((1, HW, Cin), lambda n: (n, 0, 0)),
                pl.BlockSpec((2, HW, 1), full3),
                pl.BlockSpec((9, Cin, Cout), full3),
                pl.BlockSpec((1, Cout), full2),
                pl.BlockSpec((1, Cout), full2),
                pl.BlockSpec((9, Cout, Cout), full3),
                pl.BlockSpec((1, Cout), full2),
                pl.BlockSpec((1, Cout), full2),
                pl.BlockSpec((Cin, Cout), full2),
                pl.BlockSpec((1, Cout), full2),
            ],
            out_specs=pl.BlockSpec((1, HW, Cout), lambda n: (n, 0, 0)),
            scratch_shapes=[
                pltpu.VMEM((HWP, Cin), jnp.float32),
                pltpu.VMEM((HWP, Cout), jnp.float32),
            ],
        ),
        compiler_params=pltpu.CompilerParams(
            dimension_semantics=("parallel",),
            vmem_limit_bytes=32 * 1024 * 1024,
        ),
    )(x, masks,
      params["w1"].reshape(9, Cin, Cout).astype(jnp.bfloat16),
      params["s1"].reshape(1, Cout),
      params["o1"].reshape(1, Cout),
      params["w2"].reshape(9, Cout, Cout).astype(jnp.bfloat16),
      params["s2"].reshape(1, Cout),
      params["o2"].reshape(1, Cout),
      params["w3"].astype(jnp.bfloat16),
      params["b3"].reshape(1, Cout))

    return jnp.transpose(out.reshape(N, H, W, Cout), (0, 3, 1, 2))


# ----------------------------------------------------------------------------
# Parameter construction (deterministic, synthetic) + folded inference BN
# ----------------------------------------------------------------------------
def _conv_params(key, kh, kw, cin, cout):
    k1, k2 = jax.random.split(key)
    fan_in = kh * kw * cin
    w = jax.random.normal(k1, (kh, kw, cin, cout), jnp.float32) / jnp.sqrt(float(fan_in))
    b = 0.01 * jax.random.normal(k2, (cout,), jnp.float32)
    return w, b


def _bn_params(key, c):
    k1, k2, k3, k4 = jax.random.split(key, 4)
    gamma = 1.0 + 0.1 * jax.random.normal(k1, (c,), jnp.float32)
    beta = 0.1 * jax.random.normal(k2, (c,), jnp.float32)
    mean = 0.1 * jax.random.normal(k3, (c,), jnp.float32)
    var = 1.0 + 0.1 * jax.random.uniform(k4, (c,), jnp.float32)
    return gamma, beta, mean, var


def _fold_bn(conv_b, gamma, beta, mean, var):
    # inference BatchNorm folded onto the (bias-free) conv output:
    #   BN(conv + b) = scale * conv + bias
    scale = gamma / jnp.sqrt(var + _BN_EPS)
    bias = (conv_b - mean) * scale + beta
    return scale, bias


def init_params(key, in_ch, out_ch):
    ks = jax.random.split(key, 5)
    w1, b1 = _conv_params(ks[0], 3, 3, in_ch, out_ch)
    s1, o1 = _fold_bn(b1, *_bn_params(ks[1], out_ch))
    w2, b2 = _conv_params(ks[2], 3, 3, out_ch, out_ch)
    s2, o2 = _fold_bn(b2, *_bn_params(ks[3], out_ch))
    w3, b3 = _conv_params(ks[4], 1, 1, in_ch, out_ch)
    return dict(w1=w1, s1=s1, o1=o1, w2=w2, s2=s2, o2=o2, w3=w3[0, 0], b3=b3)


# ----------------------------------------------------------------------------
# Pure-JAX reference (for correctness check)
# ----------------------------------------------------------------------------
def _ref_forward(params, x_nchw):
    x = jnp.transpose(x_nchw, (0, 2, 3, 1)).astype(jnp.float32)   # NHWC

    def conv3x3(v, w):
        return jax.lax.conv_general_dilated(
            v, w, window_strides=(1, 1), padding="SAME",
            dimension_numbers=("NHWC", "HWIO", "NHWC"))

    r = jnp.maximum(conv3x3(x, params["w1"]) * params["s1"] + params["o1"], 0.0)
    r = jnp.maximum(conv3x3(r, params["w2"]) * params["s2"] + params["o2"], 0.0)
    res = jnp.einsum("nhwc,co->nhwo", x, params["w3"]) + params["b3"]
    return jnp.transpose(r + res, (0, 3, 1, 2))


if __name__ == "__main__":
    key = jax.random.PRNGKey(0)
    pkey, xkey = jax.random.split(key)
    in_ch, out_ch = 4, 32
    params = init_params(pkey, in_ch=in_ch, out_ch=out_ch)
    x = jax.random.normal(xkey, (2, in_ch, 16, 16), jnp.float32)   # NCHW (PyTorch)

    fwd = jax.jit(lambda inp: conv_block_res_forward(params, inp))
    y = jax.block_until_ready(fwd(x))

    assert y.shape == (2, out_ch, 16, 16), y.shape
    assert bool(jnp.all(jnp.isfinite(y)))

    y_ref = _ref_forward(params, x)
    max_err = float(jnp.max(jnp.abs(y - y_ref)))
    assert max_err < 1e-1, f"max abs error vs reference: {max_err}"   # bf16 matmul tolerance
    print("KERNEL_OK")
</pallas_src>

<mosaic_0001>
module attributes {stable_mosaic.version = 11 : i64} {
  func.func @_conv_block_res_kernel(%arg0: i32, %arg1: memref<1x256x4xf32, #tpu.memory_space<vmem>>, %arg2: memref<2x256x1xf32, #tpu.memory_space<vmem>>, %arg3: memref<9x4x32xbf16, #tpu.memory_space<vmem>>, %arg4: memref<1x32xf32, #tpu.memory_space<vmem>>, %arg5: memref<1x32xf32, #tpu.memory_space<vmem>>, %arg6: memref<9x32x32xbf16, #tpu.memory_space<vmem>>, %arg7: memref<1x32xf32, #tpu.memory_space<vmem>>, %arg8: memref<1x32xf32, #tpu.memory_space<vmem>>, %arg9: memref<4x32xbf16, #tpu.memory_space<vmem>>, %arg10: memref<1x32xf32, #tpu.memory_space<vmem>>, %arg11: memref<1x256x32xf32, #tpu.memory_space<vmem>>, %arg12: memref<297x4xf32, #tpu.memory_space<vmem>>, %arg13: memref<297x32xf32, #tpu.memory_space<vmem>>) attributes {dimension_semantics = [#tpu.dimension_semantics<parallel>], iteration_bounds = array<i64: 2>, scalar_prefetch = 0 : i64, scratch_operands = 2 : i64, tpu.core_type = #tpu.core_type<tc>, window_params = [{transform_indices = @transform_0, window_bounds = array<i64: 1, 256, 4>}, {pipeline_mode = #tpu.pipeline_mode<synchronous>, transform_indices = @transform_1, window_bounds = array<i64: 2, 256, 1>}, {pipeline_mode = #tpu.pipeline_mode<synchronous>, transform_indices = @transform_2, window_bounds = array<i64: 9, 4, 32>}, {pipeline_mode = #tpu.pipeline_mode<synchronous>, transform_indices = @transform_3, window_bounds = array<i64: 1, 32>}, {pipeline_mode = #tpu.pipeline_mode<synchronous>, transform_indices = @transform_4, window_bounds = array<i64: 1, 32>}, {pipeline_mode = #tpu.pipeline_mode<synchronous>, transform_indices = @transform_5, window_bounds = array<i64: 9, 32, 32>}, {pipeline_mode = #tpu.pipeline_mode<synchronous>, transform_indices = @transform_6, window_bounds = array<i64: 1, 32>}, {pipeline_mode = #tpu.pipeline_mode<synchronous>, transform_indices = @transform_7, window_bounds = array<i64: 1, 32>}, {pipeline_mode = #tpu.pipeline_mode<synchronous>, transform_indices = @transform_8, window_bounds = array<i64: 4, 32>}, {pipeline_mode = #tpu.pipeline_mode<synchronous>, transform_indices = @transform_9, window_bounds = array<i64: 1, 32>}, {transform_indices = @transform_10, window_bounds = array<i64: 1, 256, 32>}]} {
    %c0 = arith.constant 0 : index
    %c0_0 = arith.constant 0 : index
    %c0_1 = arith.constant 0 : index
    %0 = vector.load %arg2[%c0, %c0_0, %c0_1] : memref<2x256x1xf32, #tpu.memory_space<vmem>>, vector<1x256x1xf32>
    %1 = vector.shape_cast %0 : vector<1x256x1xf32> to vector<256x1xf32>
    %c1 = arith.constant 1 : index
    %c0_2 = arith.constant 0 : index
    %c0_3 = arith.constant 0 : index
    %2 = vector.load %arg2[%c1, %c0_2, %c0_3] : memref<2x256x1xf32, #tpu.memory_space<vmem>>, vector<1x256x1xf32>
    %3 = vector.shape_cast %2 : vector<1x256x1xf32> to vector<256x1xf32>
    %c0_4 = arith.constant 0 : index
    %c0_5 = arith.constant 0 : index
    %c0_6 = arith.constant 0 : index
    %4 = vector.load %arg1[%c0_4, %c0_5, %c0_6] : memref<1x256x4xf32, #tpu.memory_space<vmem>>, vector<1x256x4xf32>
    %5 = vector.shape_cast %4 : vector<1x256x4xf32> to vector<256x4xf32>
    %cst = arith.constant 0.000000e+00 : f32
    %6 = vector.broadcast %cst : f32 to vector<297x4xf32>
    %c0_7 = arith.constant 0 : index
    %c0_8 = arith.constant 0 : index
    %7 = vector.load %arg12[%c0_7, %c0_8] : memref<297x4xf32, #tpu.memory_space<vmem>>, vector<297x4xf32>
    tpu.vector_store %arg12[%c0_7, %c0_8], %6 {strides = array<i32>} : memref<297x4xf32, #tpu.memory_space<vmem>>, vector<297x4xf32>,
    %c24 = arith.constant 24 : index
    %c0_9 = arith.constant 0 : index
    %8 = vector.load %arg12[%c24, %c0_9] : memref<297x4xf32, #tpu.memory_space<vmem>>, vector<256x4xf32>
    tpu.vector_store %arg12[%c24, %c0_9], %5 {strides = array<i32>} : memref<297x4xf32, #tpu.memory_space<vmem>>, vector<256x4xf32>,
    %cst_10 = arith.constant 0.000000e+00 : f32
    %9 = vector.broadcast %cst_10 : f32 to vector<256x32xf32>
    %c7 = arith.constant 7 : index
    %c0_11 = arith.constant 0 : index
    %10 = vector.load %arg12[%c7, %c0_11] : memref<297x4xf32, #tpu.memory_space<vmem>>, vector<256x4xf32>
    %11 = vector.broadcast %1 : vector<256x1xf32> to vector<256x4xf32>
    %12 = arith.mulf %10, %11 : vector<256x4xf32>
    %13 = arith.truncf %12 : vector<256x4xf32> to vector<256x4xbf16>
    %c0_12 = arith.constant 0 : index
    %c0_13 = arith.constant 0 : index
    %c0_14 = arith.constant 0 : index
    %14 = vector.load %arg3[%c0_12, %c0_13, %c0_14] : memref<9x4x32xbf16, #tpu.memory_space<vmem>>, vector<1x4x32xbf16>
    %15 = vector.shape_cast %14 : vector<1x4x32xbf16> to vector<4x32xbf16>
    %cst_15 = arith.constant dense<0.000000e+00> : vector<256x32xf32>
    %16 = tpu.matmul %13, %15, %cst_15 {dimension_numbers = #tpu.dot_dimension_numbers<[1], [0], [0], [1], [0, 0, 1, 1], [], []>} : vector<256x4xbf16>, vector<4x32xbf16>, vector<256x32xf32> -> vector<256x32xf32>
    %17 = arith.addf %9, %16 : vector<256x32xf32>
    %c8 = arith.constant 8 : index
    %c0_16 = arith.constant 0 : index
    %18 = vector.load %arg12[%c8, %c0_16] : memref<297x4xf32, #tpu.memory_space<vmem>>, vector<256x4xf32>
    %19 = arith.truncf %18 : vector<256x4xf32> to vector<256x4xbf16>
    %c1_17 = arith.constant 1 : index
    %c0_18 = arith.constant 0 : index
    %c0_19 = arith.constant 0 : index
    %20 = vector.load %arg3[%c1_17, %c0_18, %c0_19] : memref<9x4x32xbf16, #tpu.memory_space<vmem>>, vector<1x4x32xbf16>
    %21 = vector.shape_cast %20 : vector<1x4x32xbf16> to vector<4x32xbf16>
    %cst_20 = arith.constant dense<0.000000e+00> : vector<256x32xf32>
    %22 = tpu.matmul %19, %21, %cst_20 {dimension_numbers = #tpu.dot_dimension_numbers<[1], [0], [0], [1], [0, 0, 1, 1], [], []>} : vector<256x4xbf16>, vector<4x32xbf16>, vector<256x32xf32> -> vector<256x32xf32>
    %23 = arith.addf %17, %22 : vector<256x32xf32>
    %c9 = arith.constant 9 : index
    %c0_21 = arith.constant 0 : index
    %24 = vector.load %arg12[%c9, %c0_21] : memref<297x4xf32, #tpu.memory_space<vmem>>, vector<256x4xf32>
    %25 = vector.broadcast %3 : vector<256x1xf32> to vector<256x4xf32>
    %26 = arith.mulf %24, %25 : vector<256x4xf32>
    %27 = arith.truncf %26 : vector<256x4xf32> to vector<256x4xbf16>
    %c2 = arith.constant 2 : index
    %c0_22 = arith.constant 0 : index
    %c0_23 = arith.constant 0 : index
    %28 = vector.load %arg3[%c2, %c0_22, %c0_23] : memref<9x4x32xbf16, #tpu.memory_space<vmem>>, vector<1x4x32xbf16>
    %29 = vector.shape_cast %28 : vector<1x4x32xbf16> to vector<4x32xbf16>
    %cst_24 = arith.constant dense<0.000000e+00> : vector<256x32xf32>
    %30 = tpu.matmul %27, %29, %cst_24 {dimension_numbers = #tpu.dot_dimension_numbers<[1], [0], [0], [1], [0, 0, 1, 1], [], []>} : vector<256x4xbf16>, vector<4x32xbf16>, vector<256x32xf32> -> vector<256x32xf32>
    %31 = arith.addf %23, %30 : vector<256x32xf32>
    %c23 = arith.constant 23 : index
    %c0_25 = arith.constant 0 : index
    %32 = vector.load %arg12[%c23, %c0_25] : memref<297x4xf32, #tpu.memory_space<vmem>>, vector<256x4xf32>
    %33 = vector.broadcast %1 : vector<256x1xf32> to vector<256x4xf32>
    %34 = arith.mulf %32, %33 : vector<256x4xf32>
    %35 = arith.truncf %34 : vector<256x4xf32> to vector<256x4xbf16>
    %c3 = arith.constant 3 : index
    %c0_26 = arith.constant 0 : index
    %c0_27 = arith.constant 0 : index
    %36 = vector.load %arg3[%c3, %c0_26, %c0_27] : memref<9x4x32xbf16, #tpu.memory_space<vmem>>, vector<1x4x32xbf16>
    %37 = vector.shape_cast %36 : vector<1x4x32xbf16> to vector<4x32xbf16>
    %cst_28 = arith.constant dense<0.000000e+00> : vector<256x32xf32>
    %38 = tpu.matmul %35, %37, %cst_28 {dimension_numbers = #tpu.dot_dimension_numbers<[1], [0], [0], [1], [0, 0, 1, 1], [], []>} : vector<256x4xbf16>, vector<4x32xbf16>, vector<256x32xf32> -> vector<256x32xf32>
    %39 = arith.addf %31, %38 : vector<256x32xf32>
    %c24_29 = arith.constant 24 : index
    %c0_30 = arith.constant 0 : index
    %40 = vector.load %arg12[%c24_29, %c0_30] : memref<297x4xf32, #tpu.memory_space<vmem>>, vector<256x4xf32>
    %41 = arith.truncf %40 : vector<256x4xf32> to vector<256x4xbf16>
    %c4 = arith.constant 4 : index
    %c0_31 = arith.constant 0 : index
    %c0_32 = arith.constant 0 : index
    %42 = vector.load %arg3[%c4, %c0_31, %c0_32] : memref<9x4x32xbf16, #tpu.memory_space<vmem>>, vector<1x4x32xbf16>
    %43 = vector.shape_cast %42 : vector<1x4x32xbf16> to vector<4x32xbf16>
    %cst_33 = arith.constant dense<0.000000e+00> : vector<256x32xf32>
    %44 = tpu.matmul %41, %43, %cst_33 {dimension_numbers = #tpu.dot_dimension_numbers<[1], [0], [0], [1], [0, 0, 1, 1], [], []>} : vector<256x4xbf16>, vector<4x32xbf16>, vector<256x32xf32> -> vector<256x32xf32>
    %45 = arith.addf %39, %44 : vector<256x32xf32>
    %c25 = arith.constant 25 : index
    %c0_34 = arith.constant 0 : index
    %46 = vector.load %arg12[%c25, %c0_34] : memref<297x4xf32, #tpu.memory_space<vmem>>, vector<256x4xf32>
    %47 = vector.broadcast %3 : vector<256x1xf32> to vector<256x4xf32>
    %48 = arith.mulf %46, %47 : vector<256x4xf32>
    %49 = arith.truncf %48 : vector<256x4xf32> to vector<256x4xbf16>
    %c5 = arith.constant 5 : index
    %c0_35 = arith.constant 0 : index
    %c0_36 = arith.constant 0 : index
    %50 = vector.load %arg3[%c5, %c0_35, %c0_36] : memref<9x4x32xbf16, #tpu.memory_space<vmem>>, vector<1x4x32xbf16>
    %51 = vector.shape_cast %50 : vector<1x4x32xbf16> to vector<4x32xbf16>
    %cst_37 = arith.constant dense<0.000000e+00> : vector<256x32xf32>
    %52 = tpu.matmul %49, %51, %cst_37 {dimension_numbers = #tpu.dot_dimension_numbers<[1], [0], [0], [1], [0, 0, 1, 1], [], []>} : vector<256x4xbf16>, vector<4x32xbf16>, vector<256x32xf32> -> vector<256x32xf32>
    %53 = arith.addf %45, %52 : vector<256x32xf32>
    %c39 = arith.constant 39 : index
    %c0_38 = arith.constant 0 : index
    %54 = vector.load %arg12[%c39, %c0_38] : memref<297x4xf32, #tpu.memory_space<vmem>>, vector<256x4xf32>
    %55 = vector.broadcast %1 : vector<256x1xf32> to vector<256x4xf32>
    %56 = arith.mulf %54, %55 : vector<256x4xf32>
    %57 = arith.truncf %56 : vector<256x4xf32> to vector<256x4xbf16>
    %c6 = arith.constant 6 : index
    %c0_39 = arith.constant 0 : index
    %c0_40 = arith.constant 0 : index
    %58 = vector.load %arg3[%c6, %c0_39, %c0_40] : memref<9x4x32xbf16, #tpu.memory_space<vmem>>, vector<1x4x32xbf16>
    %59 = vector.shape_cast %58 : vector<1x4x32xbf16> to vector<4x32xbf16>
    %cst_41 = arith.constant dense<0.000000e+00> : vector<256x32xf32>
    %60 = tpu.matmul %57, %59, %cst_41 {dimension_numbers = #tpu.dot_dimension_numbers<[1], [0], [0], [1], [0, 0, 1, 1], [], []>} : vector<256x4xbf16>, vector<4x32xbf16>, vector<256x32xf32> -> vector<256x32xf32>
    %61 = arith.addf %53, %60 : vector<256x32xf32>
    %c40 = arith.constant 40 : index
    %c0_42 = arith.constant 0 : index
    %62 = vector.load %arg12[%c40, %c0_42] : memref<297x4xf32, #tpu.memory_space<vmem>>, vector<256x4xf32>
    %63 = arith.truncf %62 : vector<256x4xf32> to vector<256x4xbf16>
    %c7_43 = arith.constant 7 : index
    %c0_44 = arith.constant 0 : index
    %c0_45 = arith.constant 0 : index
    %64 = vector.load %arg3[%c7_43, %c0_44, %c0_45] : memref<9x4x32xbf16, #tpu.memory_space<vmem>>, vector<1x4x32xbf16>
    %65 = vector.shape_cast %64 : vector<1x4x32xbf16> to vector<4x32xbf16>
    %cst_46 = arith.constant dense<0.000000e+00> : vector<256x32xf32>
    %66 = tpu.matmul %63, %65, %cst_46 {dimension_numbers = #tpu.dot_dimension_numbers<[1], [0], [0], [1], [0, 0, 1, 1], [], []>} : vector<256x4xbf16>, vector<4x32xbf16>, vector<256x32xf32> -> vector<256x32xf32>
    %67 = arith.addf %61, %66 : vector<256x32xf32>
    %c41 = arith.constant 41 : index
    %c0_47 = arith.constant 0 : index
    %68 = vector.load %arg12[%c41, %c0_47] : memref<297x4xf32, #tpu.memory_space<vmem>>, vector<256x4xf32>
    %69 = vector.broadcast %3 : vector<256x1xf32> to vector<256x4xf32>
    %70 = arith.mulf %68, %69 : vector<256x4xf32>
    %71 = arith.truncf %70 : vector<256x4xf32> to vector<256x4xbf16>
    %c8_48 = arith.constant 8 : index
    %c0_49 = arith.constant 0 : index
    %c0_50 = arith.constant 0 : index
    %72 = vector.load %arg3[%c8_48, %c0_49, %c0_50] : memref<9x4x32xbf16, #tpu.memory_space<vmem>>, vector<1x4x32xbf16>
    %73 = vector.shape_cast %72 : vector<1x4x32xbf16> to vector<4x32xbf16>
    %cst_51 = arith.constant dense<0.000000e+00> : vector<256x32xf32>
    %74 = tpu.matmul %71, %73, %cst_51 {dimension_numbers = #tpu.dot_dimension_numbers<[1], [0], [0], [1], [0, 0, 1, 1], [], []>} : vector<256x4xbf16>, vector<4x32xbf16>, vector<256x32xf32> -> vector<256x32xf32>
    %75 = arith.addf %67, %74 : vector<256x32xf32>
    %c0_52 = arith.constant 0 : index
    %c0_53 = arith.constant 0 : index
    %76 = vector.load %arg4[%c0_52, %c0_53] : memref<1x32xf32, #tpu.memory_space<vmem>>, vector<1x32xf32>
    %77 = vector.broadcast %76 : vector<1x32xf32> to vector<256x32xf32>
    %78 = arith.mulf %75, %77 : vector<256x32xf32>
    %c0_54 = arith.constant 0 : index
    %c0_55 = arith.constant 0 : index
    %79 = vector.load %arg5[%c0_54, %c0_55] : memref<1x32xf32, #tpu.memory_space<vmem>>, vector<1x32xf32>
    %80 = vector.broadcast %79 : vector<1x32xf32> to vector<256x32xf32>
    %81 = arith.addf %78, %80 : vector<256x32xf32>
    %cst_56 = arith.constant 0.000000e+00 : f32
    %82 = vector.broadcast %cst_56 : f32 to vector<256x32xf32>
    %83 = arith.maximumf %81, %82 : vector<256x32xf32>
    %cst_57 = arith.constant 0.000000e+00 : f32
    %84 = vector.broadcast %cst_57 : f32 to vector<297x32xf32>
    %c0_58 = arith.constant 0 : index
    %c0_59 = arith.constant 0 : index
    %85 = vector.load %arg13[%c0_58, %c0_59] : memref<297x32xf32, #tpu.memory_space<vmem>>, vector<297x32xf32>
    tpu.vector_store %arg13[%c0_58, %c0_59], %84 {strides = array<i32>} : memref<297x32xf32, #tpu.memory_space<vmem>>, vector<297x32xf32>,
    %c24_60 = arith.constant 24 : index
    %c0_61 = arith.constant 0 : index
    %86 = vector.load %arg13[%c24_60, %c0_61] : memref<297x32xf32, #tpu.memory_space<vmem>>, vector<256x32xf32>
    tpu.vector_store %arg13[%c24_60, %c0_61], %83 {strides = array<i32>} : memref<297x32xf32, #tpu.memory_space<vmem>>, vector<256x32xf32>,
    %cst_62 = arith.constant 0.000000e+00 : f32
    %87 = vector.broadcast %cst_62 : f32 to vector<256x32xf32>
    %c7_63 = arith.constant 7 : index
    %c0_64 = arith.constant 0 : index
    %88 = vector.load %arg13[%c7_63, %c0_64] : memref<297x32xf32, #tpu.memory_space<vmem>>, vector<256x32xf32>
    %89 = vector.broadcast %1 : vector<256x1xf32> to vector<256x32xf32>
    %90 = arith.mulf %88, %89 : vector<256x32xf32>
    %91 = arith.truncf %90 : vector<256x32xf32> to vector<256x32xbf16>
    %c0_65 = arith.constant 0 : index
    %c0_66 = arith.constant 0 : index
    %c0_67 = arith.constant 0 : index
    %92 = vector.load %arg6[%c0_65, %c0_66, %c0_67] : memref<9x32x32xbf16, #tpu.memory_space<vmem>>, vector<1x32x32xbf16>
    %93 = vector.shape_cast %92 : vector<1x32x32xbf16> to vector<32x32xbf16>
    %cst_68 = arith.constant dense<0.000000e+00> : vector<256x32xf32>
    %94 = tpu.matmul %91, %93, %cst_68 {dimension_numbers = #tpu.dot_dimension_numbers<[1], [0], [0], [1], [0, 0, 1, 1], [], []>} : vector<256x32xbf16>, vector<32x32xbf16>, vector<256x32xf32> -> vector<256x32xf32>
    %95 = arith.addf %87, %94 : vector<256x32xf32>
    %c8_69 = arith.constant 8 : index
    %c0_70 = arith.constant 0 : index
    %96 = vector.load %arg13[%c8_69, %c0_70] : memref<297x32xf32, #tpu.memory_space<vmem>>, vector<256x32xf32>
    %97 = arith.truncf %96 : vector<256x32xf32> to vector<256x32xbf16>
    %c1_71 = arith.constant 1 : index
    %c0_72 = arith.constant 0 : index
    %c0_73 = arith.constant 0 : index
    %98 = vector.load %arg6[%c1_71, %c0_72, %c0_73] : memref<9x32x32xbf16, #tpu.memory_space<vmem>>, vector<1x32x32xbf16>
    %99 = vector.shape_cast %98 : vector<1x32x32xbf16> to vector<32x32xbf16>
    %cst_74 = arith.constant dense<0.000000e+00> : vector<256x32xf32>
    %100 = tpu.matmul %97, %99, %cst_74 {dimension_numbers = #tpu.dot_dimension_numbers<[1], [0], [0], [1], [0, 0, 1, 1], [], []>} : vector<256x32xbf16>, vector<32x32xbf16>, vector<256x32xf32> -> vector<256x32xf32>
    %101 = arith.addf %95, %100 : vector<256x32xf32>
    %c9_75 = arith.constant 9 : index
    %c0_76 = arith.constant 0 : index
    %102 = vector.load %arg13[%c9_75, %c0_76] : memref<297x32xf32, #tpu.memory_space<vmem>>, vector<256x32xf32>
    %103 = vector.broadcast %3 : vector<256x1xf32> to vector<256x32xf32>
    %104 = arith.mulf %102, %103 : vector<256x32xf32>
    %105 = arith.truncf %104 : vector<256x32xf32> to vector<256x32xbf16>
    %c2_77 = arith.constant 2 : index
    %c0_78 = arith.constant 0 : index
    %c0_79 = arith.constant 0 : index
    %106 = vector.load %arg6[%c2_77, %c0_78, %c0_79] : memref<9x32x32xbf16, #tpu.memory_space<vmem>>, vector<1x32x32xbf16>
    %107 = vector.shape_cast %106 : vector<1x32x32xbf16> to vector<32x32xbf16>
    %cst_80 = arith.constant dense<0.000000e+00> : vector<256x32xf32>
    %108 = tpu.matmul %105, %107, %cst_80 {dimension_numbers = #tpu.dot_dimension_numbers<[1], [0], [0], [1], [0, 0, 1, 1], [], []>} : vector<256x32xbf16>, vector<32x32xbf16>, vector<256x32xf32> -> vector<256x32xf32>
    %109 = arith.addf %101, %108 : vector<256x32xf32>
    %c23_81 = arith.constant 23 : index
    %c0_82 = arith.constant 0 : index
    %110 = vector.load %arg13[%c23_81, %c0_82] : memref<297x32xf32, #tpu.memory_space<vmem>>, vector<256x32xf32>
    %111 = vector.broadcast %1 : vector<256x1xf32> to vector<256x32xf32>
    %112 = arith.mulf %110, %111 : vector<256x32xf32>
    %113 = arith.truncf %112 : vector<256x32xf32> to vector<256x32xbf16>
    %c3_83 = arith.constant 3 : index
    %c0_84 = arith.constant 0 : index
    %c0_85 = arith.constant 0 : index
    %114 = vector.load %arg6[%c3_83, %c0_84, %c0_85] : memref<9x32x32xbf16, #tpu.memory_space<vmem>>, vector<1x32x32xbf16>
    %115 = vector.shape_cast %114 : vector<1x32x32xbf16> to vector<32x32xbf16>
    %cst_86 = arith.constant dense<0.000000e+00> : vector<256x32xf32>
    %116 = tpu.matmul %113, %115, %cst_86 {dimension_numbers = #tpu.dot_dimension_numbers<[1], [0], [0], [1], [0, 0, 1, 1], [], []>} : vector<256x32xbf16>, vector<32x32xbf16>, vector<256x32xf32> -> vector<256x32xf32>
    %117 = arith.addf %109, %116 : vector<256x32xf32>
    %c24_87 = arith.constant 24 : index
    %c0_88 = arith.constant 0 : index
    %118 = vector.load %arg13[%c24_87, %c0_88] : memref<297x32xf32, #tpu.memory_space<vmem>>, vector<256x32xf32>
    %119 = arith.truncf %118 : vector<256x32xf32> to vector<256x32xbf16>
    %c4_89 = arith.constant 4 : index
    %c0_90 = arith.constant 0 : index
    %c0_91 = arith.constant 0 : index
    %120 = vector.load %arg6[%c4_89, %c0_90, %c0_91] : memref<9x32x32xbf16, #tpu.memory_space<vmem>>, vector<1x32x32xbf16>
    %121 = vector.shape_cast %120 : vector<1x32x32xbf16> to vector<32x32xbf16>
    %cst_92 = arith.constant dense<0.000000e+00> : vector<256x32xf32>
    %122 = tpu.matmul %119, %121, %cst_92 {dimension_numbers = #tpu.dot_dimension_numbers<[1], [0], [0], [1], [0, 0, 1, 1], [], []>} : vector<256x32xbf16>, vector<32x32xbf16>, vector<256x32xf32> -> vector<256x32xf32>
    %123 = arith.addf %117, %122 : vector<256x32xf32>
    %c25_93 = arith.constant 25 : index
    %c0_94 = arith.constant 0 : index
    %124 = vector.load %arg13[%c25_93, %c0_94] : memref<297x32xf32, #tpu.memory_space<vmem>>, vector<256x32xf32>
    %125 = vector.broadcast %3 : vector<256x1xf32> to vector<256x32xf32>
    %126 = arith.mulf %124, %125 : vector<256x32xf32>
    %127 = arith.truncf %126 : vector<256x32xf32> to vector<256x32xbf16>
    %c5_95 = arith.constant 5 : index
    %c0_96 = arith.constant 0 : index
    %c0_97 = arith.constant 0 : index
    %128 = vector.load %arg6[%c5_95, %c0_96, %c0_97] : memref<9x32x32xbf16, #tpu.memory_space<vmem>>, vector<1x32x32xbf16>
    %129 = vector.shape_cast %128 : vector<1x32x32xbf16> to vector<32x32xbf16>
    %cst_98 = arith.constant dense<0.000000e+00> : vector<256x32xf32>
    %130 = tpu.matmul %127, %129, %cst_98 {dimension_numbers = #tpu.dot_dimension_numbers<[1], [0], [0], [1], [0, 0, 1, 1], [], []>} : vector<256x32xbf16>, vector<32x32xbf16>, vector<256x32xf32> -> vector<256x32xf32>
    %131 = arith.addf %123, %130 : vector<256x32xf32>
    %c39_99 = arith.constant 39 : index
    %c0_100 = arith.constant 0 : index
    %132 = vector.load %arg13[%c39_99, %c0_100] : memref<297x32xf32, #tpu.memory_space<vmem>>, vector<256x32xf32>
    %133 = vector.broadcast %1 : vector<256x1xf32> to vector<256x32xf32>
    %134 = arith.mulf %132, %133 : vector<256x32xf32>
    %135 = arith.truncf %134 : vector<256x32xf32> to vector<256x32xbf16>
    %c6_101 = arith.constant 6 : index
    %c0_102 = arith.constant 0 : index
    %c0_103 = arith.constant 0 : index
    %136 = vector.load %arg6[%c6_101, %c0_102, %c0_103] : memref<9x32x32xbf16, #tpu.memory_space<vmem>>, vector<1x32x32xbf16>
    %137 = vector.shape_cast %136 : vector<1x32x32xbf16> to vector<32x32xbf16>
    %cst_104 = arith.constant dense<0.000000e+00> : vector<256x32xf32>
    %138 = tpu.matmul %135, %137, %cst_104 {dimension_numbers = #tpu.dot_dimension_numbers<[1], [0], [0], [1], [0, 0, 1, 1], [], []>} : vector<256x32xbf16>, vector<32x32xbf16>, vector<256x32xf32> -> vector<256x32xf32>
    %139 = arith.addf %131, %138 : vector<256x32xf32>
    %c40_105 = arith.constant 40 : index
    %c0_106 = arith.constant 0 : index
    %140 = vector.load %arg13[%c40_105, %c0_106] : memref<297x32xf32, #tpu.memory_space<vmem>>, vector<256x32xf32>
    %141 = arith.truncf %140 : vector<256x32xf32> to vector<256x32xbf16>
    %c7_107 = arith.constant 7 : index
    %c0_108 = arith.constant 0 : index
    %c0_109 = arith.constant 0 : index
    %142 = vector.load %arg6[%c7_107, %c0_108, %c0_109] : memref<9x32x32xbf16, #tpu.memory_space<vmem>>, vector<1x32x32xbf16>
    %143 = vector.shape_cast %142 : vector<1x32x32xbf16> to vector<32x32xbf16>
    %cst_110 = arith.constant dense<0.000000e+00> : vector<256x32xf32>
    %144 = tpu.matmul %141, %143, %cst_110 {dimension_numbers = #tpu.dot_dimension_numbers<[1], [0], [0], [1], [0, 0, 1, 1], [], []>} : vector<256x32xbf16>, vector<32x32xbf16>, vector<256x32xf32> -> vector<256x32xf32>
    %145 = arith.addf %139, %144 : vector<256x32xf32>
    %c41_111 = arith.constant 41 : index
    %c0_112 = arith.constant 0 : index
    %146 = vector.load %arg13[%c41_111, %c0_112] : memref<297x32xf32, #tpu.memory_space<vmem>>, vector<256x32xf32>
    %147 = vector.broadcast %3 : vector<256x1xf32> to vector<256x32xf32>
    %148 = arith.mulf %146, %147 : vector<256x32xf32>
    %149 = arith.truncf %148 : vector<256x32xf32> to vector<256x32xbf16>
    %c8_113 = arith.constant 8 : index
    %c0_114 = arith.constant 0 : index
    %c0_115 = arith.constant 0 : index
    %150 = vector.load %arg6[%c8_113, %c0_114, %c0_115] : memref<9x32x32xbf16, #tpu.memory_space<vmem>>, vector<1x32x32xbf16>
    %151 = vector.shape_cast %150 : vector<1x32x32xbf16> to vector<32x32xbf16>
    %cst_116 = arith.constant dense<0.000000e+00> : vector<256x32xf32>
    %152 = tpu.matmul %149, %151, %cst_116 {dimension_numbers = #tpu.dot_dimension_numbers<[1], [0], [0], [1], [0, 0, 1, 1], [], []>} : vector<256x32xbf16>, vector<32x32xbf16>, vector<256x32xf32> -> vector<256x32xf32>
    %153 = arith.addf %145, %152 : vector<256x32xf32>
    %c0_117 = arith.constant 0 : index
    %c0_118 = arith.constant 0 : index
    %154 = vector.load %arg7[%c0_117, %c0_118] : memref<1x32xf32, #tpu.memory_space<vmem>>, vector<1x32xf32>
    %155 = vector.broadcast %154 : vector<1x32xf32> to vector<256x32xf32>
    %156 = arith.mulf %153, %155 : vector<256x32xf32>
    %c0_119 = arith.constant 0 : index
    %c0_120 = arith.constant 0 : index
    %157 = vector.load %arg8[%c0_119, %c0_120] : memref<1x32xf32, #tpu.memory_space<vmem>>, vector<1x32xf32>
    %158 = vector.broadcast %157 : vector<1x32xf32> to vector<256x32xf32>
    %159 = arith.addf %156, %158 : vector<256x32xf32>
    %cst_121 = arith.constant 0.000000e+00 : f32
    %160 = vector.broadcast %cst_121 : f32 to vector<256x32xf32>
    %161 = arith.maximumf %159, %160 : vector<256x32xf32>
    %162 = arith.truncf %5 : vector<256x4xf32> to vector<256x4xbf16>
    %c0_122 = arith.constant 0 : index
    %c0_123 = arith.constant 0 : index
    %163 = vector.load %arg9[%c0_122, %c0_123] : memref<4x32xbf16, #tpu.memory_space<vmem>>, vector<4x32xbf16>
    %cst_124 = arith.constant dense<0.000000e+00> : vector<256x32xf32>
    %164 = tpu.matmul %162, %163, %cst_124 {dimension_numbers = #tpu.dot_dimension_numbers<[1], [0], [0], [1], [0, 0, 1, 1], [], []>} : vector<256x4xbf16>, vector<4x32xbf16>, vector<256x32xf32> -> vector<256x32xf32>
    %c0_125 = arith.constant 0 : index
    %c0_126 = arith.constant 0 : index
    %165 = vector.load %arg10[%c0_125, %c0_126] : memref<1x32xf32, #tpu.memory_space<vmem>>, vector<1x32xf32>
    %166 = vector.broadcast %165 : vector<1x32xf32> to vector<256x32xf32>
    %167 = arith.addf %164, %166 : vector<256x32xf32>
    %168 = arith.addf %161, %167 : vector<256x32xf32>
    %c0_127 = arith.constant 0 : index
    %c0_128 = arith.constant 0 : index
    %c0_129 = arith.constant 0 : index
    %169 = vector.load %arg11[%c0_127, %c0_128, %c0_129] : memref<1x256x32xf32, #tpu.memory_space<vmem>>, vector<1x256x32xf32>
    %170 = vector.shape_cast %169 : vector<1x256x32xf32> to vector<256x32xf32>
    %171 = vector.shape_cast %168 : vector<256x32xf32> to vector<1x256x32xf32>
    tpu.vector_store %arg11[%c0_127, %c0_128, %c0_129], %171 {strides = array<i32>} : memref<1x256x32xf32, #tpu.memory_space<vmem>>, vector<1x256x32xf32>,
    return
  }
  func.func @transform_0(%arg0: i32) -> (i32, i32, i32) {
    %c0_i32 = arith.constant 0 : i32
    %c0_i32_0 = arith.constant 0 : i32
    %c0_i32_1 = arith.constant 0 : i32
    return %arg0, %c0_i32, %c0_i32_0 : i32, i32, i32
  }
  func.func @transform_1(%arg0: i32) -> (i32, i32, i32) {
    %c0_i32 = arith.constant 0 : i32
    %c0_i32_0 = arith.constant 0 : i32
    %c0_i32_1 = arith.constant 0 : i32
    %c0_i32_2 = arith.constant 0 : i32
    return %c0_i32, %c0_i32_0, %c0_i32_1 : i32, i32, i32
  }
  func.func @transform_2(%arg0: i32) -> (i32, i32, i32) {
    %c0_i32 = arith.constant 0 : i32
    %c0_i32_0 = arith.constant 0 : i32
    %c0_i32_1 = arith.constant 0 : i32
    %c0_i32_2 = arith.constant 0 : i32
    return %c0_i32, %c0_i32_0, %c0_i32_1 : i32, i32, i32
  }
  func.func @transform_3(%arg0: i32) -> (i32, i32) {
    %c0_i32 = arith.constant 0 : i32
    %c0_i32_0 = arith.constant 0 : i32
    %c0_i32_1 = arith.constant 0 : i32
    return %c0_i32, %c0_i32_0 : i32, i32
  }
  func.func @transform_4(%arg0: i32) -> (i32, i32) {
    %c0_i32 = arith.constant 0 : i32
    %c0_i32_0 = arith.constant 0 : i32
    %c0_i32_1 = arith.constant 0 : i32
    return %c0_i32, %c0_i32_0 : i32, i32
  }
  func.func @transform_5(%arg0: i32) -> (i32, i32, i32) {
    %c0_i32 = arith.constant 0 : i32
    %c0_i32_0 = arith.constant 0 : i32
    %c0_i32_1 = arith.constant 0 : i32
    %c0_i32_2 = arith.constant 0 : i32
    return %c0_i32, %c0_i32_0, %c0_i32_1 : i32, i32, i32
  }
  func.func @transform_6(%arg0: i32) -> (i32, i32) {
    %c0_i32 = arith.constant 0 : i32
    %c0_i32_0 = arith.constant 0 : i32
    %c0_i32_1 = arith.constant 0 : i32
    return %c0_i32, %c0_i32_0 : i32, i32
  }
  func.func @transform_7(%arg0: i32) -> (i32, i32) {
    %c0_i32 = arith.constant 0 : i32
    %c0_i32_0 = arith.constant 0 : i32
    %c0_i32_1 = arith.constant 0 : i32
    return %c0_i32, %c0_i32_0 : i32, i32
  }
  func.func @transform_8(%arg0: i32) -> (i32, i32) {
    %c0_i32 = arith.constant 0 : i32
    %c0_i32_0 = arith.constant 0 : i32
    %c0_i32_1 = arith.constant 0 : i32
    return %c0_i32, %c0_i32_0 : i32, i32
  }
  func.func @transform_9(%arg0: i32) -> (i32, i32) {
    %c0_i32 = arith.constant 0 : i32
    %c0_i32_0 = arith.constant 0 : i32
    %c0_i32_1 = arith.constant 0 : i32
    return %c0_i32, %c0_i32_0 : i32, i32
  }
  func.func @transform_10(%arg0: i32) -> (i32, i32, i32) {
    %c0_i32 = arith.constant 0 : i32
    %c0_i32_0 = arith.constant 0 : i32
    %c0_i32_1 = arith.constant 0 : i32
    return %arg0, %c0_i32, %c0_i32_0 : i32, i32, i32
  }
}

</mosaic_0001>

<bundles_post_ra>
// kernel: _lambda_.1
= control target key start
LH: loop header
LB: loop body
LE: loop exit
PB: predicated region body
PF: predicated region fallthrough
CT: control target
= control target key end

     0   :  { %15 = vsyncpa [#allocation5], 0  ;;  %s12416_s0 = inlined_call_operand.vmem [shape: f32[2,256,4], index: 0, kind: input, shape index: {}]   ;;  %s12417_s1 = inlined_call_operand.vmem [shape: f32[2,256,1], index: 1, kind: input, shape index: {}]   ;;  %s12418_s2 = inlined_call_operand.vmem [shape: bf16[9,4,32], index: 2, kind: input, shape index: {}]   ;;  %s12419_s3 = inlined_call_operand.vmem [shape: f32[1,32], index: 3, kind: input, shape index: {}]   ;;  %s12420_s4 = inlined_call_operand.vmem [shape: f32[1,32], index: 4, kind: input, shape index: {}]   ;;  %s12421_s5 = inlined_call_operand.vmem [shape: bf16[9,32,32], index: 5, kind: input, shape index: {}]   ;;  %s12422_s6 = inlined_call_operand.vmem [shape: f32[1,32], index: 6, kind: input, shape index: {}]   ;;  %s12423_s7 = inlined_call_operand.vmem [shape: f32[1,32], index: 7, kind: input, shape index: {}]   ;;  %s12424_s8 = inlined_call_operand.vmem [shape: bf16[4,32], index: 8, kind: input, shape index: {}]   ;;  %s12425_s9 = inlined_call_operand.vmem [shape: f32[1,32], index: 9, kind: input, shape index: {}]   ;;  %s12426_s10 = inlined_call_operand.hbm [shape: f32[2,256,32], index: 10, kind: output, shape index: {}]  }
   0x1   :  { %17 = vsyncpa [#allocation5 + $0x1], 0  ;;  %s9292_s13 = smov 0   ;;  %s9294_s14 = smov 0  }
   0x2   :  { %s9296_s15 = smov 0   ;;  %s9298_s16 = smov 0  }
   0x3 LB: > { %s9313_s17 = sadd.s32 4294967295, %s9230_s16   ;;  %s7171_s18 = sadd.s32 4294967294, %s9230_s16   ;;  %s9230_s16 = sphi %s9298_s16, %s13445_s16   ;;  %s9226_s15 = sphi %s9296_s15, %s13444_s15   ;;  %s9222_s14 = sphi %s9294_s14, %s13443_s14   ;;  %s9218_s13 = sphi %s9292_s13, %s13442_s13  }
   0x4   : > { %s9317_s19 = sadd.s32 1, %s9230_s16   ;;  %s245_s20 = sadd.s32 1, %s9226_s15 }
   0x5   : > { %s242_s21 = ssub.s32 %s9230_s16, %s9317_s19  ;;  %p255_p0 = scmp.ne.s32.totalorder %s9226_s15, %s9222_s14 }
   0x6   : > { %p243_p1 = scmp.eq.s32.totalorder %s242_s21, 0  ;;  %p256_p2 = scmp.eq.s32.totalorder %s9313_s17, 1 }
   0x7   : > { %p261_p3 = scmp.ne.s32.totalorder %s9222_s14, %s9218_s13  ;;  %p262_p4 = scmp.eq.s32.totalorder %s7171_s18, 1 }
   0x8   : > { %s9328_s22 = scalar_select %p243_p1, %s9226_s15, %s245_s20  }
   0x9   : > { %p9330_p5 = por %p256_p2, %p255_p0  ;;  %p9334_p6 = por %p262_p4, %p261_p3 }
   0xa   : > { %12781 = sst [smem:[#allocation7_spill]] %s9328_s22  ;;  %p7174_p7 = scmp.ge.s32.totalorder %s9230_s16, 1 }
   0xb   : > { %p315_p8 = scmp.lt.s32.totalorder %s9230_s16, 3 }
   0xd   : > { %p316_p9 = pnand %p7174_p7, %p315_p8 }
   0xf   : > { %319 = sbr.rel (%p316_p9) target bundleno = 1665 (0x681), region = 60 }
  0x16   : > { %v361_v0 = vld [vmem:[%s12417_s1 + $0x10] sm:$0xff]  ;;  %v359_v1 = vld [vmem:[%s12417_s1] sm:$0xff]  ;;  %vm456_vm0 = vcmask 31744   ;;  %v9232_v2 = vmov 0   ;;  %vm3732_vm1 = vcmask 261120   ;;  %v9233_v3 = vmov 0.0  }
  0x17   : > { %9149 = vset.pattern.permute.xlu1 %v9232_v2  ;;  %9148 = vset.pattern.permute.xlu0 %v9232_v2  ;;  %458 = vst.msk [vmem:[#allocation2 + $0x8] sm:$0xff] %vm456_vm0, %v9233_v3  ;;  %459 = vst.msk [vmem:[#allocation2 + $0x10] sm:$0xff] %vm456_vm0, %v9233_v3  ;;  %v362_v4 = vld [vmem:[%s12417_s1 + $0x18] sm:$0xff]  ;;  %v360_v5 = vld [vmem:[%s12417_s1 + $0x8] sm:$0xff]  ;;  %p353_p10 = scmp.lt.s32.totalorder %s9313_s17, 1  ;;  %vm867_vm2 = vcmask 1041408  }
  0x18   : > { %572 = vperm.xlu1 %9149, %v361_v0   ;;  %562 = vperm.xlu0 %9148, %v359_v1   ;;  %457 = vst.msk [vmem:[#allocation2] sm:$0xff] %vm456_vm0, %v9233_v3  ;;  %460 = vst.msk [vmem:[#allocation2 + $0x18] sm:$0xff] %vm456_vm0, %v9233_v3  ;;  %v364_v6 = vld [vmem:[%s12417_s1 + $0x28] sm:$0xff]  ;;  %v363_v7 = vld [vmem:[%s12417_s1 + $0x20] sm:$0xff]  ;;  %vm494_vm3 = vcmask 24576   ;;  %vm3770_vm4 = vcmask 253952  }
  0x19   : > { %461 = vst.msk [vmem:[#allocation2 + $0x20] sm:$0xff] %vm456_vm0, %v9233_v3  ;;  %462 = vst.msk [vmem:[#allocation2 + $0x28] sm:$0xff] %vm456_vm0, %v9233_v3  ;;  %s354_s26 = scalar_select %p353_p10, %s9313_s17, 1  ;;  %v366_v8 = vld [vmem:[%s12417_s1 + $0x38] sm:$0xff]  ;;  %v365_v9 = vld [vmem:[%s12417_s1 + $0x30] sm:$0xff] }
  0x1a   : > { %463 = vst.msk [vmem:[#allocation2 + $0x30] sm:$0xff] %vm456_vm0, %v9233_v3  ;;  %464 = vst.msk [vmem:[#allocation2 + $0x38] sm:$0xff] %vm456_vm0, %v9233_v3  ;;  %v368_v10 = vld [vmem:[%s12417_s1 + $0x48] sm:$0xff]  ;;  %v367_v11 = vld [vmem:[%s12417_s1 + $0x40] sm:$0xff]  ;;  %s350_s18 = sand.u32 1, %s9222_s14   ;;  %s7583_s27 = sshll.u32 %s9313_s17, 12 }
  0x1b   : > { %465 = vst.msk [vmem:[#allocation2 + $0x40] sm:$0xff] %vm456_vm0, %v9233_v3  ;;  %466 = vst.msk [vmem:[#allocation2 + $0x48] sm:$0xff] %vm456_vm0, %v9233_v3  ;;  %s7582_s11 = sshll.u32 %s354_s26, 8  ;;  %v7210_v12 = vld [vmem:[%s12418_s2 + $0x2] sm:$0x3]  ;;  %v370_v15 = vld [vmem:[%s12417_s1 + $0x58] sm:$0xff]  ;;  %s12363_s17 = scalar_lea.hbm %s12426_s10, %s7583_s27 }
  0x1c   : > { %467 = vst.msk [vmem:[#allocation2 + $0x50] sm:$0xff] %vm456_vm0, %v9233_v3  ;;  %468 = vst.msk [vmem:[#allocation2 + $0x58] sm:$0xff] %vm456_vm0, %v9233_v3  ;;  %577 = vperm.xlu1 %9149, %v362_v4   ;;  %567 = vperm.xlu0 %9148, %v360_v5   ;;  %s9526_s29 = scalar_lea.vmem %s12416_s0, %s7582_s11  ;;  %v869_v13 = vsel %vm867_vm2, %v7210_v12, 0  ;;  %v768_v17 = vld [vmem:[%s12418_s2] sm:$0x3]  ;;  %v369_v18 = vld [vmem:[%s12417_s1 + $0x50] sm:$0xff] }
  0x1d   : > { %469 = vst.msk [vmem:[#allocation2 + $0x60] sm:$0xff] %vm456_vm0, %v9233_v3  ;;  %470 = vst.msk [vmem:[#allocation2 + $0x68] sm:$0xff] %vm456_vm0, %v9233_v3  ;;  %9094 = vmatprep.subr.msk.bf16.mxu0 %vm867_vm2, %v7210_v12  ;;  %9095 = vmatprep.subr.msk.bf16.mxu1 %vm867_vm2, %v7210_v12  ;;  %v9541_v20 = vld [vmem:[%s9526_s29] sm:$0xff]  ;;  %v9544_v21 = vld [vmem:[%s9526_s29 + $0x8] sm:$0xff]  ;;  %v1081_v41 = vsel %vm867_vm2, %v768_v17, 0  ;;  %s7175_s21 = sshll.u32 %s350_s18, 8 }
  0x1e   : > { %471 = vst.msk [vmem:[#allocation2 + $0x70] sm:$0xff] %vm456_vm0, %v9233_v3  ;;  %472 = vst.msk [vmem:[#allocation2 + $0x78] sm:$0xff] %vm456_vm0, %v9233_v3  ;;  %v769_v14 = vld [vmem:[#allocation2 + $0x8] sm:$0xff]  ;;  %v770_v16 = vld [vmem:[#allocation2 + $0x10] sm:$0xff]  ;;  %7917 = vmatpush3.bf16.msra.mxu0 %v869_v13  ;;  %8581 = vmatpush3.bf16.msra.mxu1 %v869_v13  ;;  %s12186_s25 = scalar_lea.vmem [#allocation4], %s7175_s21  ;;  %s12375_s30 = scalar_lea.sflag [#allocation5], %s350_s18 }
  0x1f   : > { %473 = vst.msk [vmem:[#allocation2 + $0x80] sm:$0xff] %vm456_vm0, %v9233_v3  ;;  %474 = vst.msk [vmem:[#allocation2 + $0x88] sm:$0xff] %vm456_vm0, %v9233_v3  ;;  %v801_v19 = vpack.c.bf16 %v770_v16, %v769_v14  ;;  %9096 = vmatprep.subr.msk.bf16.mxu0 %vm867_vm2, %v768_v17  ;;  %v9553_v22 = vld [vmem:[%s9526_s29 + $0x10] sm:$0xff]  ;;  %v9556_v23 = vld [vmem:[%s9526_s29 + $0x18] sm:$0xff]  ;;  %s7109_s28 = sshll.u32 %s12186_s25, 4  ;;  %s9234_s12 = smov [#allocation4]   ;;  %s12365_s28 = int_to_ptr.vmem [resolvable:$true] %s7109_s28 }
  0x20   : > { %475 = vst.msk [vmem:[#allocation2 + $0x90] sm:$0xff] %vm456_vm0, %v9233_v3  ;;  %476 = vst.msk [vmem:[#allocation2 + $0x98] sm:$0xff] %vm456_vm0, %v9233_v3  ;;  %587 = vperm.xlu1 %9149, %v364_v6   ;;  %582 = vperm.xlu0 %9148, %v363_v7   ;;  %v9563_v24 = vld [vmem:[%s9526_s29 + $0x20] sm:$0xff]  ;;  %v9566_v25 = vld [vmem:[%s9526_s29 + $0x28] sm:$0xff]  ;;  %s9168_s11 = scalar_lea.vmem %s12365_s28, 4096  ;;  %s9172_s20 = sshll.u32 %s9234_s12, 4  ;;  %s9173_s20 = int_to_ptr.vmem [resolvable:$false] %s9172_s20 }
  0x21   : > { %477 = vst.msk [vmem:[#allocation2 + $0xa0] sm:$0xff] %vm456_vm0, %v9233_v3  ;;  %478 = vst.msk [vmem:[#allocation2 + $0xa8] sm:$0xff] %vm456_vm0, %v9233_v3  ;;  %7918 = vmatprep.mubr.msk.bf16.mxu0 %vm456_vm0, %v801_v19  ;;  %v372_v26 = vld [vmem:[%s12417_s1 + $0x68] sm:$0xff]  ;;  %v371_v27 = vld [vmem:[%s12417_s1 + $0x60] sm:$0xff]  ;;  %p9169_p11 = scmp.ne.s32.totalorder %s12365_s28, %s9168_s11  ;;  %p9175_p0 = scmp.lt.s32.totalorder %s12365_s28, %s9173_s20 }
  0x22   : > { %479 = vst.msk [vmem:[#allocation2 + $0xb0] sm:$0xff] %vm456_vm0, %v9233_v3  ;;  %480 = vst.msk [vmem:[#allocation2 + $0xb8] sm:$0xff] %vm456_vm0, %v9233_v3  ;;  %v9579_v28 = vld [vmem:[%s9526_s29 + $0x30] sm:$0xff]  ;;  %v9582_v29 = vld [vmem:[%s9526_s29 + $0x38] sm:$0xff] }
  0x23   : > { %481 = vst.msk [vmem:[#allocation2 + $0xc0] sm:$0xff] %vm456_vm0, %v9233_v3  ;;  %482 = vst.msk [vmem:[#allocation2 + $0xc8] sm:$0xff] %vm456_vm0, %v9233_v3  ;;  %v9585_v30 = vld [vmem:[%s9526_s29 + $0x40] sm:$0xff]  ;;  %v374_v31 = vld [vmem:[%s12417_s1 + $0x78] sm:$0xff]  ;;  %p9170_p12 = pnand %p9169_p11, %p9330_p5 }
  0x24   : > { %483 = vst.msk [vmem:[#allocation2 + $0xd0] sm:$0xff] %vm456_vm0, %v9233_v3  ;;  %484 = vst.msk [vmem:[#allocation2 + $0xd8] sm:$0xff] %vm456_vm0, %v9233_v3  ;;  %597 = vperm.xlu1 %9149, %v366_v8   ;;  %592 = vperm.xlu0 %9148, %v365_v9   ;;  %v9595_v32 = vld [vmem:[%s9526_s29 + $0x48] sm:$0xff]  ;;  %v9602_v33 = vld [vmem:[%s9526_s29 + $0x50] sm:$0xff] }
  0x25   : > { %485 = vst.msk [vmem:[#allocation2 + $0xe0] sm:$0xff] %vm456_vm0, %v9233_v3  ;;  %486 = vst.msk [vmem:[#allocation2 + $0xe8] sm:$0xff] %vm456_vm0, %v9233_v3  ;;  %v9605_v34 = vld [vmem:[%s9526_s29 + $0x58] sm:$0xff]  ;;  %v9608_v35 = vld [vmem:[%s9526_s29 + $0x60] sm:$0xff]  ;;  %p9171_p13 = pneg %p9170_p12 }
  0x26   : > { %487 = vst.msk [vmem:[#allocation2 + $0xf0] sm:$0xff] %vm456_vm0, %v9233_v3  ;;  %488 = vst.msk [vmem:[#allocation2 + $0xf8] sm:$0xff] %vm456_vm0, %v9233_v3  ;;  %v373_v36 = vld [vmem:[%s12417_s1 + $0x70] sm:$0xff]  ;;  %v9620_v40 = vld [vmem:[%s9526_s29 + $0x68] sm:$0xff] }
  0x27   : > { %489 = vst.msk [vmem:[#allocation2 + $0x100] sm:$0xff] %vm456_vm0, %v9233_v3  ;;  %490 = vst.msk [vmem:[#allocation2 + $0x108] sm:$0xff] %vm456_vm0, %v9233_v3  ;;  %v376_v45 = vld [vmem:[%s12417_s1 + $0x88] sm:$0xff]  ;;  %v375_v46 = vld [vmem:[%s12417_s1 + $0x80] sm:$0xff] }
  0x28   : > { %491 = vst.msk [vmem:[#allocation2 + $0x110] sm:$0xff] %vm456_vm0, %v9233_v3  ;;  %492 = vst.msk [vmem:[#allocation2 + $0x118] sm:$0xff] %vm456_vm0, %v9233_v3  ;;  %607 = vperm.xlu1 %9149, %v368_v10   ;;  %602 = vperm.xlu0 %9148, %v367_v11   ;;  %v9636_v51 = vld [vmem:[%s12418_s2 + $0x4] sm:$0x3]  ;;  %v378_v52 = vld [vmem:[%s12417_s1 + $0x98] sm:$0xff] }
  0x29   : > { %493 = vst.msk [vmem:[#allocation2 + $0x120] sm:$0xff] %vm456_vm0, %v9233_v3  ;;  %12784 = vst [vmem:[#allocation8_spill] sm:$0xff] %v9541_v20  ;;  %v377_v53 = vld [vmem:[%s12417_s1 + $0x90] sm:$0xff]  ;;  %v380_v56 = vld [vmem:[%s12417_s1 + $0xa8] sm:$0xff] }
  0x2a   : > { %3769 = vst.msk [vmem:[#allocation3 + $0x120] sm:$0xff] %vm3732_vm1, %v9233_v3  ;;  %3733 = vst.msk [vmem:[#allocation3] sm:$0xff] %vm3732_vm1, %v9233_v3  ;;  %v379_v57 = vld [vmem:[%s12417_s1 + $0xa0] sm:$0xff]  ;;  %v9653_v58 = vld [vmem:[%s9526_s29 + $0x70] sm:$0xff] }
  0x2b   : > { %3734 = vst.msk [vmem:[#allocation3 + $0x8] sm:$0xff] %vm3732_vm1, %v9233_v3  ;;  %3735 = vst.msk [vmem:[#allocation3 + $0x10] sm:$0xff] %vm3732_vm1, %v9233_v3  ;;  %v9656_v61 = vld [vmem:[%s9526_s29 + $0x78] sm:$0xff]  ;;  %v9661_v62 = vld [vmem:[%s9526_s29 + $0x80] sm:$0xff] }
  0x2c   : > { %3736 = vst.msk [vmem:[#allocation3 + $0x18] sm:$0xff] %vm3732_vm1, %v9233_v3  ;;  %3737 = vst.msk [vmem:[#allocation3 + $0x20] sm:$0xff] %vm3732_vm1, %v9233_v3  ;;  %617 = vperm.xlu1 %9149, %v370_v15   ;;  %612 = vperm.xlu0 %9148, %v369_v18   ;;  %v9664_v63 = vld [vmem:[%s9526_s29 + $0x88] sm:$0xff]  ;;  %v9674_v2 = vld [vmem:[%s9526_s29 + $0x90] sm:$0xff] }
  0x2d   : > { %3738 = vst.msk [vmem:[#allocation3 + $0x28] sm:$0xff] %vm3732_vm1, %v9233_v3  ;;  %3739 = vst.msk [vmem:[#allocation3 + $0x30] sm:$0xff] %vm3732_vm1, %v9233_v3  ;;  %v9677_v4 = vld [vmem:[%s9526_s29 + $0x98] sm:$0xff]  ;;  %v9680_v5 = vld [vmem:[%s9526_s29 + $0xa0] sm:$0xff] }
  0x2e   : > { %3740 = vst.msk [vmem:[#allocation3 + $0x38] sm:$0xff] %vm3732_vm1, %v9233_v3  ;;  %3741 = vst.msk [vmem:[#allocation3 + $0x40] sm:$0xff] %vm3732_vm1, %v9233_v3  ;;  %v9688_v6 = vld [vmem:[%s9526_s29 + $0xa8] sm:$0xff]  ;;  %v9693_v7 = vld [vmem:[%s9526_s29 + $0xb0] sm:$0xff] }
  0x2f   : > { %3742 = vst.msk [vmem:[#allocation3 + $0x48] sm:$0xff] %vm3732_vm1, %v9233_v3  ;;  %3743 = vst.msk [vmem:[#allocation3 + $0x50] sm:$0xff] %vm3732_vm1, %v9233_v3  ;;  %v9696_v8 = vld [vmem:[%s9526_s29 + $0xb8] sm:$0xff]  ;;  %v9705_v9 = vld [vmem:[%s9526_s29 + $0xc0] sm:$0xff] }
  0x30   : > { %3744 = vst.msk [vmem:[#allocation3 + $0x58] sm:$0xff] %vm3732_vm1, %v9233_v3  ;;  %3745 = vst.msk [vmem:[#allocation3 + $0x60] sm:$0xff] %vm3732_vm1, %v9233_v3  ;;  %627 = vperm.xlu1 %9149, %v372_v26   ;;  %622 = vperm.xlu0 %9148, %v371_v27   ;;  %v9708_v10 = vld [vmem:[%s9526_s29 + $0xc8] sm:$0xff]  ;;  %v9711_v11 = vld [vmem:[%s9526_s29 + $0xd0] sm:$0xff] }
  0x31   : > { %3746 = vst.msk [vmem:[#allocation3 + $0x68] sm:$0xff] %vm3732_vm1, %v9233_v3  ;;  %3747 = vst.msk [vmem:[#allocation3 + $0x70] sm:$0xff] %vm3732_vm1, %v9233_v3  ;;  %v9718_v12 = vld [vmem:[%s9526_s29 + $0xd8] sm:$0xff]  ;;  %v381_v14 = vld [vmem:[%s12417_s1 + $0xb0] sm:$0xff] }
  0x32   : > { %3748 = vst.msk [vmem:[#allocation3 + $0x78] sm:$0xff] %vm3732_vm1, %v9233_v3  ;;  %3749 = vst.msk [vmem:[#allocation3 + $0x80] sm:$0xff] %vm3732_vm1, %v9233_v3  ;;  %v382_v13 = vld [vmem:[%s12417_s1 + $0xb8] sm:$0xff]  ;;  %v9733_v17 = vld [vmem:[%s9526_s29 + $0xe0] sm:$0xff] }
  0x33   : > { %3750 = vst.msk [vmem:[#allocation3 + $0x88] sm:$0xff] %vm3732_vm1, %v9233_v3  ;;  %3751 = vst.msk [vmem:[#allocation3 + $0x90] sm:$0xff] %vm3732_vm1, %v9233_v3  ;;  %v9736_v18 = vld [vmem:[%s9526_s29 + $0xe8] sm:$0xff]  ;;  %v383_v26 = vld [vmem:[%s12417_s1 + $0xc0] sm:$0xff] }
  0x34   : > { %3752 = vst.msk [vmem:[#allocation3 + $0x98] sm:$0xff] %vm3732_vm1, %v9233_v3  ;;  %3753 = vst.msk [vmem:[#allocation3 + $0xa0] sm:$0xff] %vm3732_vm1, %v9233_v3  ;;  %637 = vperm.xlu1 %9149, %v374_v31   ;;  %632 = vperm.xlu0 %9148, %v373_v36   ;;  %v384_v19 = vld [vmem:[%s12417_s1 + $0xc8] sm:$0xff]  ;;  %v9752_v36 = vld [vmem:[%s9526_s29 + $0xf0] sm:$0xff] }
  0x35   : > { %3754 = vst.msk [vmem:[#allocation3 + $0xa8] sm:$0xff] %vm3732_vm1, %v9233_v3  ;;  %3755 = vst.msk [vmem:[#allocation3 + $0xb0] sm:$0xff] %vm3732_vm1, %v9233_v3 }
  0x36   : > { %3756 = vst.msk [vmem:[#allocation3 + $0xb8] sm:$0xff] %vm3732_vm1, %v9233_v3  ;;  %3757 = vst.msk [vmem:[#allocation3 + $0xc0] sm:$0xff] %vm3732_vm1, %v9233_v3 }
  0x37   : > { %3758 = vst.msk [vmem:[#allocation3 + $0xc8] sm:$0xff] %vm3732_vm1, %v9233_v3  ;;  %3759 = vst.msk [vmem:[#allocation3 + $0xd0] sm:$0xff] %vm3732_vm1, %v9233_v3 }
  0x38   : > { %3760 = vst.msk [vmem:[#allocation3 + $0xd8] sm:$0xff] %vm3732_vm1, %v9233_v3  ;;  %3761 = vst.msk [vmem:[#allocation3 + $0xe0] sm:$0xff] %vm3732_vm1, %v9233_v3  ;;  %647 = vperm.xlu1 %9149, %v376_v45   ;;  %642 = vperm.xlu0 %9148, %v375_v46   ;;  %v389_v45 = vld [vmem:[%s12417_s1 + $0xf0] sm:$0xff]  ;;  %v7179_v46 = vld [vmem:[%s12417_s1 + $0x108] sm:$0xff] }
  0x39   : > { %3762 = vst.msk [vmem:[#allocation3 + $0xe8] sm:$0xff] %vm3732_vm1, %v9233_v3  ;;  %3763 = vst.msk [vmem:[#allocation3 + $0xf0] sm:$0xff] %vm3732_vm1, %v9233_v3 }
  0x3a   : > { %3764 = vst.msk [vmem:[#allocation3 + $0xf8] sm:$0xff] %vm3732_vm1, %v9233_v3  ;;  %3765 = vst.msk [vmem:[#allocation3 + $0x100] sm:$0xff] %vm3732_vm1, %v9233_v3 }
  0x3b   : > { %3766 = vst.msk [vmem:[#allocation3 + $0x108] sm:$0xff] %vm3732_vm1, %v9233_v3  ;;  %3767 = vst.msk [vmem:[#allocation3 + $0x110] sm:$0xff] %vm3732_vm1, %v9233_v3 }
  0x3c   : > { %3768 = vst.msk [vmem:[#allocation3 + $0x118] sm:$0xff] %vm3732_vm1, %v9233_v3  ;;  %12785 = vst [vmem:[#allocation9_spill] sm:$0xff] %v9544_v21  ;;  %657 = vperm.xlu1 %9149, %v378_v52   ;;  %652 = vperm.xlu0 %9148, %v377_v53   ;;  %v7182_v52 = vld [vmem:[%s12417_s1 + $0x120] sm:$0xff]  ;;  %v7185_v53 = vld [vmem:[%s12417_s1 + $0x138] sm:$0xff] }
  0x3d   : > { %496 = vst.msk [vmem:[#allocation2 + $0x18] sm:$0xff] %vm456_vm0, %v9541_v20  ;;  %497 = vst.msk [vmem:[#allocation2 + $0x20] sm:$0xff] %vm456_vm0, %v9544_v21 }
  0x3e   : > { %12786 = vst [vmem:[#allocation10_spill] sm:$0xff] %v9553_v22  ;;  %12787 = vst [vmem:[#allocation11_spill] sm:$0xff] %v9556_v23 }
  0x3f   : > { %498 = vst.msk [vmem:[#allocation2 + $0x28] sm:$0xff] %vm456_vm0, %v9553_v22  ;;  %499 = vst.msk [vmem:[#allocation2 + $0x30] sm:$0xff] %vm456_vm0, %v9556_v23 }
  0x40   : > { %12788 = vst [vmem:[#allocation12_spill] sm:$0xff] %v9563_v24  ;;  %12789 = vst [vmem:[#allocation13_spill] sm:$0xff] %v9566_v25  ;;  %667 = vperm.xlu1 %9149, %v380_v56   ;;  %662 = vperm.xlu0 %9148, %v379_v57   ;;  %v7186_v56 = vld [vmem:[%s12417_s1 + $0x140] sm:$0xff]  ;;  %v7189_v57 = vld [vmem:[%s12417_s1 + $0x158] sm:$0xff] }
  0x41   : > { %500 = vst.msk [vmem:[#allocation2 + $0x38] sm:$0xff] %vm456_vm0, %v9563_v24  ;;  %501 = vst.msk [vmem:[#allocation2 + $0x40] sm:$0xff] %vm456_vm0, %v9566_v25 }
  0x42   : > { %12790 = vst [vmem:[#allocation14_spill] sm:$0xff] %v9579_v28  ;;  %12791 = vst [vmem:[#allocation15_spill] sm:$0xff] %v9582_v29 }
  0x43   : > { %12792 = vst [vmem:[#allocation16_spill] sm:$0xff] %v9585_v30  ;;  %502 = vst.msk [vmem:[#allocation2 + $0x48] sm:$0xff] %vm456_vm0, %v9579_v28 }
  0x44   : > { %503 = vst.msk [vmem:[#allocation2 + $0x50] sm:$0xff] %vm456_vm0, %v9582_v29  ;;  %12793 = vst [vmem:[#allocation17_spill] sm:$0xff] %v9595_v32  ;;  %v771_v37 = vld [vmem:[#allocation2 + $0x18] sm:$0xff]  ;;  %v772_v38 = vld [vmem:[#allocation2 + $0x20] sm:$0xff]  ;;  %677 = vperm.xlu1 %9149, %v382_v13   ;;  %672 = vperm.xlu0 %9148, %v381_v14  }
  0x45   : > { %504 = vst.msk [vmem:[#allocation2 + $0x58] sm:$0xff] %vm456_vm0, %v9585_v30  ;;  %505 = vst.msk [vmem:[#allocation2 + $0x60] sm:$0xff] %vm456_vm0, %v9595_v32  ;;  %v802_v39 = vpack.c.bf16 %v772_v38, %v771_v37  ;;  %v9755_v37 = vld [vmem:[%s9526_s29 + $0xf8] sm:$0xff]  ;;  %v7192_v13 = vld [vmem:[%s12417_s1 + $0x170] sm:$0xff]  ;;  %s9174_s29 = scalar_lea.vmem %s9173_s20, 8192 }
  0x46   : > { %12794 = vst [vmem:[#allocation18_spill] sm:$0xff] %v9602_v33  ;;  %12795 = vst [vmem:[#allocation19_spill] sm:$0xff] %v9605_v34  ;;  %v773_v42 = vld [vmem:[#allocation2 + $0x28] sm:$0xff]  ;;  %v774_v43 = vld [vmem:[#allocation2 + $0x30] sm:$0xff]  ;;  %p9176_p1 = scmp.lt.s32.totalorder %s9174_s29, %s9168_s11 }
  0x47   : > { %12796 = vst [vmem:[#allocation20_spill] sm:$0xff] %v9608_v35  ;;  %506 = vst.msk [vmem:[#allocation2 + $0x68] sm:$0xff] %vm456_vm0, %v9602_v33  ;;  %v803_v44 = vpack.c.bf16 %v774_v43, %v773_v42  ;;  %7919 = vmatmul.mubr.msk.bf16.vlgmr.msra.gmra.mrb[0].mxu0 %vm456_vm0, %v802_v39  ;;  %v386_v38 = vld [vmem:[%s12417_s1 + $0xd8] sm:$0xff]  ;;  %v385_v39 = vld [vmem:[%s12417_s1 + $0xd0] sm:$0xff] }
  0x48   : > { %507 = vst.msk [vmem:[#allocation2 + $0x70] sm:$0xff] %vm456_vm0, %v9605_v34  ;;  %508 = vst.msk [vmem:[#allocation2 + $0x78] sm:$0xff] %vm456_vm0, %v9608_v35  ;;  %7951 = vmatpush3.bf16.msra.mxu0 %v1081_v41  ;;  %v775_v47 = vld [vmem:[#allocation2 + $0x38] sm:$0xff]  ;;  %v776_v48 = vld [vmem:[#allocation2 + $0x40] sm:$0xff]  ;;  %687 = vperm.xlu1 %9149, %v384_v19   ;;  %p9177_p2 = por %p9176_p1, %p9175_p0 }
  0x49   : > { %12797 = vst [vmem:[#allocation21_spill] sm:$0xff] %v9620_v40  ;;  %509 = vst.msk [vmem:[#allocation2 + $0x80] sm:$0xff] %vm456_vm0, %v9620_v40  ;;  %7922 = vmatprep.mubr.msk.bf16.mxu0 %vm456_vm0, %v803_v44  ;;  %v804_v54 = vpack.c.bf16 %v776_v48, %v775_v47  ;;  %9097 = vmatprep.subr.msk.bf16.mxu0 %vm867_vm2, %v9636_v51  ;;  %v388_v42 = vld [vmem:[%s12417_s1 + $0xe8] sm:$0xff]  ;;  %v387_v43 = vld [vmem:[%s12417_s1 + $0xe0] sm:$0xff] }
  0x4a   : > { %v777_v49 = vld [vmem:[#allocation2 + $0x48] sm:$0xff]  ;;  %12798 = vst [vmem:[#allocation22_spill] sm:$0xff] %v9653_v58  ;;  %12799 = vst [vmem:[#allocation23_spill] sm:$0xff] %v9656_v61  ;;  %682 = vperm.xlu0 %9148, %v383_v26   ;;  %v390_v44 = vld [vmem:[%s12417_s1 + $0xf8] sm:$0xff]  ;;  %p9178_p3 = pnand %p9177_p2, %p9171_p13 }
  0x4b   : > { %v778_v50 = vld [vmem:[#allocation2 + $0x50] sm:$0xff]  ;;  %510 = vst.msk [vmem:[#allocation2 + $0x88] sm:$0xff] %vm456_vm0, %v9653_v58  ;;  %12800 = vst [vmem:[#allocation24_spill] sm:$0xff] %v9661_v62  ;;  %v7178_v47 = vld [vmem:[%s12417_s1 + $0x100] sm:$0xff] }
  0x4c   : > { %v805_v55 = vpack.c.bf16 %v778_v50, %v777_v49  ;;  %v779_v59 = vld [vmem:[#allocation2 + $0x58] sm:$0xff]  ;;  %v780_v60 = vld [vmem:[#allocation2 + $0x60] sm:$0xff]  ;;  %12801 = vst [vmem:[#allocation25_spill] sm:$0xff] %v9664_v63  ;;  %511 = vst.msk [vmem:[#allocation2 + $0x90] sm:$0xff] %vm456_vm0, %v9656_v61  ;;  %697 = vperm.xlu1 %9149, %v386_v38  }
  0x4d   : > { %512 = vst.msk [vmem:[#allocation2 + $0x98] sm:$0xff] %vm456_vm0, %v9661_v62  ;;  %513 = vst.msk [vmem:[#allocation2 + $0xa0] sm:$0xff] %vm456_vm0, %v9664_v63  ;;  %v806_v15 = vpack.c.bf16 %v780_v60, %v779_v59  ;;  %v7181_v48 = vld [vmem:[%s12417_s1 + $0x118] sm:$0xff]  ;;  %v7180_v49 = vld [vmem:[%s12417_s1 + $0x110] sm:$0xff] }
  0x4e   : > { %v781_v0 = vld [vmem:[#allocation2 + $0x68] sm:$0xff]  ;;  %12802 = vst [vmem:[#allocation26_spill] sm:$0xff] %v9674_v2  ;;  %12803 = vst [vmem:[#allocation27_spill] sm:$0xff] %v9677_v4  ;;  %692 = vperm.xlu0 %9148, %v385_v39   ;;  %v7188_v59 = vld [vmem:[%s12417_s1 + $0x150] sm:$0xff] }
  0x4f   : > { %7923 = vmatmul.mubr.msk.bf16.gmra.mrb[4].mxu0 %vm456_vm0, %v804_v54  ;;  %v782_v1 = vld [vmem:[#allocation2 + $0x70] sm:$0xff]  ;;  %12804 = vst [vmem:[#allocation28_spill] sm:$0xff] %v9680_v5  ;;  %514 = vst.msk [vmem:[#allocation2 + $0xa8] sm:$0xff] %vm456_vm0, %v9674_v2  ;;  %v783_v27 = vld [vmem:[#allocation2 + $0x78] sm:$0xff] }
  0x50   : > { %7926 = vmatprep.mubr.msk.bf16.mxu0 %vm456_vm0, %v805_v55  ;;  %515 = vst.msk [vmem:[#allocation2 + $0xb0] sm:$0xff] %vm456_vm0, %v9677_v4  ;;  %12805 = vst [vmem:[#allocation29_spill] sm:$0xff] %v9688_v6  ;;  %v9730_v16 = vpack.c.bf16 %v782_v1, %v781_v0  ;;  %v784_v31 = vld [vmem:[#allocation2 + $0x80] sm:$0xff]  ;;  %707 = vperm.xlu1 %9149, %v388_v42   ;;  %v7183_v50 = vld [vmem:[%s12417_s1 + $0x128] sm:$0xff] }
  0x51   : > { %516 = vst.msk [vmem:[#allocation2 + $0xb8] sm:$0xff] %vm456_vm0, %v9680_v5  ;;  %12806 = vst [vmem:[#allocation30_spill] sm:$0xff] %v9693_v7  ;;  %v9763_v41 = vpack.c.bf16 %v784_v31, %v783_v27  ;;  %v7184_v54 = vld [vmem:[%s12417_s1 + $0x130] sm:$0xff]  ;;  %v7187_v55 = vld [vmem:[%s12417_s1 + $0x148] sm:$0xff] }
  0x52   : > { %12807 = vst [vmem:[#allocation31_spill] sm:$0xff] %v9696_v8  ;;  %517 = vst.msk [vmem:[#allocation2 + $0xc0] sm:$0xff] %vm456_vm0, %v9688_v6  ;;  %702 = vperm.xlu0 %9148, %v387_v43   ;;  %v7191_v60 = vld [vmem:[%s12417_s1 + $0x168] sm:$0xff]  ;;  %v7190_v0 = vld [vmem:[%s12417_s1 + $0x160] sm:$0xff] }
  0x53   : > { %518 = vst.msk [vmem:[#allocation2 + $0xc8] sm:$0xff] %vm456_vm0, %v9693_v7  ;;  %519 = vst.msk [vmem:[#allocation2 + $0xd0] sm:$0xff] %vm456_vm0, %v9696_v8  ;;  %v7193_v1 = vld [vmem:[%s12417_s1 + $0x178] sm:$0xff]  ;;  %v7195_v14 = vld [vmem:[%s12417_s1 + $0x188] sm:$0xff] }
  0x54   : > { %12808 = vst [vmem:[#allocation32_spill] sm:$0xff] %v9705_v9  ;;  %12809 = vst [vmem:[#allocation33_spill] sm:$0xff] %v9708_v10  ;;  %717 = vperm.xlu1 %9149, %v390_v44   ;;  %v7197_v19 = vld [vmem:[%s12417_s1 + $0x198] sm:$0xff]  ;;  %v7196_v26 = vld [vmem:[%s12417_s1 + $0x190] sm:$0xff] }
  0x55   : > { %12810 = vst [vmem:[#allocation34_spill] sm:$0xff] %v9711_v11  ;;  %520 = vst.msk [vmem:[#allocation2 + $0xd8] sm:$0xff] %vm456_vm0, %v9705_v9  ;;  %v7199_v27 = vld [vmem:[%s12417_s1 + $0x1a8] sm:$0xff]  ;;  %v7198_v31 = vld [vmem:[%s12417_s1 + $0x1a0] sm:$0xff] }
  0x56   : > { %521 = vst.msk [vmem:[#allocation2 + $0xe0] sm:$0xff] %vm456_vm0, %v9708_v10  ;;  %12811 = vst [vmem:[#allocation35_spill] sm:$0xff] %v9718_v12  ;;  %712 = vperm.xlu0 %9148, %v389_v45   ;;  %v7201_v38 = vld [vmem:[%s12417_s1 + $0x1b8] sm:$0xff]  ;;  %v7200_v39 = vld [vmem:[%s12417_s1 + $0x1b0] sm:$0xff] }
  0x57   : > { %522 = vst.msk [vmem:[#allocation2 + $0xe8] sm:$0xff] %vm456_vm0, %v9711_v11  ;;  %523 = vst.msk [vmem:[#allocation2 + $0xf0] sm:$0xff] %vm456_vm0, %v9718_v12  ;;  %7927 = vmatmul.mubr.msk.bf16.gmra.mrb[8].mxu0 %vm456_vm0, %v806_v15  ;;  %v7194_v15 = vld [vmem:[%s12417_s1 + $0x180] sm:$0xff]  ;;  %v7203_v42 = vld [vmem:[%s12417_s1 + $0x1c8] sm:$0xff] }
  0x58   : > { %12812 = vst [vmem:[#allocation36_spill] sm:$0xff] %v9733_v17  ;;  %12813 = vst [vmem:[#allocation37_spill] sm:$0xff] %v9736_v18  ;;  %7930 = vmatprep.mubr.msk.bf16.mxu0 %vm456_vm0, %v9730_v16  ;;  %1283 = vperm.xlu1 %9149, %v7179_v46   ;;  %v7202_v43 = vld [vmem:[%s12417_s1 + $0x1c0] sm:$0xff]  ;;  %v7205_v44 = vld [vmem:[%s12417_s1 + $0x1d8] sm:$0xff] }
  0x59   : > { %524 = vst.msk [vmem:[#allocation2 + $0xf8] sm:$0xff] %vm456_vm0, %v9733_v17  ;;  %525 = vst.msk [vmem:[#allocation2 + $0x100] sm:$0xff] %vm456_vm0, %v9736_v18  ;;  %v7204_v45 = vld [vmem:[%s12417_s1 + $0x1d0] sm:$0xff]  ;;  %v7207_v46 = vld [vmem:[%s12417_s1 + $0x1e8] sm:$0xff] }
  0x5a   : > { %12814 = vst [vmem:[#allocation38_spill] sm:$0xff] %v9752_v36  ;;  %12815 = vst [vmem:[#allocation39_spill] sm:$0xff] %v9755_v37  ;;  %1278 = vperm.xlu0 %9148, %v7178_v47   ;;  %v7206_v47 = vld [vmem:[%s12417_s1 + $0x1e0] sm:$0xff] }
  0x5b   : > { %526 = vst.msk [vmem:[#allocation2 + $0x108] sm:$0xff] %vm456_vm0, %v9752_v36  ;;  %527 = vst.msk [vmem:[#allocation2 + $0x110] sm:$0xff] %vm456_vm0, %v9755_v37 }
  0x5c   : > { %1293 = vperm.xlu1 %9149, %v7181_v48   ;;  %495 = vst.msk [vmem:[#allocation2 + $0x128] sm:$0x1] %vm494_vm3, %v9233_v3  ;;  %v7209_v48 = vld [vmem:[%s12417_s1 + $0x1f8] sm:$0xff] }
  0x5d   : > { %3771 = vst.msk [vmem:[#allocation3 + $0x128] sm:$0x1] %vm3770_vm4, %v9233_v3  ;;  %v2678_v3 = vld [vmem:[#allocation2 + $0x37] sm:$0xff] }
  0x5e   : > { %1288 = vperm.xlu0 %9148, %v7180_v49   ;;  %v7208_v49 = vld [vmem:[%s12417_s1 + $0x1f0] sm:$0xff] }
  0x5f   : > { %7931 = vmatmul.mubr.msk.bf16.gmra.mrb[12].mxu0 %vm456_vm0, %v9763_v41 }
  0x60   : > { %1303 = vperm.xlu1 %9149, %v7183_v50  }
  0x62   : > { %1298 = vperm.xlu0 %9148, %v7182_v52   ;;  %v530_v52 = vld [vmem:[#allocation2 + $0x17] sm:$0xff] }
  0x64   : > { %1313 = vperm.xlu1 %9149, %v7185_v53  }
  0x66   : > { %1308 = vperm.xlu0 %9148, %v7184_v54   ;;  %v531_v54 = vld [vmem:[#allocation2 + $0x1f] sm:$0xff] }
  0x68   : > { %1323 = vperm.xlu1 %9149, %v7187_v55   ;;  %v1732_v55 = vld [vmem:[#allocation2 + $0x27] sm:$0xff] }
  0x6a   : > { %1318 = vperm.xlu0 %9148, %v7186_v56   ;;  %v528_v56 = vld [vmem:[#allocation2 + $0x7] sm:$0xff] }
  0x6c   : > { %1333 = vperm.xlu1 %9149, %v7189_v57   ;;  %v1733_v57 = vld [vmem:[#allocation2 + $0x2f] sm:$0xff] }
  0x6e   : > { %1328 = vperm.xlu0 %9148, %v7188_v59   ;;  %v2679_v59 = vld [vmem:[#allocation2 + $0x3f] sm:$0xff] }
  0x70   : > { %1343 = vperm.xlu1 %9149, %v7191_v60   ;;  %v529_v60 = vld [vmem:[#allocation2 + $0xf] sm:$0xff] }
  0x72   : > { %1338 = vperm.xlu0 %9148, %v7190_v0  }
  0x74   : > { %1353 = vperm.xlu1 %9149, %v7193_v1  }
  0x76   : > { %1348 = vperm.xlu0 %9148, %v7192_v13  }
  0x78   : > { %1363 = vperm.xlu1 %9149, %v7195_v14  }
  0x7a   : > { %1358 = vperm.xlu0 %9148, %v7194_v15  }
  0x7c   : > { %1373 = vperm.xlu1 %9149, %v7197_v19  }
  0x7e   : > { %1368 = vperm.xlu0 %9148, %v7196_v26  }
  0x80   : > { %1383 = vperm.xlu1 %9149, %v7199_v27  }
  0x82   : > { %1378 = vperm.xlu0 %9148, %v7198_v31  }
  0x84   : > { %1393 = vperm.xlu1 %9149, %v7201_v38  }
  0x86   : > { %1388 = vperm.xlu0 %9148, %v7200_v39  }
  0x88   : > { %1403 = vperm.xlu1 %9149, %v7203_v42  }
  0x8a   : > { %1398 = vperm.xlu0 %9148, %v7202_v43  }
  0x8c   : > { %1413 = vperm.xlu1 %9149, %v7205_v44  }
  0x8e   : > { %1408 = vperm.xlu0 %9148, %v7204_v45  }
  0x90   : > { %1423 = vperm.xlu1 %9149, %v7207_v46  }
  0x92   : > { %1418 = vperm.xlu0 %9148, %v7206_v47  }
  0x94   : > { %1433 = vperm.xlu1 %9149, %v7209_v48  }
  0x96   : > { %1428 = vperm.xlu0 %9148, %v7208_v49   ;;  %v1535_v49 = vsel %vm867_vm2, %v9636_v51, 0  ;;  %v536_v51 = vld [vmem:[#allocation2 + $0x47] sm:$0xff] }
  0x97   : > { %v9881_v50 = vpop.permute.xlu1 %572  ;;  %v9883_v53 = vpop.permute.xlu0 %562 }
  0x98   : > { %12816 = vst [vmem:[#allocation40_spill] sm:$0xff] %v9881_v50  ;;  %12817 = vst [vmem:[#allocation41_spill] sm:$0xff] %v9883_v53  ;;  %v722_v0 = vmul.f32 %v9881_v50, %v530_v52  ;;  %v9887_v1 = vmul.f32 %v1732_v55, %v9881_v50  ;;  %v9890_v13 = vmul.f32 %v2678_v3, %v9881_v50 }
  0x99   : > { %v720_v19 = vmul.f32 %v9883_v53, %v528_v56  ;;  %v9906_v39 = vmul.f32 %v9883_v53, %v530_v52 }
  0x9a   : > { %12818 = vst [vmem:[#allocation42_spill] sm:$0xff] %v9890_v13 }
  0x9b   : > { %v9892_v14 = vpop.permute.xlu1 %577  ;;  %v9894_v15 = vpop.permute.xlu0 %567 }
  0x9c   : > { %12819 = vst [vmem:[#allocation43_spill] sm:$0xff] %v9892_v14  ;;  %12820 = vst [vmem:[#allocation44_spill] sm:$0xff] %v9894_v15  ;;  %v723_v26 = vmul.f32 %v9892_v14, %v531_v54  ;;  %v9899_v27 = vmul.f32 %v1733_v57, %v9892_v14  ;;  %v9902_v31 = vmul.f32 %v2679_v59, %v9892_v14 }
  0x9d   : > { %v721_v38 = vmul.f32 %v9894_v15, %v529_v60  ;;  %v9909_v42 = vmul.f32 %v9894_v15, %v531_v54  ;;  %v9929_v60 = vld [vmem:[%s12418_s2 + $0x6] sm:$0x3] }
  0x9e   : > { %12821 = vst [vmem:[#allocation45_spill] sm:$0xff] %v9902_v31  ;;  %v753_v43 = vpack.c.bf16 %v723_v26, %v722_v0  ;;  %v537_v26 = vld [vmem:[#allocation2 + $0x4f] sm:$0xff] }
  0x9f   : > { %v752_v46 = vpack.c.bf16 %v721_v38, %v720_v19  ;;  %v9915_v47 = vpop.permute.xlu1 %587  ;;  %v9917_v48 = vpop.permute.xlu0 %582 }
  0xa0   : > { %12822 = vst [vmem:[#allocation46_spill] sm:$0xff] %v9915_v47  ;;  %12823 = vst [vmem:[#allocation47_spill] sm:$0xff] %v9917_v48  ;;  %v724_v54 = vmul.f32 %v1732_v55, %v9917_v48  ;;  %v725_v56 = vmul.f32 %v1733_v57, %v9915_v47  ;;  %v9932_v0 = vmul.f32 %v2678_v3, %v9917_v48 }
  0xa1   : > { %7952 = vmatprep.mubr.msk.bf16.mxu0 %vm456_vm0, %v752_v46  ;;  %v9935_v19 = vmul.f32 %v2679_v59, %v9915_v47  ;;  %v2070_v47 = vld [vmem:[#allocation2 + $0x88] sm:$0xff] }
  0xa2   : > { %7953 = vmatmul.mubr.msk.bf16.vlgmr.msra.gmra.mrb[0].mxu0 %vm456_vm0, %v753_v43  ;;  %v754_v38 = vpack.c.bf16 %v725_v56, %v724_v54  ;;  %v538_v54 = vld [vmem:[#allocation2 + $0x57] sm:$0xff]  ;;  %v539_v56 = vld [vmem:[#allocation2 + $0x5f] sm:$0xff] }
  0xa3   : > { %7985 = vmatpush3.bf16.msra.mxu0 %v1535_v49  ;;  %v9940_v57 = vpop.permute.xlu1 %597  ;;  %v9942_v46 = vpop.permute.xlu0 %592 }
  0xa4   : > { %12824 = vst [vmem:[#allocation48_spill] sm:$0xff] %v9940_v57  ;;  %12825 = vst [vmem:[#allocation49_spill] sm:$0xff] %v9942_v46  ;;  %9098 = vmatprep.subr.msk.bf16.mxu0 %vm867_vm2, %v9929_v60  ;;  %7956 = vmatprep.mubr.msk.bf16.mxu0 %vm456_vm0, %v754_v38  ;;  %v726_v45 = vmul.f32 %v2678_v3, %v9942_v46  ;;  %v727_v43 = vmul.f32 %v2679_v59, %v9940_v57 }
  0xa5   : > { %v9950_v44 = vmul.f32 %v9942_v46, %v536_v51  ;;  %v9953_v49 = vmul.f32 %v9940_v57, %v537_v26 }
  0xa6   : > { %v755_v55 = vpack.c.bf16 %v727_v43, %v726_v45  ;;  %v540_v45 = vld [vmem:[#allocation2 + $0x67] sm:$0xff]  ;;  %v541_v43 = vld [vmem:[#allocation2 + $0x6f] sm:$0xff] }
  0xa7   : > { %v9957_v37 = vpop.permute.xlu1 %607  ;;  %v9959_v36 = vpop.permute.xlu0 %602 }
  0xa8   : > { %12826 = vst [vmem:[#allocation50_spill] sm:$0xff] %v9957_v37  ;;  %12827 = vst [vmem:[#allocation51_spill] sm:$0xff] %v9959_v36  ;;  %v728_v3 = vmul.f32 %v9959_v36, %v536_v51  ;;  %v729_v59 = vmul.f32 %v9957_v37, %v537_v26  ;;  %v9964_v38 = vmul.f32 %v9959_v36, %v538_v54 }
  0xa9   : > { %v9967_v18 = vmul.f32 %v9957_v37, %v539_v56 }
  0xaa   : > { %7957 = vmatmul.mubr.msk.bf16.gmra.mrb[4].mxu0 %vm456_vm0, %v755_v55  ;;  %v756_v17 = vpack.c.bf16 %v729_v59, %v728_v3  ;;  %v542_v3 = vld [vmem:[#allocation2 + $0x77] sm:$0xff]  ;;  %v543_v59 = vld [vmem:[#allocation2 + $0x7f] sm:$0xff] }
  0xab   : > { %v9972_v12 = vpop.permute.xlu1 %617  ;;  %v9974_v11 = vpop.permute.xlu0 %612 }
  0xac   : > { %12828 = vst [vmem:[#allocation52_spill] sm:$0xff] %v9972_v12  ;;  %12829 = vst [vmem:[#allocation53_spill] sm:$0xff] %v9974_v11  ;;  %7960 = vmatprep.mubr.msk.bf16.mxu0 %vm456_vm0, %v756_v17  ;;  %v730_v51 = vmul.f32 %v9974_v11, %v538_v54  ;;  %v731_v26 = vmul.f32 %v9972_v12, %v539_v56  ;;  %v9980_v10 = vmul.f32 %v9974_v11, %v540_v45 }
  0xad   : > { %v9983_v55 = vmul.f32 %v9972_v12, %v541_v43 }
  0xae   : > { %v757_v9 = vpack.c.bf16 %v731_v26, %v730_v51  ;;  %v544_v51 = vld [vmem:[#allocation2 + $0x87] sm:$0xff]  ;;  %v545_v26 = vld [vmem:[#allocation2 + $0x8f] sm:$0xff] }
  0xaf   : > { %v9987_v8 = vpop.permute.xlu1 %627  ;;  %v9989_v7 = vpop.permute.xlu0 %622 }
  0xb0   : > { %12830 = vst [vmem:[#allocation54_spill] sm:$0xff] %v9987_v8  ;;  %12831 = vst [vmem:[#allocation55_spill] sm:$0xff] %v9989_v7  ;;  %v732_v17 = vmul.f32 %v9989_v7, %v540_v45  ;;  %v733_v54 = vmul.f32 %v9987_v8, %v541_v43  ;;  %v9994_v56 = vmul.f32 %v9989_v7, %v542_v3 }
  0xb1   : > { %v9997_v6 = vmul.f32 %v9987_v8, %v543_v59  ;;  %v1244_v8 = vld [vmem:[#allocation2 + $0x9] sm:$0xff] }
  0xb2   : > { %7961 = vmatmul.mubr.msk.bf16.gmra.mrb[8].mxu0 %vm456_vm0, %v757_v9  ;;  %v758_v5 = vpack.c.bf16 %v733_v54, %v732_v17  ;;  %v546_v17 = vld [vmem:[#allocation2 + $0x97] sm:$0xff]  ;;  %v547_v54 = vld [vmem:[#allocation2 + $0x9f] sm:$0xff] }
  0xb3   : > { %v10002_v4 = vpop.permute.xlu1 %637  ;;  %v10004_v2 = vpop.permute.xlu0 %632 }
  0xb4   : > { %12832 = vst [vmem:[#allocation56_spill] sm:$0xff] %v10002_v4  ;;  %12833 = vst [vmem:[#allocation57_spill] sm:$0xff] %v10004_v2  ;;  %7964 = vmatprep.mubr.msk.bf16.mxu0 %vm456_vm0, %v758_v5  ;;  %v734_v45 = vmul.f32 %v10004_v2, %v542_v3  ;;  %v735_v43 = vmul.f32 %v10002_v4, %v543_v59  ;;  %v10010_v63 = vmul.f32 %v10004_v2, %v544_v51  ;;  %v1247_v2 = vld [vmem:[#allocation2 + $0x21] sm:$0xff] }
  0xb5   : > { %v10013_v9 = vmul.f32 %v10002_v4, %v545_v26 }
  0xb6   : > { %v759_v62 = vpack.c.bf16 %v735_v43, %v734_v45  ;;  %v548_v45 = vld [vmem:[#allocation2 + $0xa7] sm:$0xff]  ;;  %v549_v43 = vld [vmem:[#allocation2 + $0xaf] sm:$0xff] }
  0xb7   : > { %v10017_v61 = vpop.permute.xlu1 %647  ;;  %v10019_v58 = vpop.permute.xlu0 %642 }
  0xb8   : > { %12834 = vst [vmem:[#allocation58_spill] sm:$0xff] %v10017_v61  ;;  %12835 = vst [vmem:[#allocation59_spill] sm:$0xff] %v10019_v58  ;;  %v736_v5 = vmul.f32 %v10019_v58, %v544_v51  ;;  %v737_v3 = vmul.f32 %v10017_v61, %v545_v26  ;;  %v10024_v59 = vmul.f32 %v10019_v58, %v546_v17 }
  0xb9   : > { %v10027_v40 = vmul.f32 %v10017_v61, %v547_v54 }
  0xba   : > { %7965 = vmatmul.mubr.msk.bf16.gmra.mrb[12].mxu0 %vm456_vm0, %v759_v62  ;;  %v760_v35 = vpack.c.bf16 %v737_v3, %v736_v5  ;;  %v550_v5 = vld [vmem:[#allocation2 + $0xb7] sm:$0xff]  ;;  %v551_v3 = vld [vmem:[#allocation2 + $0xbf] sm:$0xff] }
  0xbb   : > { %v10032_v34 = vpop.permute.xlu1 %657  ;;  %v10034_v33 = vpop.permute.xlu0 %652 }
  0xbc   : > { %12836 = vst [vmem:[#allocation60_spill] sm:$0xff] %v10032_v34  ;;  %12837 = vst [vmem:[#allocation61_spill] sm:$0xff] %v10034_v33  ;;  %7968 = vmatprep.mubr.msk.bf16.mxu0 %vm456_vm0, %v760_v35  ;;  %v738_v51 = vmul.f32 %v10034_v33, %v546_v17  ;;  %v739_v26 = vmul.f32 %v10032_v34, %v547_v54  ;;  %v10040_v32 = vmul.f32 %v10034_v33, %v548_v45  ;;  %v10109_v33 = vld [vmem:[#allocation2 + $0x10f] sm:$0xff] }
  0xbd   : > { %v10043_v62 = vmul.f32 %v10032_v34, %v549_v43  ;;  %v10107_v34 = vld [vmem:[#allocation2 + $0x107] sm:$0xff] }
  0xbe   : > { %v761_v30 = vpack.c.bf16 %v739_v26, %v738_v51  ;;  %v552_v51 = vld [vmem:[#allocation2 + $0xc7] sm:$0xff]  ;;  %v553_v26 = vld [vmem:[#allocation2 + $0xcf] sm:$0xff] }
  0xbf   : > { %v10047_v29 = vpop.permute.xlu1 %667  ;;  %v10049_v28 = vpop.permute.xlu0 %662 }
  0xc0   : > { %12838 = vst [vmem:[#allocation62_spill] sm:$0xff] %v10047_v29  ;;  %12839 = vst [vmem:[#allocation63_spill] sm:$0xff] %v10049_v28  ;;  %v740_v35 = vmul.f32 %v10049_v28, %v548_v45  ;;  %v741_v17 = vmul.f32 %v10047_v29, %v549_v43  ;;  %v10054_v54 = vmul.f32 %v10049_v28, %v550_v5 }
  0xc1   : > { %v10057_v25 = vmul.f32 %v10047_v29, %v551_v3 }
  0xc2   : > { %7969 = vmatmul.mubr.msk.bf16.gmra.mrb[16].mxu0 %vm456_vm0, %v761_v30  ;;  %v762_v24 = vpack.c.bf16 %v741_v17, %v740_v35  ;;  %v554_v35 = vld [vmem:[#allocation2 + $0xd7] sm:$0xff]  ;;  %v555_v17 = vld [vmem:[#allocation2 + $0xdf] sm:$0xff] }
  0xc3   : > { %v10062_v23 = vpop.permute.xlu1 %677  ;;  %v10064_v22 = vpop.permute.xlu0 %672 }
  0xc4   : > { %12840 = vst [vmem:[#allocation64_spill] sm:$0xff] %v10062_v23  ;;  %12841 = vst [vmem:[#allocation65_spill] sm:$0xff] %v10064_v22  ;;  %7972 = vmatprep.mubr.msk.bf16.mxu0 %vm456_vm0, %v762_v24  ;;  %v742_v45 = vmul.f32 %v10064_v22, %v550_v5  ;;  %v743_v43 = vmul.f32 %v10062_v23, %v551_v3  ;;  %v10070_v21 = vmul.f32 %v10064_v22, %v552_v51 }
  0xc5   : > { %v10073_v30 = vmul.f32 %v10062_v23, %v553_v26 }
  0xc6   : > { %v763_v20 = vpack.c.bf16 %v743_v43, %v742_v45  ;;  %v556_v45 = vld [vmem:[#allocation2 + $0xe7] sm:$0xff]  ;;  %v557_v43 = vld [vmem:[#allocation2 + $0xef] sm:$0xff] }
  0xc7   : > { %v10077_v50 = vpop.permute.xlu1 %687 }
  0xc8   : > { %12842 = vst [vmem:[#allocation66_spill] sm:$0xff] %v10077_v50  ;;  %v745_v5 = vmul.f32 %v10077_v50, %v553_v26  ;;  %v10087_v23 = vmul.f32 %v10077_v50, %v555_v17 }
  0xc9   : > { %v10079_v14 = vpop.permute.xlu0 %682 }
  0xca   : > { %12843 = vst [vmem:[#allocation67_spill] sm:$0xff] %v10079_v14  ;;  %v744_v24 = vmul.f32 %v10079_v14, %v552_v51  ;;  %v10084_v3 = vmul.f32 %v10079_v14, %v554_v35  ;;  %7973 = vmatmul.mubr.msk.bf16.gmra.mrb[20].mxu0 %vm456_vm0, %v763_v20 }
  0xcb   : > { %v10092_v29 = vpop.permute.xlu1 %697 }
  0xcc   : > { %v764_v22 = vpack.c.bf16 %v745_v5, %v744_v24  ;;  %12844 = vst [vmem:[#allocation68_spill] sm:$0xff] %v10092_v29  ;;  %v747_v26 = vmul.f32 %v10092_v29, %v555_v17  ;;  %v10103_v20 = vmul.f32 %v10092_v29, %v557_v43  ;;  %v558_v24 = vld [vmem:[#allocation2 + $0xf7] sm:$0xff]  ;;  %v559_v5 = vld [vmem:[#allocation2 + $0xff] sm:$0xff] }
  0xcd   : > { %v10094_v28 = vpop.permute.xlu0 %692 }
  0xce   : > { %12845 = vst [vmem:[#allocation69_spill] sm:$0xff] %v10094_v28  ;;  %7976 = vmatprep.mubr.msk.bf16.mxu0 %vm456_vm0, %v764_v22  ;;  %v746_v51 = vmul.f32 %v10094_v28, %v554_v35  ;;  %v10100_v50 = vmul.f32 %v10094_v28, %v556_v45 }
  0xcf   : > { %v10111_v22 = vpop.permute.xlu1 %707 }
  0xd0   : > { %v765_v14 = vpack.c.bf16 %v747_v26, %v746_v51  ;;  %12846 = vst [vmem:[#allocation70_spill] sm:$0xff] %v10111_v22  ;;  %v749_v28 = vmul.f32 %v10111_v22, %v557_v43  ;;  %v10121_v51 = vmul.f32 %v10111_v22, %v559_v5  ;;  %v10130_v52 = vmul.f32 %v10109_v33, %v10111_v22  ;;  %v1246_v22 = vld [vmem:[#allocation2 + $0x19] sm:$0xff] }
  0xd1   : > { %v10113_v35 = vpop.permute.xlu0 %702 }
  0xd2   : > { %12847 = vst [vmem:[#allocation71_spill] sm:$0xff] %v10113_v35  ;;  %v748_v17 = vmul.f32 %v10113_v35, %v556_v45  ;;  %v10118_v29 = vmul.f32 %v10113_v35, %v558_v24  ;;  %7977 = vmatmul.mubr.msk.bf16.gmra.mrb[24].mxu0 %vm456_vm0, %v765_v14  ;;  %v10126_v26 = vmul.f32 %v10107_v34, %v10113_v35  ;;  %12849 = vst [vmem:[#allocation73_spill] sm:$0xff] %v10130_v52 }
  0xd3   : > { %v10134_v43 = vpop.permute.xlu1 %717 }
  0xd4   : > { %12848 = vst [vmem:[#allocation72_spill] sm:$0xff] %v10126_v26  ;;  %v766_v61 = vpack.c.bf16 %v749_v28, %v748_v17  ;;  %12850 = vst [vmem:[#allocation74_spill] sm:$0xff] %v10134_v43  ;;  %v751_v35 = vmul.f32 %v10134_v43, %v559_v5  ;;  %v1245_v28 = vld [vmem:[#allocation2 + $0x11] sm:$0xff]  ;;  %v3299_v5 = vld [vmem:[#allocation2 + $0x41] sm:$0xff] }
  0xd5   : > { %v10136_v58 = vpop.permute.xlu0 %712  ;;  %v2352_v26 = vld [vmem:[#allocation2 + $0x29] sm:$0xff] }
  0xd6   : > { %12851 = vst [vmem:[#allocation75_spill] sm:$0xff] %v10136_v58  ;;  %7980 = vmatprep.mubr.msk.bf16.mxu0 %vm456_vm0, %v766_v61  ;;  %v750_v14 = vmul.f32 %v10136_v58, %v558_v24  ;;  %v2353_v24 = vld [vmem:[#allocation2 + $0x31] sm:$0xff] }
  0xd7   : > { %v10143_v7 = vpop.permute.xlu1 %1283 }
  0xd8   : > { %v767_v17 = vpack.c.bf16 %v751_v35, %v750_v14  ;;  %12852 = vst [vmem:[#allocation76_spill] sm:$0xff] %v10143_v7  ;;  %v1437_v11 = vmul.f32 %v10143_v7, %v1245_v28  ;;  %v10153_v61 = vmul.f32 %v10143_v7, %v1247_v2  ;;  %v3298_v35 = vld [vmem:[#allocation2 + $0x39] sm:$0xff] }
  0xd9   : > { %v10145_v45 = vpop.permute.xlu0 %1278 }
  0xda   : > { %12853 = vst [vmem:[#allocation77_spill] sm:$0xff] %v10145_v45  ;;  %v1436_v12 = vmul.f32 %v10145_v45, %v1244_v8  ;;  %v10150_v4 = vmul.f32 %v10145_v45, %v1246_v22  ;;  %12855 = vst [vmem:[#allocation79_spill] sm:$0xff] %v10153_v61  ;;  %7981 = vmatmul.mubr.msk.bf16.gmra.mrb[28].mxu0 %vm456_vm0, %v767_v17 }
  0xdb   : > { %v10158_v37 = vpop.permute.xlu1 %1293 }
  0xdc   : > { %12854 = vst [vmem:[#allocation78_spill] sm:$0xff] %v10150_v4  ;;  %v1468_v14 = vpack.c.bf16 %v1437_v11, %v1436_v12  ;;  %12856 = vst [vmem:[#allocation80_spill] sm:$0xff] %v10158_v37  ;;  %v1439_v28 = vmul.f32 %v10158_v37, %v1247_v2  ;;  %v10164_v45 = vmul.f32 %v2353_v24, %v10158_v37  ;;  %v1252_v2 = vld [vmem:[#allocation2 + $0x49] sm:$0xff] }
  0xdd   : > { %v10160_v8 = vpop.permute.xlu0 %1288  ;;  %v10167_v7 = vmul.f32 %v3299_v5, %v10158_v37 }
  0xde   : > { %12857 = vst [vmem:[#allocation81_spill] sm:$0xff] %v10160_v8  ;;  %12858 = vst [vmem:[#allocation82_spill] sm:$0xff] %v10164_v45  ;;  %v1438_v17 = vmul.f32 %v10160_v8, %v1246_v22  ;;  %7986 = vmatprep.mubr.msk.bf16.mxu0 %vm456_vm0, %v1468_v14  ;;  %v10172_v11 = vmul.f32 %v2352_v26, %v10160_v8  ;;  %v10175_v12 = vmul.f32 %v3298_v35, %v10160_v8  ;;  %v1253_v8 = vld [vmem:[#allocation2 + $0x51] sm:$0xff] }
  0xdf   : > { %12859 = vst [vmem:[#allocation83_spill] sm:$0xff] %v10167_v7  ;;  %v10181_v57 = vpop.permute.xlu1 %1303  ;;  %v1861_v22 = vsel %vm867_vm2, %v9929_v60, 0 }
  0xe0   : > { %12860 = vst [vmem:[#allocation84_spill] sm:$0xff] %v10172_v11  ;;  %12861 = vst [vmem:[#allocation85_spill] sm:$0xff] %v10175_v12  ;;  %v1469_v52 = vpack.c.bf16 %v1439_v28, %v1438_v17  ;;  %v1441_v46 = vmul.f32 %v2353_v24, %v10181_v57  ;;  %v10192_v28 = vld [vmem:[%s12418_s2 + $0x8] sm:$0x3]  ;;  %v10198_v36 = vmul.f32 %v3299_v5, %v10181_v57  ;;  %v2083_v11 = vld [vmem:[#allocation2 + $0xf0] sm:$0xff] }
  0xe1   : > { %12862 = vst [vmem:[#allocation86_spill] sm:$0xff] %v10181_v57  ;;  %v10183_v37 = vpop.permute.xlu0 %1298 }
  0xe2   : > { %12863 = vst [vmem:[#allocation87_spill] sm:$0xff] %v10183_v37  ;;  %v1440_v14 = vmul.f32 %v2352_v26, %v10183_v37  ;;  %v10195_v17 = vmul.f32 %v3298_v35, %v10183_v37  ;;  %12865 = vst [vmem:[#allocation89_spill] sm:$0xff] %v10198_v36  ;;  %7987 = vmatmul.mubr.msk.bf16.vlgmr.msra.gmra.mrb[0].mxu0 %vm456_vm0, %v1469_v52 }
  0xe3   : > { %8019 = vmatpush3.bf16.msra.mxu0 %v1861_v22  ;;  %v10203_v24 = vpop.permute.xlu1 %1313 }
  0xe4   : > { %12864 = vst [vmem:[#allocation88_spill] sm:$0xff] %v10195_v17  ;;  %v1470_v60 = vpack.c.bf16 %v1441_v46, %v1440_v14  ;;  %12866 = vst [vmem:[#allocation90_spill] sm:$0xff] %v10203_v24  ;;  %9099 = vmatprep.subr.msk.bf16.mxu0 %vm867_vm2, %v10192_v28  ;;  %v1443_v52 = vmul.f32 %v3299_v5, %v10203_v24  ;;  %v1254_v46 = vld [vmem:[#allocation2 + $0x59] sm:$0xff]  ;;  %v1255_v14 = vld [vmem:[#allocation2 + $0x61] sm:$0xff]  ;;  %v10216_v26 = vmul.f32 %v10203_v24, %v1253_v8 }
  0xe5   : > { %v10205_v12 = vpop.permute.xlu0 %1308 }
  0xe6   : > { %12867 = vst [vmem:[#allocation91_spill] sm:$0xff] %v10205_v12  ;;  %7990 = vmatprep.mubr.msk.bf16.mxu0 %vm456_vm0, %v1470_v60  ;;  %v1442_v7 = vmul.f32 %v3298_v35, %v10205_v12  ;;  %v10213_v22 = vmul.f32 %v10205_v12, %v1252_v2  ;;  %12869 = vst [vmem:[#allocation93_spill] sm:$0xff] %v10216_v26 }
  0xe7   : > { %v10218_v37 = vpop.permute.xlu1 %1323 }
  0xe8   : > { %12868 = vst [vmem:[#allocation92_spill] sm:$0xff] %v10213_v22  ;;  %v1471_v57 = vpack.c.bf16 %v1443_v52, %v1442_v7  ;;  %12870 = vst [vmem:[#allocation94_spill] sm:$0xff] %v10218_v37  ;;  %v1445_v5 = vmul.f32 %v10218_v37, %v1253_v8  ;;  %v10230_v31 = vmul.f32 %v10218_v37, %v1255_v14  ;;  %v1256_v7 = vld [vmem:[#allocation2 + $0x69] sm:$0xff]  ;;  %v1257_v52 = vld [vmem:[#allocation2 + $0x71] sm:$0xff] }
  0xe9   : > { %v10220_v13 = vpop.permute.xlu0 %1318 }
  0xea   : > { %12871 = vst [vmem:[#allocation95_spill] sm:$0xff] %v10220_v13  ;;  %v1444_v35 = vmul.f32 %v10220_v13, %v1252_v2  ;;  %v10227_v12 = vmul.f32 %v10220_v13, %v1254_v46  ;;  %12873 = vst [vmem:[#allocation97_spill] sm:$0xff] %v10230_v31  ;;  %7991 = vmatmul.mubr.msk.bf16.gmra.mrb[4].mxu0 %vm456_vm0, %v1471_v57  ;;  %v2075_v31 = vld [vmem:[#allocation2 + $0xb0] sm:$0xff] }
  0xeb   : > { %v10235_v48 = vpop.permute.xlu1 %1333 }
  0xec   : > { %12872 = vst [vmem:[#allocation96_spill] sm:$0xff] %v10227_v12  ;;  %v1472_v24 = vpack.c.bf16 %v1445_v5, %v1444_v35  ;;  %12874 = vst [vmem:[#allocation98_spill] sm:$0xff] %v10235_v48  ;;  %v1447_v2 = vmul.f32 %v10235_v48, %v1255_v14  ;;  %v10246_v57 = vmul.f32 %v10235_v48, %v1257_v52  ;;  %v1258_v35 = vld [vmem:[#allocation2 + $0x79] sm:$0xff]  ;;  %v1259_v5 = vld [vmem:[#allocation2 + $0x81] sm:$0xff] }
  0xed   : > { %v10237_v60 = vpop.permute.xlu0 %1328 }
  0xee   : > { %12875 = vst [vmem:[#allocation99_spill] sm:$0xff] %v10237_v60  ;;  %7994 = vmatprep.mubr.msk.bf16.mxu0 %vm456_vm0, %v1472_v24  ;;  %v1446_v8 = vmul.f32 %v10237_v60, %v1254_v46  ;;  %v10243_v37 = vmul.f32 %v10237_v60, %v1256_v7  ;;  %12877 = vst [vmem:[#allocation101_spill] sm:$0xff] %v10246_v57  ;;  %v1263_v57 = vld [vmem:[#allocation2 + $0xa1] sm:$0xff] }
  0xef   : > { %v10250_v53 = vpop.permute.xlu1 %1343 }
  0xf0   : > { %12876 = vst [vmem:[#allocation100_spill] sm:$0xff] %v10243_v37  ;;  %v1473_v13 = vpack.c.bf16 %v1447_v2, %v1446_v8  ;;  %12878 = vst [vmem:[#allocation102_spill] sm:$0xff] %v10250_v53  ;;  %v1449_v46 = vmul.f32 %v10250_v53, %v1257_v52  ;;  %v10260_v48 = vmul.f32 %v10250_v53, %v1259_v5  ;;  %v1260_v8 = vld [vmem:[#allocation2 + $0x89] sm:$0xff]  ;;  %v1261_v2 = vld [vmem:[#allocation2 + $0x91] sm:$0xff] }
  0xf1   : > { %v10252_v15 = vpop.permute.xlu0 %1338  ;;  %v2071_v37 = vld [vmem:[#allocation2 + $0x90] sm:$0xff] }
  0xf2   : > { %12879 = vst [vmem:[#allocation103_spill] sm:$0xff] %v10252_v15  ;;  %v1448_v24 = vmul.f32 %v10252_v15, %v1256_v7  ;;  %v10257_v14 = vmul.f32 %v10252_v15, %v1258_v35  ;;  %12881 = vst [vmem:[#allocation105_spill] sm:$0xff] %v10260_v48  ;;  %7995 = vmatmul.mubr.msk.bf16.gmra.mrb[8].mxu0 %vm456_vm0, %v1473_v13  ;;  %v10269_v52 = vpack.c.bf16 %v2071_v37, %v2070_v47  ;;  %v2073_v37 = vld [vmem:[#allocation2 + $0xa0] sm:$0xff] }
  0xf3   : > { %v10265_v12 = vpop.permute.xlu1 %1353 }
  0xf4   : > { %12880 = vst [vmem:[#allocation104_spill] sm:$0xff] %v10257_v14  ;;  %v1474_v60 = vpack.c.bf16 %v1449_v46, %v1448_v24  ;;  %12882 = vst [vmem:[#allocation106_spill] sm:$0xff] %v10265_v12  ;;  %v1451_v13 = vmul.f32 %v10265_v12, %v1259_v5  ;;  %v10278_v24 = vmul.f32 %v10265_v12, %v1261_v2  ;;  %v1262_v46 = vld [vmem:[#allocation2 + $0x99] sm:$0xff]  ;;  %7934 = vmatprep.mubr.msk.bf16.mxu1 %vm456_vm0, %v10269_v52 }
  0xf5   : > { %v10267_v7 = vpop.permute.xlu0 %1348 }
  0xf6   : > { %12883 = vst [vmem:[#allocation107_spill] sm:$0xff] %v10267_v7  ;;  %7998 = vmatprep.mubr.msk.bf16.mxu0 %vm456_vm0, %v1474_v60  ;;  %v1450_v53 = vmul.f32 %v10267_v7, %v1258_v35  ;;  %v10275_v15 = vmul.f32 %v10267_v7, %v1260_v8  ;;  %12885 = vst [vmem:[#allocation109_spill] sm:$0xff] %v10278_v24  ;;  %v1264_v7 = vld [vmem:[#allocation2 + $0xa9] sm:$0xff] }
  0xf7   : > { %v10284_v47 = vpop.permute.xlu1 %1363  ;;  %v2074_v24 = vld [vmem:[#allocation2 + $0xa8] sm:$0xff] }
  0xf8   : > { %12884 = vst [vmem:[#allocation108_spill] sm:$0xff] %v10275_v15  ;;  %v1475_v14 = vpack.c.bf16 %v1451_v13, %v1450_v53  ;;  %12886 = vst [vmem:[#allocation110_spill] sm:$0xff] %v10284_v47  ;;  %v1453_v5 = vmul.f32 %v10284_v47, %v1261_v2  ;;  %v10294_v48 = vmul.f32 %v10284_v47, %v1263_v57  ;;  %v1265_v53 = vld [vmem:[#allocation2 + $0xb1] sm:$0xff] }
  0xf9   : > { %v10286_v60 = vpop.permute.xlu0 %1358  ;;  %v2072_v13 = vld [vmem:[#allocation2 + $0x98] sm:$0xff]  ;;  %v10305_v26 = vpack.c.bf16 %v2075_v31, %v2074_v24 }
  0xfa   : > { %12887 = vst [vmem:[#allocation111_spill] sm:$0xff] %v10286_v60  ;;  %v1452_v35 = vmul.f32 %v10286_v60, %v1260_v8  ;;  %v10291_v12 = vmul.f32 %v10286_v60, %v1262_v46  ;;  %12889 = vst [vmem:[#allocation113_spill] sm:$0xff] %v10294_v48  ;;  %7999 = vmatmul.mubr.msk.bf16.gmra.mrb[12].mxu0 %vm456_vm0, %v1475_v14  ;;  %v10303_v60 = vpack.c.bf16 %v2073_v37, %v2072_v13  ;;  %v1266_v8 = vld [vmem:[#allocation2 + $0xb9] sm:$0xff]  ;;  %v1268_v13 = vld [vmem:[#allocation2 + $0xc9] sm:$0xff] }
  0xfb   : > { %v10299_v22 = vpop.permute.xlu1 %1373  ;;  %v2076_v31 = vld [vmem:[#allocation2 + $0xb8] sm:$0xff]  ;;  %v2079_v48 = vld [vmem:[#allocation2 + $0xd0] sm:$0xff] }
  0xfc   : > { %12888 = vst [vmem:[#allocation112_spill] sm:$0xff] %v10291_v12  ;;  %v1476_v15 = vpack.c.bf16 %v1453_v5, %v1452_v35  ;;  %12890 = vst [vmem:[#allocation114_spill] sm:$0xff] %v10299_v22  ;;  %v1455_v47 = vmul.f32 %v10299_v22, %v1263_v57  ;;  %v10314_v5 = vmul.f32 %v10299_v22, %v1265_v53  ;;  %v1267_v12 = vld [vmem:[#allocation2 + $0xc1] sm:$0xff]  ;;  %7935 = vmatmul.mubr.msk.bf16.vlgmr.msra.gmra.mrb[0].mxu1 %vm456_vm0, %v10303_v60 }
  0xfd   : > { %v10301_v2 = vpop.permute.xlu0 %1368  ;;  %7938 = vmatprep.mubr.msk.bf16.mxu1 %vm456_vm0, %v10305_v26 }
  0xfe   : > { %12891 = vst [vmem:[#allocation115_spill] sm:$0xff] %v10301_v2  ;;  %8002 = vmatprep.mubr.msk.bf16.mxu0 %vm456_vm0, %v1476_v15  ;;  %v1454_v14 = vmul.f32 %v10301_v2, %v1262_v46  ;;  %v10311_v35 = vmul.f32 %v10301_v2, %v1264_v7  ;;  %12893 = vst [vmem:[#allocation117_spill] sm:$0xff] %v10314_v5  ;;  %v2077_v2 = vld [vmem:[#allocation2 + $0xc0] sm:$0xff]  ;;  %v2078_v5 = vld [vmem:[#allocation2 + $0xc8] sm:$0xff] }
  0xff   : > { %v10322_v15 = vpop.permute.xlu1 %1383  ;;  %v10343_v36 = vpack.c.bf16 %v2079_v48, %v2078_v5  ;;  %v1272_v48 = vld [vmem:[#allocation2 + $0xe9] sm:$0xff]  ;;  %v1273_v5 = vld [vmem:[#allocation2 + $0xf1] sm:$0xff] }
 0x100   : > { %12892 = vst [vmem:[#allocation116_spill] sm:$0xff] %v10311_v35  ;;  %v1477_v37 = vpack.c.bf16 %v1455_v47, %v1454_v14  ;;  %12894 = vst [vmem:[#allocation118_spill] sm:$0xff] %v10322_v15  ;;  %v1457_v46 = vmul.f32 %v10322_v15, %v1265_v53  ;;  %v10332_v47 = vmul.f32 %v10322_v15, %v1267_v12  ;;  %v1269_v14 = vld [vmem:[#allocation2 + $0xd1] sm:$0xff] }
 0x101   : > { %v10324_v57 = vpop.permute.xlu0 %1378 }
 0x102   : > { %12895 = vst [vmem:[#allocation119_spill] sm:$0xff] %v10324_v57  ;;  %v1456_v24 = vmul.f32 %v10324_v57, %v1264_v7  ;;  %v10329_v22 = vmul.f32 %v10324_v57, %v1266_v8  ;;  %12897 = vst [vmem:[#allocation121_spill] sm:$0xff] %v10332_v47  ;;  %8003 = vmatmul.mubr.msk.bf16.gmra.mrb[16].mxu0 %vm456_vm0, %v1477_v37  ;;  %v10341_v57 = vpack.c.bf16 %v2077_v2, %v2076_v31  ;;  %v1270_v7 = vld [vmem:[#allocation2 + $0xd9] sm:$0xff] }
 0x103   : > { %v10337_v17 = vpop.permute.xlu1 %1393 }
 0x104   : > { %12896 = vst [vmem:[#allocation120_spill] sm:$0xff] %v10329_v22  ;;  %v1478_v35 = vpack.c.bf16 %v1457_v46, %v1456_v24  ;;  %12898 = vst [vmem:[#allocation122_spill] sm:$0xff] %v10337_v17  ;;  %v1459_v15 = vmul.f32 %v10337_v17, %v1267_v12  ;;  %v10352_v46 = vmul.f32 %v10337_v17, %v1269_v14  ;;  %v1271_v22 = vld [vmem:[#allocation2 + $0xe1] sm:$0xff]  ;;  %7939 = vmatmul.mubr.msk.bf16.gmra.mrb[4].mxu1 %vm456_vm0, %v10341_v57 }
 0x105   : > { %v10339_v53 = vpop.permute.xlu0 %1388  ;;  %7942 = vmatprep.mubr.msk.bf16.mxu1 %vm456_vm0, %v10343_v36 }
 0x106   : > { %12899 = vst [vmem:[#allocation123_spill] sm:$0xff] %v10339_v53  ;;  %8006 = vmatprep.mubr.msk.bf16.mxu0 %vm456_vm0, %v1478_v35  ;;  %v1458_v37 = vmul.f32 %v10339_v53, %v1266_v8  ;;  %v10349_v24 = vmul.f32 %v10339_v53, %v1268_v13  ;;  %12901 = vst [vmem:[#allocation125_spill] sm:$0xff] %v10352_v46  ;;  %v2081_v35 = vld [vmem:[#allocation2 + $0xe0] sm:$0xff] }
 0x107   : > { %v10360_v12 = vpop.permute.xlu1 %1403 }
 0x108   : > { %12900 = vst [vmem:[#allocation124_spill] sm:$0xff] %v10349_v24  ;;  %v1479_v2 = vpack.c.bf16 %v1459_v15, %v1458_v37  ;;  %12902 = vst [vmem:[#allocation126_spill] sm:$0xff] %v10360_v12  ;;  %v1461_v17 = vmul.f32 %v10360_v12, %v1269_v14  ;;  %v10370_v15 = vmul.f32 %v10360_v12, %v1271_v22  ;;  %v2080_v37 = vld [vmem:[#allocation2 + $0xd8] sm:$0xff] }
 0x109   : > { %v10362_v8 = vpop.permute.xlu0 %1398  ;;  %v10377_v46 = vmul.f32 %v10360_v12, %v1273_v5  ;;  %v10385_v61 = vpack.c.bf16 %v2081_v35, %v2080_v37  ;;  %v1274_v35 = vld [vmem:[#allocation2 + $0xf9] sm:$0xff] }
 0x10a   : > { %12903 = vst [vmem:[#allocation127_spill] sm:$0xff] %v10362_v8  ;;  %v1460_v31 = vmul.f32 %v10362_v8, %v1268_v13  ;;  %v10367_v53 = vmul.f32 %v10362_v8, %v1270_v7  ;;  %8007 = vmatmul.mubr.msk.bf16.gmra.mrb[20].mxu0 %vm456_vm0, %v1479_v2  ;;  %v10374_v24 = vmul.f32 %v10362_v8, %v1272_v48  ;;  %v2082_v13 = vld [vmem:[#allocation2 + $0xe8] sm:$0xff] }
 0x10b   : > { %12906 = vst [vmem:[#allocation130_spill] sm:$0xff] %v10377_v46  ;;  %v10381_v45 = vpop.permute.xlu1 %1413  ;;  %v10387_v2 = vpack.c.bf16 %v2083_v11, %v2082_v13 }
 0x10c   : > { %12904 = vst [vmem:[#allocation128_spill] sm:$0xff] %v10367_v53  ;;  %12905 = vst [vmem:[#allocation129_spill] sm:$0xff] %v10374_v24  ;;  %v1480_v47 = vpack.c.bf16 %v1461_v17, %v1460_v31  ;;  %v1463_v31 = vmul.f32 %v10381_v45, %v1271_v22  ;;  %v10398_v14 = vmul.f32 %v10381_v45, %v1273_v5  ;;  %v1275_v53 = vld [vmem:[#allocation2 + $0x101] sm:$0xff]  ;;  %7943 = vmatmul.mubr.msk.bf16.gmra.mrb[8].mxu1 %vm456_vm0, %v10385_v61 }
 0x10d   : > { %12907 = vst [vmem:[#allocation131_spill] sm:$0xff] %v10381_v45  ;;  %v10383_v4 = vpop.permute.xlu0 %1408  ;;  %7946 = vmatprep.mubr.msk.bf16.mxu1 %vm456_vm0, %v10387_v2 }
 0x10e   : > { %12908 = vst [vmem:[#allocation132_spill] sm:$0xff] %v10383_v4  ;;  %8010 = vmatprep.mubr.msk.bf16.mxu0 %vm456_vm0, %v1480_v47  ;;  %v1462_v17 = vmul.f32 %v10383_v4, %v1270_v7  ;;  %v10395_v12 = vmul.f32 %v10383_v4, %v1272_v48 }
 0x10f   : > { %v10406_v47 = vpop.permute.xlu1 %1423 }
 0x110   : > { %v1481_v11 = vpack.c.bf16 %v1463_v31, %v1462_v17  ;;  %12909 = vst [vmem:[#allocation133_spill] sm:$0xff] %v10406_v47  ;;  %v1465_v13 = vmul.f32 %v10406_v47, %v1273_v5  ;;  %v10416_v45 = vmul.f32 %v10406_v47, %v1275_v53  ;;  %v2084_v17 = vld [vmem:[#allocation2 + $0xf8] sm:$0xff]  ;;  %v2085_v31 = vld [vmem:[#allocation2 + $0x100] sm:$0xff] }
 0x111   : > { %v10408_v22 = vpop.permute.xlu0 %1418 }
 0x112   : > { %12910 = vst [vmem:[#allocation134_spill] sm:$0xff] %v10408_v22  ;;  %v1464_v7 = vmul.f32 %v10408_v22, %v1272_v48  ;;  %v10413_v8 = vmul.f32 %v10408_v22, %v1274_v35  ;;  %8011 = vmatmul.mubr.msk.bf16.gmra.mrb[24].mxu0 %vm456_vm0, %v1481_v11  ;;  %v10425_v48 = vpack.c.bf16 %v2085_v31, %v2084_v17  ;;  %v12929_v17 = vld [vmem:[#allocation78_spill] sm:$0xff] }
 0x113   : > { %v10421_v24 = vpop.permute.xlu1 %1433 }
 0x114   : > { %v1482_v37 = vpack.c.bf16 %v1465_v13, %v1464_v7  ;;  %v2428_v4 = vpack.c.bf16 %v10416_v45, %v10413_v8  ;;  %12911 = vst [vmem:[#allocation135_spill] sm:$0xff] %v10421_v24  ;;  %v1467_v5 = vmul.f32 %v10421_v24, %v1275_v53  ;;  %7947 = vmatmul.mubr.msk.bf16.gmra.mrb[12].mxu1 %vm456_vm0, %v10425_v48  ;;  %v2155_v13 = vsel %vm867_vm2, %v10192_v28, 0  ;;  %v7294_v53 = vld [vmem:[%s12418_s2 + $0xa] sm:$0x3]  ;;  %v12969_v45 = vld [vmem:[#allocation47_spill] sm:$0xff] }
 0x115   : > { %v10423_v46 = vpop.permute.xlu0 %1428  ;;  %v12913_v7 = vpack.c.bf16 %v9909_v42, %v9906_v39  ;;  %v12916_v39 = vpack.c.bf16 %v9953_v49, %v9950_v44  ;;  %v12917_v42 = vpack.c.bf16 %v9967_v18, %v9964_v38  ;;  %v12920_v44 = vpack.c.bf16 %v10013_v9, %v10010_v63 }
 0x116   : > { %12912 = vst [vmem:[#allocation136_spill] sm:$0xff] %v10423_v46  ;;  %8014 = vmatprep.mubr.msk.bf16.mxu0 %vm456_vm0, %v1482_v37  ;;  %v1466_v47 = vmul.f32 %v10423_v46, %v1274_v35  ;;  %v12914_v35 = vpack.c.bf16 %v9899_v27, %v9887_v1  ;;  %v12915_v37 = vpack.c.bf16 %v9935_v19, %v9932_v0  ;;  %v2056_v19 = vld [vmem:[#allocation2 + $0x18] sm:$0xff] }
 0x117   : > { %v12918_v1 = vpack.c.bf16 %v9983_v55, %v9980_v10  ;;  %v12919_v27 = vpack.c.bf16 %v9997_v6, %v9994_v56  ;;  %v12921_v18 = vpack.c.bf16 %v10027_v40, %v10024_v59  ;;  %v12922_v10 = vpack.c.bf16 %v10043_v62, %v10040_v32  ;;  %v2059_v55 = vld [vmem:[#allocation2 + $0x30] sm:$0xff]  ;;  %v2060_v56 = vld [vmem:[#allocation2 + $0x38] sm:$0xff]  ;;  %v2062_v62 = vld [vmem:[#allocation2 + $0x48] sm:$0xff] }
 0x118   : > { %v1483_v11 = vpack.c.bf16 %v1467_v5, %v1466_v47  ;;  %v12923_v6 = vpack.c.bf16 %v10057_v25, %v10054_v54  ;;  %v12924_v63 = vpack.c.bf16 %v10073_v30, %v10070_v21  ;;  %v12925_v40 = vpack.c.bf16 %v10087_v23, %v10084_v3  ;;  %v2057_v23 = vld [vmem:[#allocation2 + $0x20] sm:$0xff]  ;;  %v2063_v54 = vld [vmem:[#allocation2 + $0x50] sm:$0xff]  ;;  %v2064_v30 = vld [vmem:[#allocation2 + $0x58] sm:$0xff] }
 0x119   : > { %v12926_v32 = vpack.c.bf16 %v10103_v20, %v10100_v50  ;;  %v12927_v25 = vpack.c.bf16 %v10121_v51, %v10118_v29  ;;  %v1792_v21 = vmul.f32 %v10107_v34, %v10136_v58  ;;  %v1793_v0 = vmul.f32 %v10109_v33, %v10134_v43  ;;  %v2058_v50 = vld [vmem:[#allocation2 + $0x28] sm:$0xff]  ;;  %v2061_v29 = vld [vmem:[#allocation2 + $0x40] sm:$0xff]  ;;  %v12928_v47 = vld [vmem:[#allocation79_spill] sm:$0xff] }
 0x11a   : > { %8015 = vmatmul.mubr.msk.bf16.gmra.mrb[28].mxu0 %vm456_vm0, %v1483_v11  ;;  %v2088_v49 = vpack.c.bf16 %v2057_v23, %v2056_v19  ;;  %v10505_v9 = vpack.c.bf16 %v2059_v55, %v2058_v50  ;;  %v10507_v59 = vpack.c.bf16 %v2061_v29, %v2060_v56  ;;  %v2481_v34 = vsel %vm867_vm2, %v7294_v53, 0  ;;  %v7311_v33 = vld [vmem:[%s12418_s2 + $0xc] sm:$0x3]  ;;  %v2065_v3 = vld [vmem:[#allocation2 + $0x60] sm:$0xff]  ;;  %v7328_v11 = vld [vmem:[%s12418_s2 + $0xe] sm:$0x3] }
 0x11b   : > { %8020 = vmatprep.mubr.msk.bf16.mxu0 %vm456_vm0, %v12913_v7  ;;  %v1809_v38 = vpack.c.bf16 %v1793_v0, %v1792_v21  ;;  %v10518_v20 = vpack.c.bf16 %v2063_v54, %v2062_v62  ;;  %v10520_v51 = vpack.c.bf16 %v2065_v3, %v2064_v30  ;;  %v12930_v31 = vpack.c.bf16 %v12928_v47, %v12929_v17  ;;  %v12931_v7 = vld [vmem:[#allocation82_spill] sm:$0xff]  ;;  %v12949_v0 = vld [vmem:[#allocation109_spill] sm:$0xff]  ;;  %v12950_v19 = vld [vmem:[#allocation108_spill] sm:$0xff] }
 0x11c   : > { %v2807_v5 = vsel %vm867_vm2, %v7311_v33, 0  ;;  %v12951_v23 = vpack.c.bf16 %v12949_v0, %v12950_v19  ;;  %v12955_v55 = vld [vmem:[#allocation117_spill] sm:$0xff]  ;;  %v12956_v56 = vld [vmem:[#allocation116_spill] sm:$0xff]  ;;  %v2381_v47 = vld [vmem:[#allocation2 + $0x111] sm:$0xff] }
 0x11d   : > { %v12957_v29 = vpack.c.bf16 %v12955_v55, %v12956_v56  ;;  %v12961_v54 = vld [vmem:[#allocation125_spill] sm:$0xff]  ;;  %v12962_v30 = vld [vmem:[#allocation124_spill] sm:$0xff]  ;;  %v12977_v55 = vld [vmem:[#allocation50_spill] sm:$0xff] }
 0x11e   : > { %v12963_v3 = vpack.c.bf16 %v12961_v54, %v12962_v30  ;;  %v2380_v17 = vld [vmem:[#allocation2 + $0x109] sm:$0xff] }
 0x11f   : > { %v2685_v0 = vld [vmem:[#allocation2 + $0x6f] sm:$0xff]  ;;  %v2688_v54 = vld [vmem:[#allocation2 + $0x87] sm:$0xff] }
 0x120   : > { %v12974_v19 = vld [vmem:[#allocation49_spill] sm:$0xff]  ;;  %v2717_v56 = vmul.f32 %v2685_v0, %v12977_v55 }
 0x121   : > { %v2689_v30 = vld [vmem:[#allocation2 + $0x8f] sm:$0xff]  ;;  %v2696_v0 = vld [vmem:[#allocation2 + $0xc7] sm:$0xff] }
 0x122   : > { %8021 = vmatmul.mubr.msk.bf16.vlgmr.msra.gmra.mrb[0].mxu0 %vm456_vm0, %v12914_v35  ;;  %v12934_v35 = vld [vmem:[#allocation89_spill] sm:$0xff] }
 0x123   : > { %8053 = vmatpush3.bf16.msra.mxu0 %v2155_v13  ;;  %8024 = vmatprep.mubr.msk.bf16.mxu0 %vm456_vm0, %v12915_v37  ;;  %v12932_v13 = vld [vmem:[#allocation84_spill] sm:$0xff] }
 0x124   : > { %9100 = vmatprep.subr.msk.bf16.mxu0 %vm867_vm2, %v7294_v53  ;;  %v12933_v53 = vpack.c.bf16 %v12931_v7, %v12932_v13  ;;  %v12935_v37 = vld [vmem:[#allocation88_spill] sm:$0xff]  ;;  %v2413_v7 = vmul.f32 %v2381_v47, %v10421_v24  ;;  %v2412_v13 = vmul.f32 %v2380_v17, %v10423_v46  ;;  %v12980_v17 = vld [vmem:[#allocation55_spill] sm:$0xff] }
 0x12a   : > { %8025 = vmatmul.mubr.msk.bf16.gmra.mrb[4].mxu0 %vm456_vm0, %v12916_v39  ;;  %v12936_v39 = vpack.c.bf16 %v12934_v35, %v12935_v37  ;;  %v12968_v37 = vld [vmem:[#allocation41_spill] sm:$0xff] }
 0x12b   : > { %8028 = vmatprep.mubr.msk.bf16.mxu0 %vm456_vm0, %v12917_v42  ;;  %v12937_v42 = vld [vmem:[#allocation93_spill] sm:$0xff] }
 0x132   : > { %8029 = vmatmul.mubr.msk.bf16.gmra.mrb[8].mxu0 %vm456_vm0, %v12918_v1  ;;  %v12938_v1 = vld [vmem:[#allocation92_spill] sm:$0xff] }
 0x133   : > { %8032 = vmatprep.mubr.msk.bf16.mxu0 %vm456_vm0, %v12919_v27  ;;  %v12939_v27 = vpack.c.bf16 %v12937_v42, %v12938_v1  ;;  %v2429_v42 = vpack.c.bf16 %v2413_v7, %v2412_v13 }
 0x13a   : > { %8033 = vmatmul.mubr.msk.bf16.gmra.mrb[12].mxu0 %vm456_vm0, %v12920_v44  ;;  %v12940_v44 = vld [vmem:[#allocation97_spill] sm:$0xff] }
 0x13b   : > { %8036 = vmatprep.mubr.msk.bf16.mxu0 %vm456_vm0, %v12921_v18  ;;  %v12941_v18 = vld [vmem:[#allocation96_spill] sm:$0xff] }
 0x142   : > { %8037 = vmatmul.mubr.msk.bf16.gmra.mrb[16].mxu0 %vm456_vm0, %v12922_v10  ;;  %v12942_v10 = vpack.c.bf16 %v12940_v44, %v12941_v18  ;;  %v3101_v44 = vsel %vm867_vm2, %v7328_v11, 0 }
 0x143   : > { %8040 = vmatprep.mubr.msk.bf16.mxu0 %vm456_vm0, %v12923_v6  ;;  %v12943_v6 = vld [vmem:[#allocation101_spill] sm:$0xff] }
 0x14a   : > { %8041 = vmatmul.mubr.msk.bf16.gmra.mrb[20].mxu0 %vm456_vm0, %v12924_v63  ;;  %v12944_v63 = vld [vmem:[#allocation100_spill] sm:$0xff] }
 0x14b   : > { %8044 = vmatprep.mubr.msk.bf16.mxu0 %vm456_vm0, %v12925_v40  ;;  %v12945_v40 = vpack.c.bf16 %v12943_v6, %v12944_v63  ;;  %v2683_v6 = vld [vmem:[#allocation2 + $0x5f] sm:$0xff]  ;;  %v10627_v63 = vld [vmem:[%s12418_s2 + $0x10] sm:$0x3] }
 0x152   : > { %8045 = vmatmul.mubr.msk.bf16.gmra.mrb[24].mxu0 %vm456_vm0, %v12926_v32  ;;  %v12946_v32 = vld [vmem:[#allocation105_spill] sm:$0xff] }
 0x153   : > { %8048 = vmatprep.mubr.msk.bf16.mxu0 %vm456_vm0, %v12927_v25  ;;  %v12947_v25 = vld [vmem:[#allocation104_spill] sm:$0xff] }
 0x154   : > { %v12948_v21 = vpack.c.bf16 %v12946_v32, %v12947_v25  ;;  %v12972_v32 = vld [vmem:[#allocation42_spill] sm:$0xff] }
 0x15a   : > { %8049 = vmatmul.mubr.msk.bf16.gmra.mrb[28].mxu0 %vm456_vm0, %v1809_v38  ;;  %v12953_v38 = vld [vmem:[#allocation112_spill] sm:$0xff] }
 0x15b   : > { %8054 = vmatprep.mubr.msk.bf16.mxu0 %vm456_vm0, %v2088_v49  ;;  %v12952_v49 = vld [vmem:[#allocation113_spill] sm:$0xff] }
 0x15c   : > { %v12954_v50 = vpack.c.bf16 %v12952_v49, %v12953_v38  ;;  %v12976_v38 = vld [vmem:[#allocation51_spill] sm:$0xff] }
 0x162   : > { %8055 = vmatmul.mubr.msk.bf16.vlgmr.msra.gmra.mrb[0].mxu0 %vm456_vm0, %v10505_v9 }
 0x163   : > { %8087 = vmatpush3.bf16.msra.mxu0 %v2481_v34  ;;  %8058 = vmatprep.mubr.msk.bf16.mxu0 %vm456_vm0, %v10507_v59  ;;  %v12958_v34 = vld [vmem:[#allocation121_spill] sm:$0xff] }
 0x164   : > { %9101 = vmatprep.subr.msk.bf16.mxu0 %vm867_vm2, %v7311_v33  ;;  %v12959_v33 = vld [vmem:[#allocation120_spill] sm:$0xff] }
 0x165   : > { %v12960_v62 = vpack.c.bf16 %v12958_v34, %v12959_v33  ;;  %v2686_v33 = vld [vmem:[#allocation2 + $0x77] sm:$0xff] }
 0x16a   : > { %8059 = vmatmul.mubr.msk.bf16.gmra.mrb[4].mxu0 %vm456_vm0, %v10518_v20 }
 0x16b   : > { %8062 = vmatprep.mubr.msk.bf16.mxu0 %vm456_vm0, %v10520_v51 }
 0x172   : > { %8063 = vmatmul.mubr.msk.bf16.gmra.mrb[8].mxu0 %vm456_vm0, %v9730_v16  ;;  %v2086_v16 = vld [vmem:[#allocation2 + $0x108] sm:$0xff] }
 0x173   : > { %8066 = vmatprep.mubr.msk.bf16.mxu0 %vm456_vm0, %v9763_v41  ;;  %v2087_v41 = vld [vmem:[#allocation2 + $0x110] sm:$0xff] }
 0x174   : > { %v10546_v28 = vpack.c.bf16 %v2087_v41, %v2086_v16  ;;  %v12964_v16 = vld [vmem:[#allocation128_spill] sm:$0xff] }
 0x175   : > { %v12965_v41 = vpack.c.bf16 %v10370_v15, %v12964_v16  ;;  %v2676_v15 = vld [vmem:[#allocation2 + $0x27] sm:$0xff] }
 0x17a   : > { %8067 = vmatmul.mubr.msk.bf16.gmra.mrb[12].mxu0 %vm456_vm0, %v10269_v52 }
 0x17b   : > { %8070 = vmatprep.mubr.msk.bf16.mxu0 %vm456_vm0, %v10303_v60 }
 0x182   : > { %8071 = vmatmul.mubr.msk.bf16.gmra.mrb[16].mxu0 %vm456_vm0, %v10305_v26 }
 0x183   : > { %8074 = vmatprep.mubr.msk.bf16.mxu0 %vm456_vm0, %v10341_v57 }
 0x18a   : > { %8075 = vmatmul.mubr.msk.bf16.gmra.mrb[20].mxu0 %vm456_vm0, %v10343_v36 }
 0x18b   : > { %8078 = vmatprep.mubr.msk.bf16.mxu0 %vm456_vm0, %v10385_v61 }
 0x192   : > { %8079 = vmatmul.mubr.msk.bf16.gmra.mrb[24].mxu0 %vm456_vm0, %v10387_v2 }
 0x193   : > { %8082 = vmatprep.mubr.msk.bf16.mxu0 %vm456_vm0, %v10425_v48 }
 0x19a   : > { %8083 = vmatmul.mubr.msk.bf16.gmra.mrb[28].mxu0 %vm456_vm0, %v10546_v28 }
 0x19b   : > { %8088 = vmatprep.mubr.msk.bf16.mxu0 %vm456_vm0, %v12930_v31  ;;  %v12966_v31 = vpack.c.bf16 %v10398_v14, %v10395_v12  ;;  %v2680_v12 = vld [vmem:[#allocation2 + $0x47] sm:$0xff]  ;;  %v2681_v14 = vld [vmem:[#allocation2 + $0x4f] sm:$0xff] }
 0x19c   : > { %v2712_v8 = vmul.f32 %v2680_v12, %v12969_v45  ;;  %v12982_v12 = vld [vmem:[#allocation57_spill] sm:$0xff] }
 0x1a2   : > { %8089 = vmatmul.mubr.msk.bf16.vlgmr.msra.gmra.mrb[0].mxu0 %vm456_vm0, %v12933_v53  ;;  %v12967_v53 = vld [vmem:[#allocation44_spill] sm:$0xff] }
 0x1a3   : > { %8121 = vmatpush3.bf16.msra.mxu0 %v2807_v5  ;;  %8092 = vmatprep.mubr.msk.bf16.mxu0 %vm456_vm0, %v12936_v39  ;;  %v2677_v5 = vld [vmem:[#allocation2 + $0x2f] sm:$0xff]  ;;  %v2708_v39 = vmul.f32 %v2676_v15, %v12968_v37 }
 0x1a4   : > { %9102 = vmatprep.subr.msk.bf16.mxu0 %vm867_vm2, %v7328_v11  ;;  %v2709_v35 = vmul.f32 %v2677_v5, %v12967_v53  ;;  %v12981_v5 = vld [vmem:[#allocation54_spill] sm:$0xff] }
 0x1a5   : > { %v2721_v7 = vmul.f32 %v2689_v30, %v12981_v5 }
 0x1a6   : > { %v2740_v1 = vpack.c.bf16 %v2709_v35, %v2708_v39  ;;  %v2690_v35 = vld [vmem:[#allocation2 + $0x97] sm:$0xff]  ;;  %v2691_v39 = vld [vmem:[#allocation2 + $0x9f] sm:$0xff] }
 0x1aa   : > { %8093 = vmatmul.mubr.msk.bf16.gmra.mrb[4].mxu0 %vm456_vm0, %v12939_v27 }
 0x1ab   : > { %8096 = vmatprep.mubr.msk.bf16.mxu0 %vm456_vm0, %v12942_v10  ;;  %v2682_v10 = vld [vmem:[#allocation2 + $0x57] sm:$0xff] }
 0x1ac   : > { %v2714_v11 = vmul.f32 %v2682_v10, %v12974_v19  ;;  %v12985_v10 = vld [vmem:[#allocation58_spill] sm:$0xff] }
 0x1b2   : > { %8097 = vmatmul.mubr.msk.bf16.gmra.mrb[8].mxu0 %vm456_vm0, %v12945_v40  ;;  %v12971_v40 = vld [vmem:[#allocation45_spill] sm:$0xff] }
 0x1b3   : > { %8100 = vmatprep.mubr.msk.bf16.mxu0 %vm456_vm0, %v12948_v21  ;;  %v12973_v25 = vpack.c.bf16 %v12971_v40, %v12972_v32  ;;  %v2684_v21 = vld [vmem:[#allocation2 + $0x67] sm:$0xff] }
 0x1ba   : > { %8101 = vmatmul.mubr.msk.bf16.gmra.mrb[12].mxu0 %vm456_vm0, %v12951_v23  ;;  %v12975_v23 = vld [vmem:[#allocation48_spill] sm:$0xff] }
 0x1bb   : > { %8104 = vmatprep.mubr.msk.bf16.mxu0 %vm456_vm0, %v12954_v50  ;;  %v2715_v49 = vmul.f32 %v2683_v6, %v12975_v23  ;;  %v2716_v50 = vmul.f32 %v2684_v21, %v12976_v38  ;;  %v2695_v21 = vld [vmem:[#allocation2 + $0xbf] sm:$0xff] }
 0x1bd   : > { %v2744_v34 = vpack.c.bf16 %v2717_v56, %v2716_v50  ;;  %v12987_v56 = vld [vmem:[#allocation60_spill] sm:$0xff] }
 0x1c2   : > { %8105 = vmatmul.mubr.msk.bf16.gmra.mrb[16].mxu0 %vm456_vm0, %v12957_v29  ;;  %v2743_v29 = vpack.c.bf16 %v2715_v49, %v2714_v11  ;;  %v2697_v11 = vld [vmem:[#allocation2 + $0xcf] sm:$0xff] }
 0x1c3   : > { %8108 = vmatprep.mubr.msk.bf16.mxu0 %vm456_vm0, %v12960_v62  ;;  %v2687_v62 = vld [vmem:[#allocation2 + $0x7f] sm:$0xff]  ;;  %v12986_v49 = vld [vmem:[#allocation61_spill] sm:$0xff] }
 0x1ca   : > { %8109 = vmatmul.mubr.msk.bf16.gmra.mrb[20].mxu0 %vm456_vm0, %v12963_v3  ;;  %v12978_v3 = vld [vmem:[#allocation53_spill] sm:$0xff] }
 0x1cb   : > { %8112 = vmatprep.mubr.msk.bf16.mxu0 %vm456_vm0, %v12965_v41  ;;  %v2718_v16 = vmul.f32 %v2686_v33, %v12978_v3  ;;  %v12979_v41 = vld [vmem:[#allocation52_spill] sm:$0xff] }
 0x1cc   : > { %v2719_v47 = vmul.f32 %v2687_v62, %v12979_v41  ;;  %v12989_v62 = vld [vmem:[#allocation62_spill] sm:$0xff] }
 0x1ce   : > { %v2745_v13 = vpack.c.bf16 %v2719_v47, %v2718_v16  ;;  %v2698_v47 = vld [vmem:[#allocation2 + $0xd7] sm:$0xff] }
 0x1d2   : > { %8113 = vmatmul.mubr.msk.bf16.gmra.mrb[24].mxu0 %vm456_vm0, %v12966_v31  ;;  %v2720_v31 = vmul.f32 %v2688_v54, %v12980_v17  ;;  %v2729_v54 = vmul.f32 %v2697_v11, %v12989_v62  ;;  %v12995_v11 = vld [vmem:[#allocation68_spill] sm:$0xff] }
 0x1d3   : > { %8116 = vmatprep.mubr.msk.bf16.mxu0 %vm456_vm0, %v2428_v4  ;;  %v12970_v4 = vld [vmem:[#allocation46_spill] sm:$0xff] }
 0x1d4   : > { %v2713_v27 = vmul.f32 %v2681_v14, %v12970_v4  ;;  %v2746_v15 = vpack.c.bf16 %v2721_v7, %v2720_v31  ;;  %v2722_v14 = vmul.f32 %v2690_v35, %v12982_v12  ;;  %v2699_v31 = vld [vmem:[#allocation2 + $0xdf] sm:$0xff]  ;;  %v2700_v7 = vld [vmem:[#allocation2 + $0xe7] sm:$0xff] }
 0x1d6   : > { %v2742_v18 = vpack.c.bf16 %v2713_v27, %v2712_v8  ;;  %v12983_v8 = vld [vmem:[#allocation56_spill] sm:$0xff] }
 0x1d7   : > { %v2723_v27 = vmul.f32 %v2691_v39, %v12983_v8  ;;  %v12991_v39 = vld [vmem:[#allocation64_spill] sm:$0xff] }
 0x1d9   : > { %v2747_v40 = vpack.c.bf16 %v2723_v27, %v2722_v14  ;;  %v12993_v27 = vld [vmem:[#allocation66_spill] sm:$0xff] }
 0x1da   : > { %8117 = vmatmul.mubr.msk.bf16.gmra.mrb[28].mxu0 %vm456_vm0, %v2429_v42  ;;  %v2692_v42 = vld [vmem:[#allocation2 + $0xa7] sm:$0xff] }
 0x1db   : > { %8122 = vmatprep.mubr.msk.bf16.mxu0 %vm456_vm0, %v2740_v1  ;;  %v2693_v1 = vld [vmem:[#allocation2 + $0xaf] sm:$0xff] }
 0x1dc   : > { %v2725_v6 = vmul.f32 %v2693_v1, %v12985_v10  ;;  %v12992_v1 = vld [vmem:[#allocation67_spill] sm:$0xff] }
 0x1dd   : > { %v2732_v14 = vmul.f32 %v2700_v7, %v12992_v1 }
 0x1e2   : > { %8123 = vmatmul.mubr.msk.bf16.vlgmr.msra.gmra.mrb[0].mxu0 %vm456_vm0, %v12973_v25  ;;  %v2694_v25 = vld [vmem:[#allocation2 + $0xb7] sm:$0xff] }
 0x1e3   : > { %8155 = vmatpush3.bf16.msra.mxu0 %v3101_v44  ;;  %8126 = vmatprep.mubr.msk.bf16.mxu0 %vm456_vm0, %v2742_v18  ;;  %v12984_v44 = vld [vmem:[#allocation59_spill] sm:$0xff]  ;;  %v2726_v50 = vmul.f32 %v2694_v25, %v12986_v49 }
 0x1e4   : > { %9103 = vmatprep.subr.msk.bf16.mxu0 %vm867_vm2, %v10627_v63  ;;  %v2724_v18 = vmul.f32 %v2692_v42, %v12984_v44  ;;  %v2731_v42 = vmul.f32 %v2699_v31, %v12991_v39  ;;  %v2703_v25 = vld [vmem:[#allocation2 + $0xff] sm:$0xff] }
 0x1e6   : > { %v2748_v32 = vpack.c.bf16 %v2725_v6, %v2724_v18 }
 0x1ea   : > { %8127 = vmatmul.mubr.msk.bf16.gmra.mrb[4].mxu0 %vm456_vm0, %v2743_v29  ;;  %v2727_v29 = vmul.f32 %v2695_v21, %v12987_v56  ;;  %v12994_v21 = vld [vmem:[#allocation69_spill] sm:$0xff] }
 0x1eb   : > { %8130 = vmatprep.mubr.msk.bf16.mxu0 %vm456_vm0, %v2744_v34  ;;  %v12988_v34 = vld [vmem:[#allocation63_spill] sm:$0xff] }
 0x1ec   : > { %v2728_v33 = vmul.f32 %v2696_v0, %v12988_v34  ;;  %v2749_v30 = vpack.c.bf16 %v2727_v29, %v2726_v50  ;;  %v2735_v50 = vmul.f32 %v2703_v25, %v12995_v11 }
 0x1ee   : > { %v2750_v16 = vpack.c.bf16 %v2729_v54, %v2728_v33  ;;  %v2706_v33 = vld [vmem:[#allocation2 + $0x117] sm:$0xff]  ;;  %v2707_v54 = vld [vmem:[#allocation2 + $0x11f] sm:$0xff] }
 0x1ef   : > { %v2738_v31 = vmul.f32 %v2706_v33, %v10136_v58  ;;  %v2739_v7 = vmul.f32 %v2707_v54, %v10134_v43  ;;  %v3303_v54 = vld [vmem:[#allocation2 + $0x61] sm:$0xff]  ;;  %v13020_v58 = vld [vmem:[#allocation119_spill] sm:$0xff]  ;;  %v13021_v43 = vld [vmem:[#allocation118_spill] sm:$0xff] }
 0x1f2   : > { %8131 = vmatmul.mubr.msk.bf16.gmra.mrb[8].mxu0 %vm456_vm0, %v2745_v13  ;;  %v2701_v13 = vld [vmem:[#allocation2 + $0xef] sm:$0xff] }
 0x1f3   : > { %8134 = vmatprep.mubr.msk.bf16.mxu0 %vm456_vm0, %v2746_v15  ;;  %v12990_v15 = vld [vmem:[#allocation65_spill] sm:$0xff]  ;;  %v2733_v18 = vmul.f32 %v2701_v13, %v12993_v27  ;;  %v2755_v13 = vpack.c.bf16 %v2739_v7, %v2738_v31  ;;  %v3305_v7 = vld [vmem:[#allocation2 + $0x71] sm:$0xff] }
 0x1f4   : > { %v2730_v35 = vmul.f32 %v2698_v47, %v12990_v15  ;;  %v3304_v31 = vld [vmem:[#allocation2 + $0x69] sm:$0xff] }
 0x1f6   : > { %v2751_v6 = vpack.c.bf16 %v2731_v42, %v2730_v35  ;;  %v9150_v35 = vld [vmem:[%s12421_s5 + $0x10] sm:$0xff]   ;;  %v3427_v42 = vsel %vm867_vm2, %v10627_v63, 0 }
 0x1f7   : > { %8222 = vmatprep.subr.bf16.mxu1 %v9150_v35 }
 0x1f8   : > { %8223 = vmatpush3.bf16.msra.mxu1 %v9150_v35 }
 0x1fa   : > { %8135 = vmatmul.mubr.msk.bf16.gmra.mrb[12].mxu0 %vm456_vm0, %v2747_v40  ;;  %v2752_v40 = vpack.c.bf16 %v2733_v18, %v2732_v14  ;;  %v3010_v14 = vld [vmem:[#allocation2 + $0x68] sm:$0xff]  ;;  %v3011_v18 = vld [vmem:[#allocation2 + $0x70] sm:$0xff] }
 0x1fb   : > { %8138 = vmatprep.mubr.msk.bf16.mxu0 %vm456_vm0, %v2748_v32  ;;  %v2702_v32 = vld [vmem:[#allocation2 + $0xf7] sm:$0xff] }
 0x1fc   : > { %v2734_v0 = vmul.f32 %v2702_v32, %v12994_v21 }
 0x1fe   : > { %v2753_v29 = vpack.c.bf16 %v2735_v50, %v2734_v0  ;;  %v13002_v50 = vld [vmem:[#allocation86_spill] sm:$0xff] }
 0x202   : > { %8139 = vmatmul.mubr.msk.bf16.gmra.mrb[16].mxu0 %vm456_vm0, %v2749_v30  ;;  %v12996_v30 = vld [vmem:[#allocation73_spill] sm:$0xff] }
 0x203   : > { %8142 = vmatprep.mubr.msk.bf16.mxu0 %vm456_vm0, %v2750_v16  ;;  %v12997_v16 = vld [vmem:[#allocation72_spill] sm:$0xff] }
 0x204   : > { %v12998_v47 = vpack.c.bf16 %v12996_v30, %v12997_v16  ;;  %v13003_v30 = vld [vmem:[#allocation83_spill] sm:$0xff]  ;;  %v13004_v16 = vld [vmem:[#allocation85_spill] sm:$0xff] }
 0x20a   : > { %8143 = vmatmul.mubr.msk.bf16.gmra.mrb[20].mxu0 %vm456_vm0, %v2751_v6  ;;  %v3038_v6 = vpack.c.bf16 %v3011_v18, %v3010_v14  ;;  %v13008_v18 = vld [vmem:[#allocation95_spill] sm:$0xff] }
 0x20b   : > { %8146 = vmatprep.mubr.msk.bf16.mxu0 %vm456_vm0, %v2752_v40  ;;  %v3013_v40 = vld [vmem:[#allocation2 + $0x80] sm:$0xff] }
 0x212   : > { %8147 = vmatmul.mubr.msk.bf16.gmra.mrb[24].mxu0 %vm456_vm0, %v2753_v29 }
 0x213   : > { %8150 = vmatprep.mubr.msk.bf16.mxu0 %vm456_vm0, %v12998_v47  ;;  %v13005_v47 = vpack.c.bf16 %v13003_v30, %v13004_v16  ;;  %v3310_v30 = vld [vmem:[#allocation2 + $0x99] sm:$0xff]  ;;  %v3311_v16 = vld [vmem:[#allocation2 + $0xa1] sm:$0xff] }
 0x21a   : > { %8151 = vmatmul.mubr.msk.bf16.gmra.mrb[28].mxu0 %vm456_vm0, %v2755_v13  ;;  %v13006_v13 = vld [vmem:[#allocation91_spill] sm:$0xff] }
 0x21b   : > { %8156 = vmatprep.mubr.msk.bf16.mxu0 %vm456_vm0, %v10505_v9  ;;  %v3012_v9 = vld [vmem:[#allocation2 + $0x78] sm:$0xff] }
 0x21c   : > { %v3039_v32 = vpack.c.bf16 %v3013_v40, %v3012_v9  ;;  %v13009_v9 = vld [vmem:[#allocation94_spill] sm:$0xff] }
 0x21d   : > { %v3337_v40 = vmul.f32 %v3305_v7, %v13009_v9  ;;  %v13014_v7 = vld [vmem:[#allocation107_spill] sm:$0xff] }
 0x222   : > { %8157 = vmatmul.mubr.msk.bf16.vlgmr.msra.gmra.mrb[0].mxu0 %vm456_vm0, %v10507_v59  ;;  %v3033_v59 = vld [vmem:[#allocation2 + $0x120] sm:$0xff] }
 0x223   : > { %8189 = vmatpush3.bf16.msra.mxu0 %v3427_v42  ;;  %8160 = vmatprep.mubr.msk.bf16.mxu0 %vm456_vm0, %v10518_v20  ;;  %v13007_v42 = vld [vmem:[#allocation90_spill] sm:$0xff] }
 0x224   : > { %v3335_v14 = vmul.f32 %v3303_v54, %v13007_v42 }
 0x22a   : > { %8161 = vmatmul.mubr.msk.bf16.gmra.mrb[4].mxu0 %vm456_vm0, %v10520_v51  ;;  %v13000_v51 = vld [vmem:[#allocation76_spill] sm:$0xff] }
 0x22b   : > { %8164 = vmatprep.mubr.msk.bf16.mxu0 %vm456_vm0, %v3038_v6  ;;  %v3336_v6 = vmul.f32 %v3304_v31, %v13008_v18  ;;  %v3313_v31 = vld [vmem:[#allocation2 + $0xb1] sm:$0xff] }
 0x232   : > { %8165 = vmatmul.mubr.msk.bf16.gmra.mrb[8].mxu0 %vm456_vm0, %v3039_v32 }
 0x233   : > { %8168 = vmatprep.mubr.msk.bf16.mxu0 %vm456_vm0, %v10269_v52  ;;  %v3296_v52 = vld [vmem:[#allocation2 + $0x29] sm:$0xff] }
 0x23a   : > { %8169 = vmatmul.mubr.msk.bf16.gmra.mrb[12].mxu0 %vm456_vm0, %v10303_v60  ;;  %v3297_v60 = vld [vmem:[#allocation2 + $0x31] sm:$0xff] }
 0x23b   : > { %8172 = vmatprep.mubr.msk.bf16.mxu0 %vm456_vm0, %v10305_v26  ;;  %v3032_v26 = vld [vmem:[#allocation2 + $0x118] sm:$0xff] }
 0x23c   : > { %v3049_v63 = vpack.c.bf16 %v3033_v59, %v3032_v26  ;;  %v3307_v26 = vld [vmem:[#allocation2 + $0x81] sm:$0xff]  ;;  %v3308_v59 = vld [vmem:[#allocation2 + $0x89] sm:$0xff] }
 0x242   : > { %8173 = vmatmul.mubr.msk.bf16.gmra.mrb[16].mxu0 %vm456_vm0, %v10341_v57  ;;  %v12999_v57 = vld [vmem:[#allocation77_spill] sm:$0xff] }
 0x243   : > { %8176 = vmatprep.mubr.msk.bf16.mxu0 %vm456_vm0, %v10343_v36  ;;  %v3328_v20 = vmul.f32 %v3296_v52, %v12999_v57  ;;  %v3329_v36 = vmul.f32 %v3297_v60, %v13000_v51  ;;  %v3364_v52 = vpack.c.bf16 %v3337_v40, %v3336_v6  ;;  %v3306_v60 = vld [vmem:[#allocation2 + $0x79] sm:$0xff] }
 0x244   : > { %v13016_v40 = vld [vmem:[#allocation111_spill] sm:$0xff] }
 0x245   : > { %v3360_v25 = vpack.c.bf16 %v3329_v36, %v3328_v20  ;;  %v3309_v20 = vld [vmem:[#allocation2 + $0x91] sm:$0xff] }
 0x246   : > { %v13010_v36 = vld [vmem:[#allocation99_spill] sm:$0xff] }
 0x24a   : > { %8177 = vmatmul.mubr.msk.bf16.gmra.mrb[20].mxu0 %vm456_vm0, %v10385_v61  ;;  %v3300_v61 = vld [vmem:[#allocation2 + $0x49] sm:$0xff] }
 0x24b   : > { %8180 = vmatprep.mubr.msk.bf16.mxu0 %vm456_vm0, %v10387_v2  ;;  %v3301_v2 = vld [vmem:[#allocation2 + $0x51] sm:$0xff] }
 0x24c   : > { %v3333_v29 = vmul.f32 %v3301_v2, %v13002_v50  ;;  %v13012_v2 = vld [vmem:[#allocation103_spill] sm:$0xff] }
 0x252   : > { %8181 = vmatmul.mubr.msk.bf16.gmra.mrb[24].mxu0 %vm456_vm0, %v10425_v48  ;;  %v13001_v48 = vld [vmem:[#allocation87_spill] sm:$0xff] }
 0x253   : > { %8184 = vmatprep.mubr.msk.bf16.mxu0 %vm456_vm0, %v10546_v28  ;;  %v3332_v0 = vmul.f32 %v3300_v61, %v13001_v48  ;;  %v3302_v28 = vld [vmem:[#allocation2 + $0x59] sm:$0xff] }
 0x254   : > { %v3334_v35 = vmul.f32 %v3302_v28, %v13006_v13 }
 0x255   : > { %v3362_v33 = vpack.c.bf16 %v3333_v29, %v3332_v0  ;;  %v3340_v0 = vmul.f32 %v3308_v59, %v13012_v2  ;;  %v13013_v29 = vld [vmem:[#allocation102_spill] sm:$0xff] }
 0x256   : > { %v3363_v32 = vpack.c.bf16 %v3335_v14, %v3334_v35  ;;  %v3342_v35 = vmul.f32 %v3310_v30, %v13014_v7  ;;  %v13015_v14 = vld [vmem:[#allocation106_spill] sm:$0xff] }
 0x257   : > { %v3343_v6 = vmul.f32 %v3311_v16, %v13015_v14 }
 0x25a   : > { %8185 = vmatmul.mubr.msk.bf16.gmra.mrb[28].mxu0 %vm456_vm0, %v3049_v63  ;;  %v3338_v63 = vmul.f32 %v3306_v60, %v13010_v36 }
 0x25b   : > { %8190 = vmatprep.mubr.msk.bf16.mxu0 %vm456_vm0, %v3360_v25  ;;  %v13011_v25 = vld [vmem:[#allocation98_spill] sm:$0xff] }
 0x25c   : > { %v3339_v61 = vmul.f32 %v3307_v26, %v13011_v25  ;;  %v3367_v26 = vpack.c.bf16 %v3343_v6, %v3342_v35  ;;  %v3318_v35 = vld [vmem:[#allocation2 + $0xd9] sm:$0xff]  ;;  %v3319_v6 = vld [vmem:[#allocation2 + $0xe1] sm:$0xff] }
 0x25e   : > { %v3365_v28 = vpack.c.bf16 %v3339_v61, %v3338_v63  ;;  %v3315_v63 = vld [vmem:[#allocation2 + $0xc1] sm:$0xff]  ;;  %v3316_v61 = vld [vmem:[#allocation2 + $0xc9] sm:$0xff] }
 0x25f   : > { %v3348_v16 = vmul.f32 %v3316_v61, %v13020_v58  ;;  %v3325_v61 = vld [vmem:[#allocation2 + $0x111] sm:$0xff] }
 0x262   : > { %8191 = vmatmul.mubr.msk.bf16.vlgmr.msra.gmra.mrb[0].mxu0 %vm456_vm0, %v13005_v47  ;;  %v3312_v47 = vld [vmem:[#allocation2 + $0xa9] sm:$0xff] }
 0x263   : > { %8194 = vmatprep.mubr.msk.bf16.mxu0 %vm456_vm0, %v3362_v33  ;;  %v3341_v33 = vmul.f32 %v3309_v20, %v13013_v29  ;;  %v3314_v20 = vld [vmem:[#allocation2 + $0xb9] sm:$0xff] }
 0x265   : > { %v3366_v54 = vpack.c.bf16 %v3341_v33, %v3340_v0  ;;  %v3317_v0 = vld [vmem:[#allocation2 + $0xd1] sm:$0xff] }
 0x266   : > { %v13018_v33 = vld [vmem:[#allocation115_spill] sm:$0xff] }
 0x26a   : > { %8195 = vmatmul.mubr.msk.bf16.gmra.mrb[4].mxu0 %vm456_vm0, %v3363_v32  ;;  %v3344_v32 = vmul.f32 %v3312_v47, %v13016_v40  ;;  %v3349_v47 = vmul.f32 %v3317_v0, %v13021_v43  ;;  %v13024_v0 = vld [vmem:[#allocation130_spill] sm:$0xff] }
 0x26b   : > { %8198 = vmatprep.mubr.msk.bf16.mxu0 %vm456_vm0, %v3364_v52  ;;  %v13017_v52 = vld [vmem:[#allocation110_spill] sm:$0xff] }
 0x26c   : > { %v3345_v60 = vmul.f32 %v3313_v31, %v13017_v52  ;;  %v3370_v31 = vpack.c.bf16 %v3349_v47, %v3348_v16  ;;  %v13027_v16 = vld [vmem:[#allocation132_spill] sm:$0xff]  ;;  %v13028_v47 = vld [vmem:[#allocation131_spill] sm:$0xff] }
 0x26e   : > { %v3368_v59 = vpack.c.bf16 %v3345_v60, %v3344_v32  ;;  %v13022_v32 = vld [vmem:[#allocation123_spill] sm:$0xff] }
 0x26f   : > { %v3350_v60 = vmul.f32 %v3318_v35, %v13022_v32  ;;  %v13029_v32 = vld [vmem:[#allocation133_spill] sm:$0xff] }
 0x272   : > { %8199 = vmatmul.mubr.msk.bf16.gmra.mrb[8].mxu0 %vm456_vm0, %v3365_v28  ;;  %v3346_v28 = vmul.f32 %v3314_v20, %v13018_v33  ;;  %v3322_v20 = vld [vmem:[#allocation2 + $0xf9] sm:$0xff]  ;;  %v3323_v33 = vld [vmem:[#allocation2 + $0x101] sm:$0xff] }
 0x273   : > { %8202 = vmatprep.mubr.msk.bf16.mxu0 %vm456_vm0, %v3366_v54  ;;  %v13019_v54 = vld [vmem:[#allocation114_spill] sm:$0xff] }
 0x274   : > { %v3347_v30 = vmul.f32 %v3315_v63, %v13019_v54  ;;  %v3324_v63 = vld [vmem:[#allocation2 + $0x109] sm:$0xff] }
 0x275   : > { %v3356_v35 = vmul.f32 %v3324_v63, %v10408_v22  ;;  %v3889_v63 = vld [vmem:[#allocation3 + $0x10] sm:$0xff] }
 0x276   : > { %v3369_v19 = vpack.c.bf16 %v3347_v30, %v3346_v28  ;;  %v13025_v28 = vld [vmem:[#allocation129_spill] sm:$0xff]  ;;  %v10810_v22 = vld [vmem:[%s12420_s4] ss:$0 sm:$0xff] }
 0x277   : > { %v13026_v30 = vpack.c.bf16 %v13024_v0, %v13025_v28 }
 0x27a   : > { %8203 = vmatmul.mubr.msk.bf16.gmra.mrb[12].mxu0 %vm456_vm0, %v3367_v26  ;;  %v13023_v26 = vld [vmem:[#allocation122_spill] sm:$0xff] }
 0x27b   : > { %8206 = vmatprep.mubr.msk.bf16.mxu0 %vm456_vm0, %v3368_v59  ;;  %v3351_v59 = vmul.f32 %v3319_v6, %v13023_v26  ;;  %v3357_v6 = vmul.f32 %v3325_v61, %v13029_v32  ;;  %v3326_v26 = vld [vmem:[#allocation2 + $0x119] sm:$0xff] }
 0x27c   : > { %v3358_v0 = vmul.f32 %v3326_v26, %v10423_v46  ;;  %v10770_v26 = vpop.f32.mrb[0].mxu1  ;;  %v10805_v46 = vld [vmem:[%s12419_s3] ss:$0 sm:$0xff] }
 0x27d   : > { %v3371_v52 = vpack.c.bf16 %v3351_v59, %v3350_v60  ;;  %v3327_v59 = vld [vmem:[#allocation2 + $0x121] sm:$0xff]  ;;  %v3374_v43 = vpack.c.bf16 %v3357_v6, %v3356_v35 }
 0x282   : > { %8207 = vmatmul.mubr.msk.bf16.gmra.mrb[16].mxu0 %vm456_vm0, %v3369_v19  ;;  %v3354_v19 = vmul.f32 %v3322_v20, %v13027_v16  ;;  %v3888_v20 = vld [vmem:[#allocation3 + $0x8] sm:$0xff] }
 0x283   : > { %8210 = vmatprep.mubr.msk.bf16.mxu0 %vm456_vm0, %v3370_v31  ;;  %v3355_v31 = vmul.f32 %v3323_v33, %v13028_v47  ;;  %v9151_v33 = vld [vmem:[%s12421_s5 + $0x18] sm:$0xff]   ;;  %v3920_v61 = vpack.c.bf16 %v3889_v63, %v3888_v20 }
 0x284   : > { %8224 = vmatprep.subr.bf16.mxu1 %v9151_v33 }
 0x285   : > { %v3373_v60 = vpack.c.bf16 %v3355_v31, %v3354_v19  ;;  %8225 = vmatpush3.bf16.msra.mxu1 %v9151_v33  ;;  %8226 = vmatprep.mubr.msk.bf16.mxu1 %vm3732_vm1, %v3920_v61 }
 0x28a   : > { %8211 = vmatmul.mubr.msk.bf16.gmra.mrb[20].mxu0 %vm456_vm0, %v3371_v52  ;;  %v3359_v52 = vmul.f32 %v3327_v59, %v10421_v24 }
 0x28b   : > { %8214 = vmatprep.mubr.msk.bf16.mxu0 %vm456_vm0, %v13026_v30  ;;  %v10772_v30 = vpop.f32.mrb[1].mxu1 }
 0x28c   : > { %v3375_v28 = vpack.c.bf16 %v3359_v52, %v3358_v0  ;;  %v10774_v19 = vpop.f32.mrb[2].mxu1 }
 0x28d   : > { %v10776_v31 = vpop.f32.mrb[3].mxu1 }
 0x28e   : > { %v10778_v35 = vpop.f32.mrb[4].mxu1 }
 0x28f   : > { %v10780_v6 = vpop.f32.mrb[5].mxu1 }
 0x292   : > { %8215 = vmatmul.mubr.msk.bf16.gmra.mrb[24].mxu0 %vm456_vm0, %v3373_v60  ;;  %v10782_v60 = vpop.f32.mrb[6].mxu1 }
 0x293   : > { %8218 = vmatprep.mubr.msk.bf16.mxu0 %vm456_vm0, %v3374_v43  ;;  %v10767_v43 = vld [vmem:[%s12421_s5] sm:$0xff]   ;;  %v10784_v59 = vpop.f32.mrb[7].mxu1 }
 0x294   : > { %8258 = vmatprep.subr.bf16.mxu1 %v10767_v43  ;;  %v10786_v52 = vpop.f32.mrb[8].mxu1 }
 0x295   : > { %v10788_v0 = vpop.f32.mrb[9].mxu1 }
 0x29a   : > { %8219 = vmatmul.mubr.msk.bf16.gmra.mrb[28].mxu0 %vm456_vm0, %v3375_v28  ;;  %v10790_v28 = vpop.f32.mrb[10].mxu1 }
 0x29b   : > { %v10792_v33 = vpop.f32.mrb[11].mxu1 }
 0x29c   : > { %v10794_v20 = vpop.f32.mrb[12].mxu1 }
 0x29d   : > { %v10796_v63 = vpop.f32.mrb[13].mxu1 }
 0x29e   : > { %v10798_v61 = vpop.f32.mrb[14].mxu1 }
 0x29f   : > { %v10800_v24 = vpop.f32.mrb[15].mxu1 }
 0x335   : > { %v8192_v32 = vpop.f32.mrb[0].mxu0 }
 0x336   : > { %v3631_v47 = vmul.f32 %v8192_v32, %v10805_v46  ;;  %v3463_v16 = vpop.f32.mrb[1].mxu0 }
 0x337   : > { %v3629_v58 = vmul.f32 %v10805_v46, %v3463_v16  ;;  %v8193_v54 = vpop.f32.mrb[2].mxu0 }
 0x338   : > { %v3670_v40 = vadd.f32 %v10810_v22, %v3631_v47  ;;  %v3632_v14 = vmul.f32 %v8193_v54, %v10805_v46  ;;  %v3466_v7 = vpop.f32.mrb[3].mxu0 }
 0x339   : > { %v3668_v29 = vadd.f32 %v10810_v22, %v3629_v58  ;;  %v3630_v2 = vmul.f32 %v10805_v46, %v3466_v7 }
 0x33a   : > { %v3702_v25 = vmax.f32 %v3670_v40, 0.0  ;;  %v3671_v36 = vadd.f32 %v10810_v22, %v3632_v14 }
 0x33b   : > { %v3700_v9 = vmax.f32 %v3668_v29, 0.0  ;;  %v3669_v18 = vadd.f32 %v10810_v22, %v3630_v2 }
 0x33c   : > { %3774 = vst.msk [vmem:[#allocation3 + $0x28] sm:$0xff] %vm3732_vm1, %v3702_v25  ;;  %v3703_v32 = vmax.f32 %v3671_v36, 0.0 }
 0x33d   : > { %3772 = vst.msk [vmem:[#allocation3 + $0x18] sm:$0xff] %vm3732_vm1, %v3700_v9  ;;  %v3701_v16 = vmax.f32 %v3669_v18, 0.0  ;;  %v8196_v47 = vpop.f32.mrb[4].mxu0 }
 0x33e   : > { %3775 = vst.msk [vmem:[#allocation3 + $0x30] sm:$0xff] %vm3732_vm1, %v3703_v32  ;;  %v3635_v54 = vmul.f32 %v8196_v47, %v10805_v46  ;;  %v3479_v58 = vpop.f32.mrb[5].mxu0 }
 0x33f   : > { %3773 = vst.msk [vmem:[#allocation3 + $0x20] sm:$0xff] %vm3732_vm1, %v3701_v16  ;;  %v3633_v7 = vmul.f32 %v10805_v46, %v3479_v58  ;;  %v8197_v14 = vpop.f32.mrb[6].mxu0 }
 0x340   : > { %v3674_v29 = vadd.f32 %v10810_v22, %v3635_v54  ;;  %v3636_v2 = vmul.f32 %v8197_v14, %v10805_v46  ;;  %v3482_v25 = vpop.f32.mrb[7].mxu0 }
 0x341   : > { %v3672_v36 = vadd.f32 %v10810_v22, %v3633_v7  ;;  %v3634_v18 = vmul.f32 %v10805_v46, %v3482_v25 }
 0x342   : > { %v3706_v9 = vmax.f32 %v3674_v29, 0.0  ;;  %v3675_v40 = vadd.f32 %v10810_v22, %v3636_v2 }
 0x343   : > { %v3704_v32 = vmax.f32 %v3672_v36, 0.0  ;;  %v3673_v47 = vadd.f32 %v10810_v22, %v3634_v18 }
 0x344   : > { %3778 = vst.msk [vmem:[#allocation3 + $0x48] sm:$0xff] %vm3732_vm1, %v3706_v9  ;;  %v3707_v16 = vmax.f32 %v3675_v40, 0.0  ;;  %v3890_v25 = vld [vmem:[#allocation3 + $0x18] sm:$0xff]  ;;  %v3892_v9 = vld [vmem:[#allocation3 + $0x28] sm:$0xff] }
 0x345   : > { %3776 = vst.msk [vmem:[#allocation3 + $0x38] sm:$0xff] %vm3732_vm1, %v3704_v32  ;;  %v3705_v58 = vmax.f32 %v3673_v47, 0.0  ;;  %v8200_v54 = vpop.f32.mrb[8].mxu0  ;;  %v3893_v42 = vld [vmem:[#allocation3 + $0x30] sm:$0xff]  ;;  %v9153_v40 = vld [vmem:[%s12421_s5 + $0x8] sm:$0xff]  }
 0x346   : > { %3779 = vst.msk [vmem:[#allocation3 + $0x50] sm:$0xff] %vm3732_vm1, %v3707_v16  ;;  %v3639_v7 = vmul.f32 %v8200_v54, %v10805_v46  ;;  %v3495_v14 = vpop.f32.mrb[9].mxu0  ;;  %v3891_v29 = vld [vmem:[#allocation3 + $0x20] sm:$0xff]  ;;  %v3922_v54 = vpack.c.bf16 %v3893_v42, %v3892_v9  ;;  %v10843_v13 = vld [vmem:[#allocation3 + $0x17] sm:$0xff] }
 0x347   : > { %3777 = vst.msk [vmem:[#allocation3 + $0x40] sm:$0xff] %vm3732_vm1, %v3705_v58  ;;  %v3637_v2 = vmul.f32 %v10805_v46, %v3495_v14  ;;  %v8201_v36 = vpop.f32.mrb[10].mxu0  ;;  %v3921_v18 = vpack.c.bf16 %v3891_v29, %v3890_v25  ;;  %v10845_v50 = vld [vmem:[#allocation3 + $0x1f] sm:$0xff] }
 0x348   : > { %v3678_v32 = vadd.f32 %v10810_v22, %v3639_v7  ;;  %v3640_v47 = vmul.f32 %v8201_v36, %v10805_v46  ;;  %v3498_v16 = vpop.f32.mrb[11].mxu0  ;;  %v10857_v36 = vld [vmem:[%s12421_s5 + $0x20] sm:$0xff]  }
 0x349   : > { %v3676_v58 = vadd.f32 %v10810_v22, %v3637_v2  ;;  %v3638_v14 = vmul.f32 %v10805_v46, %v3498_v16  ;;  %8227 = vmatmul.mubr.msk.bf16.vlgmr.msra.gmra.mrb[16].mxu1 %vm3732_vm1, %v3921_v18  ;;  %v10861_v2 = vmul.f32 %v10843_v13, %v12968_v37  ;;  %v10865_v18 = vmul.f32 %v10845_v50, %v12967_v53 }
 0x34a   : > { %v3710_v25 = vmax.f32 %v3678_v32, 0.0  ;;  %v3679_v29 = vadd.f32 %v10810_v22, %v3640_v47  ;;  %8230 = vmatprep.mubr.msk.bf16.mxu1 %vm3732_vm1, %v3922_v54  ;;  %8259 = vmatpush3.bf16.msra.mxu1 %v10767_v43 }
 0x34b   : > { %v3708_v7 = vmax.f32 %v3676_v58, 0.0  ;;  %v3677_v42 = vadd.f32 %v10810_v22, %v3638_v14  ;;  %8260 = vmatprep.subr.bf16.mxu1 %v9153_v40  ;;  %13030 = vst [vmem:[#allocation79_spill] sm:$0xff] %v10861_v2  ;;  %13031 = vst [vmem:[#allocation78_spill] sm:$0xff] %v10865_v18 }
 0x34c   : > { %3782 = vst.msk [vmem:[#allocation3 + $0x68] sm:$0xff] %vm3732_vm1, %v3710_v25  ;;  %v3711_v43 = vmax.f32 %v3679_v29, 0.0  ;;  %v3894_v14 = vld [vmem:[#allocation3 + $0x38] sm:$0xff] }
 0x34d   : > { %3780 = vst.msk [vmem:[#allocation3 + $0x58] sm:$0xff] %vm3732_vm1, %v3708_v7  ;;  %v3709_v9 = vmax.f32 %v3677_v42, 0.0  ;;  %v8204_v32 = vpop.f32.mrb[12].mxu0  ;;  %v3897_v47 = vld [vmem:[#allocation3 + $0x50] sm:$0xff]  ;;  %v3896_v42 = vld [vmem:[#allocation3 + $0x48] sm:$0xff] }
 0x34e   : > { %3783 = vst.msk [vmem:[#allocation3 + $0x70] sm:$0xff] %vm3732_vm1, %v3711_v43  ;;  %v3643_v54 = vmul.f32 %v8204_v32, %v10805_v46  ;;  %v3511_v58 = vpop.f32.mrb[13].mxu0  ;;  %v3895_v48 = vld [vmem:[#allocation3 + $0x40] sm:$0xff]  ;;  %8261 = vmatpush3.bf16.msra.mxu1 %v9153_v40  ;;  %v10880_v32 = vpack.c.bf16 %v3897_v47, %v3896_v42 }
 0x34f   : > { %3781 = vst.msk [vmem:[#allocation3 + $0x60] sm:$0xff] %vm3732_vm1, %v3709_v9  ;;  %v3641_v25 = vmul.f32 %v10805_v46, %v3511_v58  ;;  %v8205_v29 = vpop.f32.mrb[14].mxu0  ;;  %v10875_v7 = vpack.c.bf16 %v3895_v48, %v3894_v14  ;;  %8294 = vmatprep.subr.bf16.mxu1 %v10857_v36 }
 0x350   : > { %v3682_v16 = vadd.f32 %v10810_v22, %v3643_v54  ;;  %v3644_v43 = vmul.f32 %v8205_v29, %v10805_v46  ;;  %v3514_v2 = vpop.f32.mrb[15].mxu0  ;;  %13033 = vst [vmem:[#allocation84_spill] sm:$0xff] %v10880_v32 }
 0x351   : > { %13032 = vst [vmem:[#allocation82_spill] sm:$0xff] %v10875_v7  ;;  %v3680_v18 = vadd.f32 %v10810_v22, %v3641_v25  ;;  %v3642_v40 = vmul.f32 %v10805_v46, %v3514_v2  ;;  %8231 = vmatmul.mubr.msk.bf16.gmra.mrb[20].mxu1 %vm3732_vm1, %v10875_v7 }
 0x352   : > { %v3714_v9 = vmax.f32 %v3682_v16, 0.0  ;;  %v3683_v48 = vadd.f32 %v10810_v22, %v3644_v43  ;;  %8234 = vmatprep.mubr.msk.bf16.mxu1 %vm3732_vm1, %v10880_v32 }
 0x353   : > { %v3712_v58 = vmax.f32 %v3680_v18, 0.0  ;;  %v3681_v54 = vadd.f32 %v10810_v22, %v3642_v40 }
 0x354   : > { %3786 = vst.msk [vmem:[#allocation3 + $0x88] sm:$0xff] %vm3732_vm1, %v3714_v9  ;;  %v3715_v47 = vmax.f32 %v3683_v48, 0.0  ;;  %v3898_v42 = vld [vmem:[#allocation3 + $0x58] sm:$0xff]  ;;  %v3900_v9 = vld [vmem:[#allocation3 + $0x68] sm:$0xff] }
 0x355   : > { %3784 = vst.msk [vmem:[#allocation3 + $0x78] sm:$0xff] %vm3732_vm1, %v3712_v58  ;;  %v3713_v14 = vmax.f32 %v3681_v54, 0.0  ;;  %v8208_v25 = vpop.f32.mrb[16].mxu0  ;;  %v3901_v2 = vld [vmem:[#allocation3 + $0x70] sm:$0xff] }
 0x356   : > { %3787 = vst.msk [vmem:[#allocation3 + $0x90] sm:$0xff] %vm3732_vm1, %v3715_v47  ;;  %v8582_v16 = vadd.f32 %v8208_v25, %v10770_v26  ;;  %v3527_v29 = vpop.f32.mrb[17].mxu0  ;;  %v3899_v43 = vld [vmem:[#allocation3 + $0x60] sm:$0xff]  ;;  %v10900_v7 = vpack.c.bf16 %v3901_v2, %v3900_v9 }
 0x357   : > { %3785 = vst.msk [vmem:[#allocation3 + $0x80] sm:$0xff] %vm3732_vm1, %v3713_v14  ;;  %v8583_v18 = vadd.f32 %v3527_v29, %v10772_v30  ;;  %v8209_v40 = vpop.f32.mrb[18].mxu0  ;;  %v10896_v32 = vpack.c.bf16 %v3899_v43, %v3898_v42  ;;  %v10913_v29 = vld [vmem:[#allocation3 + $0x5f] sm:$0xff] }
 0x358   : > { %v3647_v48 = vmul.f32 %v8582_v16, %v10805_v46  ;;  %v8584_v58 = vadd.f32 %v8209_v40, %v10774_v19  ;;  %v3530_v54 = vpop.f32.mrb[19].mxu0  ;;  %13035 = vst [vmem:[#allocation88_spill] sm:$0xff] %v10900_v7 }
 0x359   : > { %13034 = vst [vmem:[#allocation89_spill] sm:$0xff] %v10896_v32  ;;  %v3645_v26 = vmul.f32 %v8583_v18, %v10805_v46  ;;  %v8585_v47 = vadd.f32 %v3530_v54, %v10776_v31  ;;  %8235 = vmatmul.mubr.msk.bf16.gmra.mrb[24].mxu1 %vm3732_vm1, %v10896_v32 }
 0x35a   : > { %v3686_v30 = vadd.f32 %v10810_v22, %v3647_v48  ;;  %v3648_v14 = vmul.f32 %v8584_v58, %v10805_v46  ;;  %8238 = vmatprep.mubr.msk.bf16.mxu1 %vm3732_vm1, %v10900_v7  ;;  %v10924_v7 = vld [vmem:[#allocation3 + $0x67] sm:$0xff] }
 0x35b   : > { %v3684_v25 = vadd.f32 %v10810_v22, %v3645_v26  ;;  %v3646_v19 = vmul.f32 %v8585_v47, %v10805_v46  ;;  %v10918_v26 = vld [vmem:[#allocation3 + $0x57] sm:$0xff] }
 0x35c   : > { %v3718_v2 = vmax.f32 %v3686_v30, 0.0  ;;  %v3687_v16 = vadd.f32 %v10810_v22, %v3648_v14  ;;  %v3902_v58 = vld [vmem:[#allocation3 + $0x78] sm:$0xff] }
 0x35d   : > { %v3716_v31 = vmax.f32 %v3684_v25, 0.0  ;;  %v3685_v42 = vadd.f32 %v10810_v22, %v3646_v19  ;;  %v8212_v43 = vpop.f32.mrb[20].mxu0  ;;  %v3905_v18 = vld [vmem:[#allocation3 + $0x90] sm:$0xff]  ;;  %v3904_v19 = vld [vmem:[#allocation3 + $0x88] sm:$0xff] }
 0x35e   : > { %3790 = vst.msk [vmem:[#allocation3 + $0xa8] sm:$0xff] %vm3732_vm1, %v3718_v2  ;;  %v3719_v40 = vmax.f32 %v3687_v16, 0.0  ;;  %v8586_v9 = vadd.f32 %v8212_v43, %v10778_v35  ;;  %v3543_v48 = vpop.f32.mrb[21].mxu0  ;;  %v3903_v54 = vld [vmem:[#allocation3 + $0x80] sm:$0xff]  ;;  %v10928_v2 = vmul.f32 %v10913_v29, %v12977_v55  ;;  %v10975_v32 = vld [vmem:[#allocation3 + $0x77] sm:$0xff] }
 0x35f   : > { %3788 = vst.msk [vmem:[#allocation3 + $0x98] sm:$0xff] %vm3732_vm1, %v3716_v31  ;;  %v3717_v47 = vmax.f32 %v3685_v42, 0.0  ;;  %v8587_v30 = vadd.f32 %v3543_v48, %v10780_v6  ;;  %v8213_v14 = vpop.f32.mrb[22].mxu0  ;;  %v10922_v25 = vpack.c.bf16 %v3903_v54, %v3902_v58  ;;  %v10933_v42 = vpack.c.bf16 %v3905_v18, %v3904_v19  ;;  %v10940_v48 = vld [vmem:[#allocation3 + $0x6f] sm:$0xff] }
 0x360   : > { %13037 = vst [vmem:[#allocation92_spill] sm:$0xff] %v10928_v2  ;;  %3791 = vst.msk [vmem:[#allocation3 + $0xb0] sm:$0xff] %vm3732_vm1, %v3719_v40  ;;  %v3651_v35 = vmul.f32 %v8586_v9, %v10805_v46  ;;  %v8588_v16 = vadd.f32 %v8213_v14, %v10782_v60  ;;  %v3546_v31 = vpop.f32.mrb[23].mxu0  ;;  %v10944_v40 = vmul.f32 %v10918_v26, %v12976_v38 }
 0x361   : > { %13036 = vst [vmem:[#allocation93_spill] sm:$0xff] %v10922_v25  ;;  %13038 = vst [vmem:[#allocation97_spill] sm:$0xff] %v10933_v42  ;;  %v3649_v6 = vmul.f32 %v8587_v30, %v10805_v46  ;;  %v8589_v43 = vadd.f32 %v3546_v31, %v10784_v59  ;;  %8239 = vmatmul.mubr.msk.bf16.gmra.mrb[28].mxu1 %vm3732_vm1, %v10922_v25  ;;  %v10952_v9 = vmul.f32 %v10924_v7, %v12978_v3 }
 0x362   : > { %3789 = vst.msk [vmem:[#allocation3 + $0xa0] sm:$0xff] %vm3732_vm1, %v3717_v47  ;;  %13039 = vst [vmem:[#allocation96_spill] sm:$0xff] %v10944_v40  ;;  %v3690_v60 = vadd.f32 %v10810_v22, %v3651_v35  ;;  %v3652_v18 = vmul.f32 %v8588_v16, %v10805_v46  ;;  %8242 = vmatprep.mubr.msk.bf16.mxu1 %vm3732_vm1, %v10933_v42  ;;  %v10961_v14 = vmul.f32 %v10940_v48, %v12979_v41  ;;  %v10966_v42 = vld [vmem:[#allocation3 + $0x7f] sm:$0xff] }
 0x363   : > { %13040 = vst [vmem:[#allocation101_spill] sm:$0xff] %v10952_v9  ;;  %v3688_v59 = vadd.f32 %v10810_v22, %v3649_v6  ;;  %v3650_v58 = vmul.f32 %v8589_v43, %v10805_v46 }
 0x364   : > { %v3722_v47 = vmax.f32 %v3690_v60, 0.0  ;;  %v3691_v30 = vadd.f32 %v10810_v22, %v3652_v18  ;;  %13041 = vst [vmem:[#allocation100_spill] sm:$0xff] %v10961_v14 }
 0x365   : > { %v3720_v19 = vmax.f32 %v3688_v59, 0.0  ;;  %v3689_v35 = vadd.f32 %v10810_v22, %v3650_v58  ;;  %v8216_v16 = vpop.f32.mrb[24].mxu0 }
 0x366   : > { %3794 = vst.msk [vmem:[#allocation3 + $0xc8] sm:$0xff] %vm3732_vm1, %v3722_v47  ;;  %v3723_v31 = vmax.f32 %v3691_v30, 0.0  ;;  %v8590_v6 = vadd.f32 %v8216_v16, %v10786_v52  ;;  %v3559_v43 = vpop.f32.mrb[25].mxu0  ;;  %v3906_v30 = vld [vmem:[#allocation3 + $0x98] sm:$0xff] }
 0x367   : > { %3792 = vst.msk [vmem:[#allocation3 + $0xb8] sm:$0xff] %vm3732_vm1, %v3720_v19  ;;  %v3721_v18 = vmax.f32 %v3689_v35, 0.0  ;;  %v8591_v54 = vadd.f32 %v3559_v43, %v10788_v0  ;;  %v8217_v59 = vpop.f32.mrb[26].mxu0  ;;  %v3909_v25 = vld [vmem:[#allocation3 + $0xb0] sm:$0xff]  ;;  %v3908_v43 = vld [vmem:[#allocation3 + $0xa8] sm:$0xff] }
 0x368   : > { %3795 = vst.msk [vmem:[#allocation3 + $0xd0] sm:$0xff] %vm3732_vm1, %v3723_v31  ;;  %v3655_v58 = vmul.f32 %v8590_v6, %v10805_v46  ;;  %v8592_v47 = vadd.f32 %v8217_v59, %v10790_v28  ;;  %v3562_v52 = vpop.f32.mrb[27].mxu0  ;;  %v10984_v31 = vmul.f32 %v10966_v42, %v12981_v5  ;;  %v10988_v59 = vpack.c.bf16 %v3909_v25, %v3908_v43 }
 0x369   : > { %v3907_v16 = vld [vmem:[#allocation3 + $0xa0] sm:$0xff]  ;;  %3793 = vst.msk [vmem:[#allocation3 + $0xc0] sm:$0xff] %vm3732_vm1, %v3721_v18  ;;  %v3653_v19 = vmul.f32 %v8591_v54, %v10805_v46  ;;  %v8593_v35 = vadd.f32 %v3562_v52, %v10792_v33  ;;  %v10996_v33 = vmul.f32 %v10975_v32, %v12980_v17 }
 0x36a   : > { %v10980_v0 = vpack.c.bf16 %v3907_v16, %v3906_v30  ;;  %13043 = vst [vmem:[#allocation104_spill] sm:$0xff] %v10984_v31  ;;  %v3694_v28 = vadd.f32 %v10810_v22, %v3655_v58  ;;  %v3656_v6 = vmul.f32 %v8592_v47, %v10805_v46  ;;  %13044 = vst [vmem:[#allocation109_spill] sm:$0xff] %v10988_v59  ;;  %v11002_v30 = vld [vmem:[#allocation3 + $0x87] sm:$0xff] }
 0x36b   : > { %v3692_v60 = vadd.f32 %v10810_v22, %v3653_v19  ;;  %v3654_v18 = vmul.f32 %v8593_v35, %v10805_v46  ;;  %13045 = vst [vmem:[#allocation108_spill] sm:$0xff] %v10996_v33 }
 0x36c   : > { %13042 = vst [vmem:[#allocation105_spill] sm:$0xff] %v10980_v0  ;;  %8243 = vmatmul.mubr.msk.bf16.gmra.mrb[32].mxu1 %vm3732_vm1, %v10980_v0  ;;  %v3726_v54 = vmax.f32 %v3694_v28, 0.0  ;;  %v3695_v52 = vadd.f32 %v10810_v22, %v3656_v6  ;;  %v11008_v28 = vld [vmem:[#allocation3 + $0x8f] sm:$0xff] }
 0x36d   : > { %8246 = vmatprep.mubr.msk.bf16.mxu1 %vm3732_vm1, %v10988_v59  ;;  %v3724_v58 = vmax.f32 %v3692_v60, 0.0  ;;  %v3693_v25 = vadd.f32 %v10810_v22, %v3654_v18  ;;  %v8220_v47 = vpop.f32.mrb[28].mxu0 }
 0x36e   : > { %3798 = vst.msk [vmem:[#allocation3 + $0xe8] sm:$0xff] %vm3732_vm1, %v3726_v54  ;;  %v3727_v19 = vmax.f32 %v3695_v52, 0.0  ;;  %v8594_v35 = vadd.f32 %v8220_v47, %v10794_v20  ;;  %v3575_v43 = vpop.f32.mrb[29].mxu0  ;;  %v3910_v52 = vld [vmem:[#allocation3 + $0xb8] sm:$0xff]  ;;  %v11017_v20 = vmul.f32 %v11002_v30, %v12982_v12  ;;  %v3912_v47 = vld [vmem:[#allocation3 + $0xc8] sm:$0xff] }
 0x36f   : > { %3796 = vst.msk [vmem:[#allocation3 + $0xd8] sm:$0xff] %vm3732_vm1, %v3724_v58  ;;  %v3725_v6 = vmax.f32 %v3693_v25, 0.0  ;;  %v8595_v60 = vadd.f32 %v3575_v43, %v10796_v63  ;;  %v8221_v18 = vpop.f32.mrb[30].mxu0  ;;  %v3913_v59 = vld [vmem:[#allocation3 + $0xd0] sm:$0xff] }
 0x370   : > { %3799 = vst.msk [vmem:[#allocation3 + $0xf0] sm:$0xff] %vm3732_vm1, %v3727_v19  ;;  %v3659_v0 = vmul.f32 %v8594_v35, %v10805_v46  ;;  %v8596_v16 = vadd.f32 %v8221_v18, %v10798_v61  ;;  %v3578_v54 = vpop.f32.mrb[31].mxu0  ;;  %v3911_v33 = vld [vmem:[#allocation3 + $0xc0] sm:$0xff]  ;;  %13046 = vst [vmem:[#allocation113_spill] sm:$0xff] %v11017_v20  ;;  %v11026_v19 = vmul.f32 %v11008_v28, %v12983_v8  ;;  %v11080_v31 = vld [vmem:[#allocation3 + $0xcf] sm:$0xff] }
 0x371   : > { %3797 = vst.msk [vmem:[#allocation3 + $0xe0] sm:$0xff] %vm3732_vm1, %v3725_v6  ;;  %v3657_v58 = vmul.f32 %v8595_v60, %v10805_v46  ;;  %v8597_v63 = vadd.f32 %v3578_v54, %v10800_v24  ;;  %v11022_v25 = vpack.c.bf16 %v3911_v33, %v3910_v52  ;;  %v11030_v43 = vpack.c.bf16 %v3913_v59, %v3912_v47  ;;  %v11036_v24 = vld [vmem:[#allocation3 + $0x97] sm:$0xff]  ;;  %v11038_v33 = vld [vmem:[#allocation3 + $0x9f] sm:$0xff]  ;;  %v11051_v47 = vld [vmem:[#allocation3 + $0xaf] sm:$0xff] }
 0x372   : > { %13048 = vst [vmem:[#allocation117_spill] sm:$0xff] %v11026_v19  ;;  %v3698_v61 = vadd.f32 %v10810_v22, %v3659_v0  ;;  %v3660_v35 = vmul.f32 %v8596_v16, %v10805_v46  ;;  %v11044_v16 = vld [vmem:[#allocation3 + $0xa7] sm:$0xff]  ;;  %13056 = vst [vmem:[#allocation42_spill] sm:$0xff] %v11080_v31 }
 0x373   : > { %13047 = vst [vmem:[#allocation112_spill] sm:$0xff] %v11022_v25  ;;  %13049 = vst [vmem:[#allocation116_spill] sm:$0xff] %v11030_v43  ;;  %v3696_v18 = vadd.f32 %v10810_v22, %v3657_v58  ;;  %v3658_v6 = vmul.f32 %v8597_v63, %v10805_v46  ;;  %v3805_v58 = vld [vmem:[#allocation3 + $0xf] sm:$0xff] }
 0x374   : > { %8247 = vmatmul.mubr.msk.bf16.gmra.mrb[36].mxu1 %vm3732_vm1, %v11022_v25  ;;  %v3730_v60 = vmax.f32 %v3698_v61, 0.0  ;;  %v3699_v54 = vadd.f32 %v10810_v22, %v3660_v35  ;;  %v11049_v63 = vld [vmem:[#allocation3 + $0x2f] sm:$0xff]  ;;  %v11055_v61 = vmul.f32 %v11036_v24, %v12984_v44  ;;  %v11069_v25 = vld [vmem:[#allocation3 + $0xc7] sm:$0xff]  ;;  %v11087_v14 = vmul.f32 %v3805_v58, %v12967_v53 }
 0x375   : > { %8250 = vmatprep.mubr.msk.bf16.mxu1 %vm3732_vm1, %v11030_v43  ;;  %v3728_v0 = vmax.f32 %v3696_v18, 0.0  ;;  %v3697_v59 = vadd.f32 %v10810_v22, %v3658_v6  ;;  %13050 = vst [vmem:[#allocation121_spill] sm:$0xff] %v11049_v63  ;;  %v11059_v22 = vmul.f32 %v11038_v33, %v12985_v10  ;;  %v11062_v6 = vld [vmem:[#allocation3 + $0x27] sm:$0xff]  ;;  %v11091_v20 = vmul.f32 %v11049_v63, %v12970_v4 }
 0x376   : > { %3802 = vst.msk [vmem:[#allocation3 + $0x108] sm:$0xff] %vm3732_vm1, %v3730_v60  ;;  %v3731_v52 = vmax.f32 %v3699_v54, 0.0  ;;  %13051 = vst [vmem:[#allocation120_spill] sm:$0xff] %v11055_v61  ;;  %v11064_v60 = vld [vmem:[#allocation3 + $0xb7] sm:$0xff]  ;;  %v11066_v54 = vld [vmem:[#allocation3 + $0xbf] sm:$0xff]  ;;  %v11123_v2 = vmul.f32 %v11069_v25, %v12990_v15  ;;  %v11135_v63 = vmul.f32 %v11080_v31, %v12991_v39 }
 0x377   : > { %13052 = vst [vmem:[#allocation125_spill] sm:$0xff] %v11059_v22  ;;  %3800 = vst.msk [vmem:[#allocation3 + $0xf8] sm:$0xff] %vm3732_vm1, %v3728_v0  ;;  %v3729_v35 = vmax.f32 %v3697_v59, 0.0  ;;  %v3917_v18 = vld [vmem:[#allocation3 + $0xf0] sm:$0xff]  ;;  %v3914_v46 = vld [vmem:[#allocation3 + $0xd8] sm:$0xff]  ;;  %v11075_v0 = vmul.f32 %v11044_v16, %v12986_v49  ;;  %v11115_v53 = vmul.f32 %v11064_v60, %v12988_v34  ;;  %v11119_v40 = vmul.f32 %v11066_v54, %v12989_v62 }
 0x378   : > { %13053 = vst [vmem:[#allocation124_spill] sm:$0xff] %v11062_v6  ;;  %3803 = vst.msk [vmem:[#allocation3 + $0x110] sm:$0xff] %vm3732_vm1, %v3731_v52  ;;  %v3915_v43 = vld [vmem:[#allocation3 + $0xe0] sm:$0xff]  ;;  %v3916_v19 = vld [vmem:[#allocation3 + $0xe8] sm:$0xff] }
 0x379   : > { %13054 = vst [vmem:[#allocation128_spill] sm:$0xff] %v11075_v0  ;;  %3801 = vst.msk [vmem:[#allocation3 + $0x100] sm:$0xff] %vm3732_vm1, %v3729_v35  ;;  %v11078_v59 = vpack.c.bf16 %v3915_v43, %v3914_v46  ;;  %v11082_v9 = vld [vmem:[#allocation3 + $0xd7] sm:$0xff]  ;;  %v11084_v52 = vpack.c.bf16 %v3917_v18, %v3916_v19  ;;  %v11093_v61 = vld [vmem:[#allocation3 + $0xdf] sm:$0xff]  ;;  %v11101_v46 = vmul.f32 %v11051_v47, %v12987_v56 }
 0x37a   : > { %13057 = vst [vmem:[#allocation51_spill] sm:$0xff] %v11082_v9  ;;  %13059 = vst [vmem:[#allocation53_spill] sm:$0xff] %v11093_v61  ;;  %v11095_v22 = vld [vmem:[#allocation3 + $0xe7] sm:$0xff]  ;;  %v11097_v43 = vld [vmem:[#allocation3 + $0xef] sm:$0xff] }
 0x37b   : > { %13055 = vst [vmem:[#allocation45_spill] sm:$0xff] %v11078_v59  ;;  %13058 = vst [vmem:[#allocation50_spill] sm:$0xff] %v11084_v52  ;;  %v13063_v19 = vld [vmem:[#allocation43_spill] sm:$0xff]  ;;  %v11109_v35 = vld [vmem:[#allocation3 + $0x19] sm:$0xff]  ;;  %v11151_v4 = vmul.f32 %v11095_v22, %v12994_v21  ;;  %v11155_v0 = vmul.f32 %v11097_v43, %v12995_v11 }
 0x37c   : > { %13060 = vst [vmem:[#allocation52_spill] sm:$0xff] %v11095_v22  ;;  %13061 = vst [vmem:[#allocation55_spill] sm:$0xff] %v11097_v43  ;;  %8251 = vmatmul.mubr.msk.bf16.gmra.mrb[40].mxu1 %vm3732_vm1, %v11078_v59  ;;  %v11107_v58 = vmul.f32 %v10845_v50, %v13063_v19  ;;  %v11111_v18 = vld [vmem:[#allocation3 + $0x21] sm:$0xff]  ;;  %v11129_v59 = vmul.f32 %v11062_v6, %v12969_v45  ;;  %v11139_v19 = vmul.f32 %v11082_v9, %v12992_v1  ;;  %v11141_v15 = vld [vmem:[#allocation3 + $0x29] sm:$0xff] }
 0x37d   : > { %13062 = vst [vmem:[#allocation54_spill] sm:$0xff] %v11101_v46  ;;  %13064 = vst [vmem:[#allocation57_spill] sm:$0xff] %v11109_v35  ;;  %8254 = vmatprep.mubr.msk.bf16.mxu1 %vm3732_vm1, %v11084_v52  ;;  %v3804_v50 = vld [vmem:[#allocation3 + $0x7] sm:$0xff]  ;;  %v11147_v45 = vmul.f32 %v11093_v61, %v12993_v27  ;;  %v11157_v46 = vld [vmem:[#allocation3 + $0x3f] sm:$0xff] }
 0x37e   : > { %13065 = vst [vmem:[#allocation56_spill] sm:$0xff] %v11111_v18  ;;  %13066 = vst [vmem:[#allocation59_spill] sm:$0xff] %v11115_v53  ;;  %v11159_v6 = vld [vmem:[#allocation3 + $0x4f] sm:$0xff]  ;;  %v11167_v53 = vmul.f32 %v11109_v35, %v12999_v57  ;;  %v3836_v11 = vmul.f32 %v3804_v50, %v12968_v37  ;;  %v11178_v27 = vld [vmem:[#allocation3 + $0xf7] sm:$0xff]  ;;  %v11231_v57 = vmul.f32 %v11157_v46, %v12975_v23 }
 0x37f   : > { %13067 = vst [vmem:[#allocation58_spill] sm:$0xff] %v11119_v40  ;;  %13068 = vst [vmem:[#allocation61_spill] sm:$0xff] %v11123_v2  ;;  %v11161_v1 = vld [vmem:[#allocation3 + $0x31] sm:$0xff]  ;;  %v11171_v40 = vmul.f32 %v11111_v18, %v13000_v51  ;;  %v11180_v22 = vld [vmem:[#allocation3 + $0x39] sm:$0xff]  ;;  %v11235_v51 = vmul.f32 %v11159_v6, %v12977_v55 }
 0x380   : > { %13069 = vst [vmem:[#allocation60_spill] sm:$0xff] %v11135_v63  ;;  %13070 = vst [vmem:[#allocation63_spill] sm:$0xff] %v11139_v19  ;;  %v13080_v21 = vld [vmem:[#allocation40_spill] sm:$0xff]  ;;  %v11182_v61 = vld [vmem:[#allocation3 + $0x41] sm:$0xff]  ;;  %v3868_v37 = vpack.c.bf16 %v11087_v14, %v3836_v11 }
 0x381   : > { %13071 = vst [vmem:[#allocation73_spill] sm:$0xff] %v11141_v15  ;;  %13072 = vst [vmem:[#allocation72_spill] sm:$0xff] %v11147_v45  ;;  %v11176_v43 = vmul.f32 %v10843_v13, %v13080_v21  ;;  %v3918_v63 = vld [vmem:[#allocation3 + $0xf8] sm:$0xff]  ;;  %v3919_v18 = vld [vmem:[#allocation3 + $0x100] sm:$0xff] }
 0x382   : > { %13073 = vst [vmem:[#allocation83_spill] sm:$0xff] %v11151_v4  ;;  %13074 = vst [vmem:[#allocation85_spill] sm:$0xff] %v11155_v0  ;;  %v11188_v35 = vld [vmem:[#allocation3 + $0xff] sm:$0xff]  ;;  %v11192_v50 = vpack.c.bf16 %v3919_v18, %v3918_v63  ;;  %v11199_v19 = vld [vmem:[#allocation3 + $0x47] sm:$0xff] }
 0x383   : > { %13075 = vst [vmem:[#allocation130_spill] sm:$0xff] %v11157_v46  ;;  %13076 = vst [vmem:[#allocation129_spill] sm:$0xff] %v11159_v6  ;;  %v11201_v2 = vld [vmem:[#allocation3 + $0x49] sm:$0xff]  ;;  %v11203_v4 = vld [vmem:[#allocation3 + $0x51] sm:$0xff]  ;;  %v11254_v6 = vmul.f32 %v11199_v19, %v12976_v38 }
 0x384   : > { %13077 = vst [vmem:[#allocation137_spill] sm:$0xff] %v11161_v1  ;;  %13078 = vst [vmem:[#allocation138_spill] sm:$0xff] %v11167_v53  ;;  %v11205_v0 = vld [vmem:[#allocation3 + $0x59] sm:$0xff]  ;;  %v11207_v45 = vld [vmem:[#allocation3 + $0x61] sm:$0xff]  ;;  %8255 = vmatmul.mubr.msk.bf16.gmra.mrb[44].mxu1 %vm3732_vm1, %v11192_v50 }
 0x385   : > { %13079 = vst [vmem:[#allocation139_spill] sm:$0xff] %v11171_v40  ;;  %13081 = vst [vmem:[#allocation140_spill] sm:$0xff] %v11178_v27  ;;  %v11209_v63 = vld [vmem:[#allocation3 + $0x69] sm:$0xff]  ;;  %v13094_v14 = vld [vmem:[#allocation70_spill] sm:$0xff]  ;;  %8262 = vmatprep.mubr.msk.bf16.mxu1 %vm3732_vm1, %v3868_v37 }
 0x386   : > { %13082 = vst [vmem:[#allocation141_spill] sm:$0xff] %v11180_v22  ;;  %13083 = vst [vmem:[#allocation142_spill] sm:$0xff] %v11182_v61  ;;  %v13092_v18 = vld [vmem:[#allocation71_spill] sm:$0xff]  ;;  %v11217_v13 = vmul.f32 %v11188_v35, %v13094_v14  ;;  %v13096_v52 = vld [vmem:[#allocation81_spill] sm:$0xff] }
 0x387   : > { %13084 = vst [vmem:[#allocation143_spill] sm:$0xff] %v11188_v35  ;;  %13085 = vst [vmem:[#allocation144_spill] sm:$0xff] %v11192_v50  ;;  %v11213_v11 = vmul.f32 %v11178_v27, %v13092_v18  ;;  %v11221_v21 = vmul.f32 %v11141_v15, %v13096_v52  ;;  %v13098_v53 = vld [vmem:[#allocation80_spill] sm:$0xff]  ;;  %v11239_v18 = vld [vmem:[#allocation3 + $0x79] sm:$0xff] }
 0x388   : > { %13086 = vst [vmem:[#allocation145_spill] sm:$0xff] %v11199_v19  ;;  %13087 = vst [vmem:[#allocation146_spill] sm:$0xff] %v11201_v2  ;;  %v11225_v40 = vmul.f32 %v11161_v1, %v13098_v53  ;;  %v11237_v14 = vld [vmem:[#allocation3 + $0x71] sm:$0xff]  ;;  %v11241_v15 = vld [vmem:[#allocation3 + $0x81] sm:$0xff] }
 0x389   : > { %13088 = vst [vmem:[#allocation147_spill] sm:$0xff] %v11203_v4  ;;  %13089 = vst [vmem:[#allocation148_spill] sm:$0xff] %v11205_v0  ;;  %v13103_v52 = vld [vmem:[#allocation87_spill] sm:$0xff]  ;;  %v13105_v53 = vld [vmem:[#allocation86_spill] sm:$0xff] }
 0x38a   : > { %13090 = vst [vmem:[#allocation149_spill] sm:$0xff] %v11207_v45  ;;  %13091 = vst [vmem:[#allocation150_spill] sm:$0xff] %v11209_v63  ;;  %v11245_v1 = vmul.f32 %v11180_v22, %v13103_v52  ;;  %v11249_v50 = vmul.f32 %v11182_v61, %v13105_v53  ;;  %v11256_v46 = vld [vmem:[#allocation3 + $0x89] sm:$0xff]  ;;  %v11258_v35 = vld [vmem:[#allocation3 + $0x91] sm:$0xff] }
 0x38b   : > { %13093 = vst [vmem:[#allocation151_spill] sm:$0xff] %v11213_v11  ;;  %13095 = vst [vmem:[#allocation152_spill] sm:$0xff] %v11217_v13  ;;  %v13109_v52 = vld [vmem:[#allocation91_spill] sm:$0xff]  ;;  %v11268_v53 = vld [vmem:[#allocation3 + $0x99] sm:$0xff] }
 0x38c   : > { %13097 = vst [vmem:[#allocation153_spill] sm:$0xff] %v11221_v21  ;;  %13099 = vst [vmem:[#allocation154_spill] sm:$0xff] %v11225_v40  ;;  %v11266_v61 = vmul.f32 %v11201_v2, %v13109_v52  ;;  %v11270_v37 = vld [vmem:[#allocation3 + $0xa1] sm:$0xff]  ;;  %v11286_v40 = vld [vmem:[#allocation3 + $0xa9] sm:$0xff] }
 0x38d   : > { %13100 = vst [vmem:[#allocation155_spill] sm:$0xff] %v11237_v14  ;;  %13101 = vst [vmem:[#allocation156_spill] sm:$0xff] %v11239_v18  ;;  %v13113_v39 = vld [vmem:[#allocation90_spill] sm:$0xff]  ;;  %v13115_v31 = vld [vmem:[#allocation95_spill] sm:$0xff] }
 0x38e   : > { %13102 = vst [vmem:[#allocation157_spill] sm:$0xff] %v11241_v15  ;;  %13104 = vst [vmem:[#allocation158_spill] sm:$0xff] %v11245_v1  ;;  %v11276_v9 = vmul.f32 %v11203_v4, %v13113_v39  ;;  %v11280_v27 = vmul.f32 %v11205_v0, %v13115_v31  ;;  %v13117_v22 = vld [vmem:[#allocation94_spill] sm:$0xff]  ;;  %v11288_v11 = vld [vmem:[#allocation3 + $0xb1] sm:$0xff] }
 0x38f   : > { %13106 = vst [vmem:[#allocation159_spill] sm:$0xff] %v11249_v50  ;;  %13107 = vst [vmem:[#allocation160_spill] sm:$0xff] %v11256_v46  ;;  %v11284_v21 = vmul.f32 %v11207_v45, %v13117_v22  ;;  %v11290_v13 = vld [vmem:[#allocation3 + $0xb9] sm:$0xff]  ;;  %v13122_v2 = vld [vmem:[#allocation99_spill] sm:$0xff] }
 0x390   : > { %13108 = vst [vmem:[#allocation161_spill] sm:$0xff] %v11258_v35  ;;  %13110 = vst [vmem:[#allocation162_spill] sm:$0xff] %v11266_v61  ;;  %v11294_v19 = vmul.f32 %v11209_v63, %v13122_v2  ;;  %v13124_v1 = vld [vmem:[#allocation98_spill] sm:$0xff]  ;;  %v13126_v0 = vld [vmem:[#allocation103_spill] sm:$0xff] }
 0x391   : > { %13111 = vst [vmem:[#allocation163_spill] sm:$0xff] %v11268_v53  ;;  %13112 = vst [vmem:[#allocation164_spill] sm:$0xff] %v11270_v37  ;;  %v11298_v50 = vmul.f32 %v11237_v14, %v13124_v1  ;;  %v11302_v31 = vmul.f32 %v11239_v18, %v13126_v0  ;;  %v13128_v45 = vld [vmem:[#allocation102_spill] sm:$0xff]  ;;  %v11310_v39 = vld [vmem:[#allocation3 + $0xc9] sm:$0xff] }
 0x392   : > { %13114 = vst [vmem:[#allocation165_spill] sm:$0xff] %v11276_v9  ;;  %13116 = vst [vmem:[#allocation166_spill] sm:$0xff] %v11280_v27  ;;  %v11306_v4 = vmul.f32 %v11241_v15, %v13128_v45  ;;  %v11308_v22 = vld [vmem:[#allocation3 + $0xc1] sm:$0xff]  ;;  %v11312_v52 = vld [vmem:[#allocation3 + $0xd1] sm:$0xff] }
 0x393   : > { %13118 = vst [vmem:[#allocation167_spill] sm:$0xff] %v11284_v21  ;;  %13119 = vst [vmem:[#allocation168_spill] sm:$0xff] %v11286_v40  ;;  %v13133_v1 = vld [vmem:[#allocation107_spill] sm:$0xff]  ;;  %v13135_v0 = vld [vmem:[#allocation106_spill] sm:$0xff] }
 0x394   : > { %13120 = vst [vmem:[#allocation169_spill] sm:$0xff] %v11288_v11  ;;  %13121 = vst [vmem:[#allocation170_spill] sm:$0xff] %v11290_v13  ;;  %v11320_v18 = vmul.f32 %v11256_v46, %v13133_v1  ;;  %v11324_v15 = vmul.f32 %v11258_v35, %v13135_v0  ;;  %v11326_v45 = vld [vmem:[#allocation3 + $0xd9] sm:$0xff]  ;;  %v11328_v2 = vld [vmem:[#allocation3 + $0xe1] sm:$0xff] }
 0x395   : > { %13123 = vst [vmem:[#allocation171_spill] sm:$0xff] %v11294_v19  ;;  %13125 = vst [vmem:[#allocation172_spill] sm:$0xff] %v11298_v50  ;;  %v11330_v62 = vld [vmem:[#allocation3 + $0xe9] sm:$0xff]  ;;  %v13142_v61 = vld [vmem:[#allocation110_spill] sm:$0xff] }
 0x396   : > { %13127 = vst [vmem:[#allocation173_spill] sm:$0xff] %v11302_v31  ;;  %13129 = vst [vmem:[#allocation174_spill] sm:$0xff] %v11306_v4  ;;  %v13140_v27 = vld [vmem:[#allocation111_spill] sm:$0xff]  ;;  %v11342_v9 = vmul.f32 %v11270_v37, %v13142_v61  ;;  %v9155_v46 = vld [vmem:[%s12421_s5 + $0x28] sm:$0xff]  }
 0x397   : > { %13130 = vst [vmem:[#allocation175_spill] sm:$0xff] %v11308_v22  ;;  %13131 = vst [vmem:[#allocation176_spill] sm:$0xff] %v11310_v39  ;;  %v11338_v21 = vmul.f32 %v11268_v53, %v13140_v27  ;;  %v11347_v35 = vld [vmem:[#allocation3 + $0xf1] sm:$0xff]  ;;  %v13145_v19 = vld [vmem:[#allocation115_spill] sm:$0xff] }
 0x398   : > { %13132 = vst [vmem:[#allocation177_spill] sm:$0xff] %v11312_v52  ;;  %13134 = vst [vmem:[#allocation107_spill] sm:$0xff] %v11320_v18  ;;  %v11353_v14 = vmul.f32 %v11286_v40, %v13145_v19  ;;  %v13147_v31 = vld [vmem:[#allocation114_spill] sm:$0xff]  ;;  %v13149_v50 = vld [vmem:[#allocation119_spill] sm:$0xff] }
 0x399   : > { %13136 = vst [vmem:[#allocation106_spill] sm:$0xff] %v11324_v15  ;;  %13137 = vst [vmem:[#allocation178_spill] sm:$0xff] %v11326_v45  ;;  %v11357_v4 = vmul.f32 %v11288_v11, %v13147_v31  ;;  %v11361_v37 = vmul.f32 %v11290_v13, %v13149_v50  ;;  %v11363_v53 = vld [vmem:[#allocation3 + $0x37] sm:$0xff]  ;;  %v11367_v61 = vld [vmem:[#allocation3 + $0x101] sm:$0xff]  ;;  %v13160_v50 = vpack.c.bf16 %v11107_v58, %v11176_v43 }
 0x39a   : > { %13138 = vst [vmem:[#allocation179_spill] sm:$0xff] %v11328_v2  ;;  %13139 = vst [vmem:[#allocation180_spill] sm:$0xff] %v11330_v62  ;;  %v11365_v27 = vld [vmem:[#allocation3 + $0xf9] sm:$0xff]  ;;  %v13156_v40 = vld [vmem:[#allocation123_spill] sm:$0xff]  ;;  %v13167_v43 = vpack.c.bf16 %v11091_v20, %v11129_v59  ;;  %v3846_v20 = vmul.f32 %v10918_v26, %v12978_v3 }
 0x39b   : > { %13141 = vst [vmem:[#allocation181_spill] sm:$0xff] %v11338_v21  ;;  %13143 = vst [vmem:[#allocation182_spill] sm:$0xff] %v11342_v9  ;;  %v13154_v18 = vld [vmem:[#allocation118_spill] sm:$0xff]  ;;  %v11377_v11 = vmul.f32 %v11310_v39, %v13156_v40  ;;  %8263 = vmatmul.mubr.msk.bf16.vlgmr.msra.gmra.mrb[16].mxu1 %vm3732_vm1, %v13160_v50  ;;  %v13161_v21 = vld [vmem:[#allocation127_spill] sm:$0xff] }
 0x39c   : > { %13144 = vst [vmem:[#allocation183_spill] sm:$0xff] %v11347_v35  ;;  %13146 = vst [vmem:[#allocation115_spill] sm:$0xff] %v11353_v14  ;;  %v11373_v15 = vmul.f32 %v11308_v22, %v13154_v18  ;;  %v13158_v31 = vld [vmem:[#allocation122_spill] sm:$0xff]  ;;  %v11391_v9 = vmul.f32 %v11326_v45, %v13161_v21  ;;  %v13165_v40 = vld [vmem:[#allocation132_spill] sm:$0xff]  ;;  %8295 = vmatpush3.bf16.msra.mxu1 %v10857_v36  ;;  %8266 = vmatprep.mubr.msk.bf16.mxu1 %vm3732_vm1, %v13167_v43 }
 0x39d   : > { %13148 = vst [vmem:[#allocation184_spill] sm:$0xff] %v11357_v4  ;;  %13150 = vst [vmem:[#allocation185_spill] sm:$0xff] %v11361_v37  ;;  %v11381_v13 = vmul.f32 %v11312_v52, %v13158_v31  ;;  %v13163_v22 = vld [vmem:[#allocation126_spill] sm:$0xff]  ;;  %v11399_v52 = vmul.f32 %v11330_v62, %v13165_v40  ;;  %v13168_v63 = vld [vmem:[#allocation131_spill] sm:$0xff]  ;;  %8296 = vmatprep.subr.bf16.mxu1 %v9155_v46  ;;  %v11465_v37 = vmul.f32 %v10975_v32, %v12978_v3 }
 0x39e   : > { %13151 = vst [vmem:[#allocation186_spill] sm:$0xff] %v11363_v53  ;;  %13152 = vst [vmem:[#allocation187_spill] sm:$0xff] %v11365_v27  ;;  %v11395_v39 = vmul.f32 %v11328_v2, %v13163_v22  ;;  %v11412_v14 = vmul.f32 %v11347_v35, %v13168_v63  ;;  %v13170_v4 = vld [vmem:[#allocation49_spill] sm:$0xff]  ;;  %v11419_v36 = vld [vmem:[%s12421_s5 + $0x30] sm:$0xff]   ;;  %v11482_v3 = vmul.f32 %v11008_v28, %v12981_v5 }
 0x39f   : > { %13153 = vst [vmem:[#allocation188_spill] sm:$0xff] %v11367_v61  ;;  %13155 = vst [vmem:[#allocation118_spill] sm:$0xff] %v11373_v15  ;;  %v3842_v62 = vmul.f32 %v11363_v53, %v13170_v4  ;;  %v13171_v59 = vld [vmem:[#allocation134_spill] sm:$0xff]  ;;  %v13173_v50 = vld [vmem:[#allocation133_spill] sm:$0xff]  ;;  %v3872_v15 = vpack.c.bf16 %v11235_v51, %v11254_v6  ;;  %v11455_v51 = vmul.f32 %v10924_v7, %v12976_v38 }
 0x3a0   : > { %13157 = vst [vmem:[#allocation189_spill] sm:$0xff] %v11377_v11  ;;  %13159 = vst [vmem:[#allocation190_spill] sm:$0xff] %v11381_v13  ;;  %v11425_v43 = vmul.f32 %v11365_v27, %v13171_v59  ;;  %v11429_v58 = vmul.f32 %v11367_v61, %v13173_v50  ;;  %8297 = vmatpush3.bf16.msra.mxu1 %v9155_v46  ;;  %v11459_v6 = vmul.f32 %v10940_v48, %v12977_v55  ;;  %v11519_v11 = vld [vmem:[#allocation3 + $0x10f] sm:$0xff] }
 0x3a1   : > { %13162 = vst [vmem:[#allocation191_spill] sm:$0xff] %v11391_v9  ;;  %13164 = vst [vmem:[#allocation192_spill] sm:$0xff] %v11395_v39  ;;  %v3871_v13 = vpack.c.bf16 %v11231_v57, %v3842_v62  ;;  %v3847_v9 = vmul.f32 %v10913_v29, %v12979_v41  ;;  %v3849_v39 = vmul.f32 %v10940_v48, %v12981_v5  ;;  %8330 = vmatprep.subr.bf16.mxu1 %v11419_v36  ;;  %v13206_v61 = vld [vmem:[#allocation71_spill] sm:$0xff] }
 0x3a2   : > { %13166 = vst [vmem:[#allocation193_spill] sm:$0xff] %v11399_v52  ;;  %13169 = vst [vmem:[#allocation194_spill] sm:$0xff] %v11412_v14  ;;  %v11447_v62 = vmul.f32 %v10918_v26, %v13170_v4  ;;  %v11451_v57 = vmul.f32 %v10913_v29, %v12975_v23  ;;  %v3848_v46 = vmul.f32 %v10924_v7, %v12980_v17  ;;  %v13198_v14 = vld [vmem:[#allocation67_spill] sm:$0xff]  ;;  %v13202_v23 = vld [vmem:[#allocation69_spill] sm:$0xff] }
 0x3a3   : > { %13172 = vst [vmem:[#allocation134_spill] sm:$0xff] %v11425_v43  ;;  %13174 = vst [vmem:[#allocation133_spill] sm:$0xff] %v11429_v58  ;;  %v11469_v26 = vmul.f32 %v10966_v42, %v12979_v41  ;;  %v11473_v29 = vmul.f32 %v11002_v30, %v12980_v17  ;;  %8267 = vmatmul.mubr.msk.bf16.gmra.mrb[20].mxu1 %vm3732_vm1, %v3871_v13  ;;  %v11486_v41 = vmul.f32 %v11036_v24, %v12982_v12  ;;  %v11503_v13 = vld [vmem:[#allocation3 + $0x107] sm:$0xff]  ;;  %v13196_v43 = vld [vmem:[#allocation64_spill] sm:$0xff] }
 0x3a4   : > { %13175 = vst [vmem:[#allocation195_spill] sm:$0xff] %v11447_v62  ;;  %13176 = vst [vmem:[#allocation196_spill] sm:$0xff] %v11451_v57  ;;  %8270 = vmatprep.mubr.msk.bf16.mxu1 %vm3732_vm1, %v3872_v15  ;;  %v11493_v7 = vmul.f32 %v11038_v33, %v12983_v8  ;;  %v11497_v48 = vmul.f32 %v11044_v16, %v12984_v44  ;;  %v11501_v5 = vmul.f32 %v11051_v47, %v12985_v10  ;;  %v13197_v58 = vld [vmem:[#allocation53_spill] sm:$0xff]  ;;  %v13200_v15 = vld [vmem:[#allocation66_spill] sm:$0xff] }
 0x3a5   : > { %13177 = vst [vmem:[#allocation197_spill] sm:$0xff] %v11455_v51  ;;  %13178 = vst [vmem:[#allocation198_spill] sm:$0xff] %v11459_v6  ;;  %v11509_v17 = vmul.f32 %v11064_v60, %v12986_v49  ;;  %v11513_v55 = vmul.f32 %v11066_v54, %v12987_v56  ;;  %v11517_v38 = vmul.f32 %v11069_v25, %v12988_v34  ;;  %v13194_v51 = vld [vmem:[#allocation65_spill] sm:$0xff]  ;;  %v13195_v6 = vld [vmem:[#allocation51_spill] sm:$0xff] }
 0x3a6   : > { %13179 = vst [vmem:[#allocation199_spill] sm:$0xff] %v11465_v37  ;;  %13180 = vst [vmem:[#allocation200_spill] sm:$0xff] %v11469_v26  ;;  %v11531_v62 = vmul.f32 %v13195_v6, %v13194_v51  ;;  %v11537_v52 = vmul.f32 %v13197_v58, %v13196_v43  ;;  %v13199_v37 = vld [vmem:[#allocation52_spill] sm:$0xff]  ;;  %v11559_v27 = vmul.f32 %v11503_v13, %v13206_v61 }
 0x3a7   : > { %13181 = vst [vmem:[#allocation201_spill] sm:$0xff] %v11473_v29  ;;  %13182 = vst [vmem:[#allocation202_spill] sm:$0xff] %v11482_v3  ;;  %v13191_v29 = vld [vmem:[#allocation62_spill] sm:$0xff]  ;;  %v13203_v4 = vld [vmem:[#allocation140_spill] sm:$0xff]  ;;  %v3873_v35 = vpack.c.bf16 %v3847_v9, %v3846_v20  ;;  %v3851_v9 = vmul.f32 %v10966_v42, %v12983_v8  ;;  %v3852_v20 = vmul.f32 %v11002_v30, %v12984_v44 }
 0x3a8   : > { %13183 = vst [vmem:[#allocation203_spill] sm:$0xff] %v11486_v41  ;;  %13184 = vst [vmem:[#allocation204_spill] sm:$0xff] %v11493_v7  ;;  %v13192_v3 = vld [vmem:[#allocation42_spill] sm:$0xff]  ;;  %v11541_v41 = vmul.f32 %v13199_v37, %v13198_v14  ;;  %v11551_v53 = vmul.f32 %v13203_v4, %v13202_v23  ;;  %v13204_v57 = vld [vmem:[#allocation68_spill] sm:$0xff]  ;;  %v3853_v63 = vmul.f32 %v11008_v28, %v12985_v10 }
 0x3a9   : > { %13185 = vst [vmem:[#allocation205_spill] sm:$0xff] %v11497_v48  ;;  %13186 = vst [vmem:[#allocation206_spill] sm:$0xff] %v11501_v5  ;;  %v11527_v26 = vmul.f32 %v13192_v3, %v13191_v29  ;;  %v13201_v48 = vld [vmem:[#allocation55_spill] sm:$0xff]  ;;  %v13207_v7 = vld [vmem:[#allocation70_spill] sm:$0xff]  ;;  %v3855_v8 = vmul.f32 %v11038_v33, %v12987_v56  ;;  %v3856_v44 = vmul.f32 %v11044_v16, %v12988_v34 }
 0x3aa   : > { %13187 = vst [vmem:[#allocation207_spill] sm:$0xff] %v11503_v13  ;;  %13188 = vst [vmem:[#allocation208_spill] sm:$0xff] %v11509_v17  ;;  %v11545_v5 = vmul.f32 %v13201_v48, %v13200_v15  ;;  %v13205_v17 = vld [vmem:[#allocation143_spill] sm:$0xff]  ;;  %v3876_v45 = vpack.c.bf16 %v3853_v63, %v3852_v20  ;;  %v11589_v42 = vld [vmem:[#allocation3 + $0x111] sm:$0xff]  ;;  %v3857_v10 = vmul.f32 %v11051_v47, %v13191_v29 }
 0x3ab   : > { %13189 = vst [vmem:[#allocation209_spill] sm:$0xff] %v11513_v55  ;;  %13190 = vst [vmem:[#allocation210_spill] sm:$0xff] %v11517_v38  ;;  %v11555_v55 = vmul.f32 %v13205_v17, %v13204_v57  ;;  %v11567_v38 = vmul.f32 %v11519_v11, %v13207_v7  ;;  %8271 = vmatmul.mubr.msk.bf16.gmra.mrb[24].mxu1 %vm3732_vm1, %v3873_v35  ;;  %v11585_v35 = vld [vmem:[#allocation3 + $0x109] sm:$0xff]  ;;  %v3860_v34 = vmul.f32 %v11069_v25, %v13198_v14 }
 0x3ac   : > { %13193 = vst [vmem:[#allocation62_spill] sm:$0xff] %v11527_v26  ;;  %v3874_v26 = vpack.c.bf16 %v3849_v39, %v3848_v46  ;;  %v3850_v39 = vmul.f32 %v10975_v32, %v12982_v12  ;;  %v3854_v12 = vmul.f32 %v11036_v24, %v12986_v49  ;;  %v11599_v32 = vmul.f32 %v11585_v35, %v13171_v59  ;;  %v13273_v13 = vld [vmem:[#allocation47_spill] sm:$0xff] }
 0x3ad   : > { %v3878_v30 = vpack.c.bf16 %v3857_v10, %v3856_v44  ;;  %v3859_v49 = vmul.f32 %v11066_v54, %v13196_v43  ;;  %v3861_v24 = vmul.f32 %v13192_v3, %v13200_v15  ;;  %v3858_v33 = vmul.f32 %v11064_v60, %v13194_v51  ;;  %v4384_v51 = vld [vmem:[#allocation3 + $0x11] sm:$0xff] }
 0x3ae   : > { %8274 = vmatprep.mubr.msk.bf16.mxu1 %vm3732_vm1, %v3874_v26  ;;  %v3875_v46 = vpack.c.bf16 %v3851_v9, %v3850_v39  ;;  %13208 = vst [vmem:[#allocation42_spill] sm:$0xff] %v11599_v32  ;;  %v3877_v56 = vpack.c.bf16 %v3855_v8, %v3854_v12  ;;  %v3863_v63 = vmul.f32 %v13197_v58, %v13204_v57  ;;  %v13210_v26 = vld [vmem:[#allocation74_spill] sm:$0xff]  ;;  %v4383_v58 = vld [vmem:[#allocation3 + $0x9] sm:$0xff]  ;;  %v13215_v9 = vld [vmem:[#allocation57_spill] sm:$0xff] }
 0x3af   : > { %v3879_v16 = vpack.c.bf16 %v3859_v49, %v3858_v33  ;;  %v3880_v47 = vpack.c.bf16 %v3861_v24, %v3860_v34  ;;  %v3864_v54 = vmul.f32 %v13199_v37, %v13206_v61  ;;  %v3865_v25 = vmul.f32 %v13201_v48, %v13207_v7  ;;  %v13211_v57 = vld [vmem:[#allocation76_spill] sm:$0xff]  ;;  %v13212_v61 = vld [vmem:[#allocation75_spill] sm:$0xff]  ;;  %v13213_v7 = vld [vmem:[#allocation77_spill] sm:$0xff] }
 0x3b0   : > { %v3862_v14 = vmul.f32 %v13195_v6, %v13202_v23  ;;  %v3867_v29 = vmul.f32 %v13205_v17, %v13210_v26  ;;  %v4416_v3 = vmul.f32 %v4384_v51, %v13211_v57  ;;  %v3866_v37 = vmul.f32 %v13203_v4, %v13212_v61  ;;  %v13214_v6 = vld [vmem:[#allocation81_spill] sm:$0xff]  ;;  %v13216_v39 = vld [vmem:[#allocation80_spill] sm:$0xff]  ;;  %v13218_v8 = vld [vmem:[#allocation86_spill] sm:$0xff] }
 0x3b1   : > { %v3882_v60 = vpack.c.bf16 %v3865_v25, %v3864_v54  ;;  %v4415_v48 = vmul.f32 %v4383_v58, %v13213_v7  ;;  %v4417_v20 = vmul.f32 %v13215_v9, %v13214_v6  ;;  %v13219_v44 = vld [vmem:[#allocation137_spill] sm:$0xff]  ;;  %v13220_v12 = vld [vmem:[#allocation87_spill] sm:$0xff]  ;;  %v9158_v25 = vld [vmem:[%s12421_s5 + $0x40] sm:$0xff]  }
 0x3b2   : > { %v3881_v43 = vpack.c.bf16 %v3863_v63, %v3862_v14  ;;  %v3883_v15 = vpack.c.bf16 %v3867_v29, %v3866_v37  ;;  %v4420_v10 = vmul.f32 %v13219_v44, %v13218_v8  ;;  %v9157_v49 = vld [vmem:[%s12421_s5 + $0x38] sm:$0xff]   ;;  %v13223_v33 = vld [vmem:[#allocation141_spill] sm:$0xff]  ;;  %v13225_v63 = vld [vmem:[#allocation142_spill] sm:$0xff] }
 0x3b3   : > { %8275 = vmatmul.mubr.msk.bf16.gmra.mrb[28].mxu1 %vm3732_vm1, %v3875_v46  ;;  %v4447_v23 = vpack.c.bf16 %v4416_v3, %v4415_v48  ;;  %v13217_v46 = vld [vmem:[#allocation56_spill] sm:$0xff]  ;;  %v13222_v24 = vld [vmem:[#allocation91_spill] sm:$0xff]  ;;  %v13226_v14 = vld [vmem:[#allocation94_spill] sm:$0xff] }
 0x3b4   : > { %8278 = vmatprep.mubr.msk.bf16.mxu1 %vm3732_vm1, %v3876_v45  ;;  %v11603_v45 = vmul.f32 %v11589_v42, %v13173_v50  ;;  %v4418_v17 = vmul.f32 %v13217_v46, %v13216_v39  ;;  %v13228_v51 = vld [vmem:[#allocation95_spill] sm:$0xff]  ;;  %v13229_v29 = vld [vmem:[#allocation146_spill] sm:$0xff]  ;;  %v13231_v48 = vld [vmem:[#allocation148_spill] sm:$0xff] }
 0x3b5   : > { %v4423_v58 = vmul.f32 %v13229_v29, %v13228_v51  ;;  %v13230_v37 = vld [vmem:[#allocation99_spill] sm:$0xff]  ;;  %v13233_v9 = vld [vmem:[#allocation149_spill] sm:$0xff]  ;;  %v13234_v46 = vld [vmem:[#allocation102_spill] sm:$0xff] }
 0x3b6   : > { %13209 = vst [vmem:[#allocation65_spill] sm:$0xff] %v11603_v45  ;;  %v13242_v29 = vld [vmem:[#allocation111_spill] sm:$0xff]  ;;  %v13277_v32 = vld [vmem:[#allocation48_spill] sm:$0xff]  ;;  %v13278_v45 = vld [vmem:[#allocation129_spill] sm:$0xff] }
 0x3bb   : > { %8279 = vmatmul.mubr.msk.bf16.gmra.mrb[32].mxu1 %vm3732_vm1, %v3877_v56  ;;  %v13221_v56 = vld [vmem:[#allocation73_spill] sm:$0xff] }
 0x3bc   : > { %8282 = vmatprep.mubr.msk.bf16.mxu1 %vm3732_vm1, %v3878_v30  ;;  %v4419_v4 = vmul.f32 %v13221_v56, %v13220_v12  ;;  %v4448_v30 = vpack.c.bf16 %v4418_v17, %v4417_v20  ;;  %v13235_v17 = vld [vmem:[#allocation155_spill] sm:$0xff]  ;;  %v13237_v56 = vld [vmem:[#allocation150_spill] sm:$0xff] }
 0x3bd   : > { %v4428_v44 = vmul.f32 %v13235_v17, %v13234_v46  ;;  %v13246_v17 = vld [vmem:[#allocation164_spill] sm:$0xff] }
 0x3be   : > { %v4449_v34 = vpack.c.bf16 %v4420_v10, %v4419_v4  ;;  %v13236_v10 = vld [vmem:[#allocation103_spill] sm:$0xff] }
 0x3bf   : > { %v4427_v4 = vmul.f32 %v13237_v56, %v13236_v10  ;;  %v13247_v56 = vld [vmem:[#allocation169_spill] sm:$0xff] }
 0x3c3   : > { %8283 = vmatmul.mubr.msk.bf16.gmra.mrb[36].mxu1 %vm3732_vm1, %v3879_v16  ;;  %v4421_v16 = vmul.f32 %v13223_v33, %v13222_v24 }
 0x3c4   : > { %8286 = vmatprep.mubr.msk.bf16.mxu1 %vm3732_vm1, %v3880_v47  ;;  %v13224_v47 = vld [vmem:[#allocation90_spill] sm:$0xff] }
 0x3c5   : > { %v4422_v54 = vmul.f32 %v13225_v63, %v13224_v47 }
 0x3cb   : > { %8287 = vmatmul.mubr.msk.bf16.gmra.mrb[40].mxu1 %vm3732_vm1, %v3881_v43  ;;  %v13227_v43 = vld [vmem:[#allocation147_spill] sm:$0xff] }
 0x3cc   : > { %8290 = vmatprep.mubr.msk.bf16.mxu1 %vm3732_vm1, %v3882_v60  ;;  %v4424_v60 = vmul.f32 %v13227_v43, %v13226_v14  ;;  %v13241_v43 = vld [vmem:[#allocation161_spill] sm:$0xff] }
 0x3ce   : > { %v4451_v3 = vpack.c.bf16 %v4424_v60, %v4423_v58  ;;  %v13243_v58 = vld [vmem:[#allocation160_spill] sm:$0xff] }
 0x3d3   : > { %8291 = vmatmul.mubr.msk.bf16.gmra.mrb[44].mxu1 %vm3732_vm1, %v3883_v15  ;;  %v4425_v15 = vmul.f32 %v13231_v48, %v13230_v37 }
 0x3d4   : > { %8298 = vmatprep.mubr.msk.bf16.mxu1 %vm3732_vm1, %v4447_v23  ;;  %v13232_v23 = vld [vmem:[#allocation98_spill] sm:$0xff] }
 0x3d5   : > { %v4426_v20 = vmul.f32 %v13233_v9, %v13232_v23 }
 0x3db   : > { %8299 = vmatmul.mubr.msk.bf16.vlgmr.msra.gmra.mrb[16].mxu1 %vm3732_vm1, %v4448_v30  ;;  %v4452_v30 = vpack.c.bf16 %v4426_v20, %v4425_v15  ;;  %v13244_v15 = vld [vmem:[#allocation163_spill] sm:$0xff]  ;;  %v13245_v20 = vld [vmem:[#allocation114_spill] sm:$0xff] }
 0x3dc   : > { %8331 = vmatpush3.bf16.msra.mxu1 %v11419_v36  ;;  %8302 = vmatprep.mubr.msk.bf16.mxu1 %vm3732_vm1, %v4449_v34  ;;  %v4450_v36 = vpack.c.bf16 %v4422_v54, %v4421_v16  ;;  %v13238_v34 = vld [vmem:[#allocation156_spill] sm:$0xff]  ;;  %v13239_v16 = vld [vmem:[#allocation157_spill] sm:$0xff]  ;;  %v13240_v54 = vld [vmem:[#allocation110_spill] sm:$0xff]  ;;  %v4433_v9 = vmul.f32 %v13244_v15, %v13145_v19 }
 0x3dd   : > { %8332 = vmatprep.subr.bf16.mxu1 %v9157_v49  ;;  %v4429_v33 = vmul.f32 %v13238_v34, %v13133_v1  ;;  %v4430_v63 = vmul.f32 %v13239_v16, %v13135_v0  ;;  %v4432_v60 = vmul.f32 %v13241_v43, %v13240_v54  ;;  %v13254_v15 = vld [vmem:[#allocation176_spill] sm:$0xff] }
 0x3e0   : > { %8333 = vmatpush3.bf16.msra.mxu1 %v9157_v49  ;;  %v4453_v49 = vpack.c.bf16 %v4428_v44, %v4427_v4  ;;  %v4434_v44 = vmul.f32 %v13246_v17, %v13245_v20  ;;  %v4436_v4 = vmul.f32 %v13247_v56, %v13154_v18  ;;  %v4439_v17 = vmul.f32 %v13254_v15, %v13161_v21 }
 0x3e1   : > { %8366 = vmatprep.subr.bf16.mxu1 %v9158_v25 }
 0x3e2   : > { %v4456_v16 = vpack.c.bf16 %v4434_v44, %v4433_v9  ;;  %v13255_v9 = vld [vmem:[#allocation178_spill] sm:$0xff] }
 0x3e3   : > { %8303 = vmatmul.mubr.msk.bf16.gmra.mrb[20].mxu1 %vm3732_vm1, %v4450_v36  ;;  %v4431_v36 = vmul.f32 %v13243_v58, %v13242_v29  ;;  %v13252_v58 = vld [vmem:[#allocation175_spill] sm:$0xff]  ;;  %v4441_v44 = vmul.f32 %v13255_v9, %v13165_v40  ;;  %v13286_v40 = vld [vmem:[#allocation108_spill] sm:$0xff] }
 0x3e4   : > { %8306 = vmatprep.mubr.msk.bf16.mxu1 %vm3732_vm1, %v4451_v3  ;;  %v4454_v3 = vpack.c.bf16 %v4430_v63, %v4429_v33  ;;  %v13250_v33 = vld [vmem:[#allocation123_spill] sm:$0xff]  ;;  %v13251_v63 = vld [vmem:[#allocation170_spill] sm:$0xff] }
 0x3e5   : > { %v4455_v48 = vpack.c.bf16 %v4432_v60, %v4431_v36  ;;  %v4437_v60 = vmul.f32 %v13251_v63, %v13250_v33  ;;  %v4438_v36 = vmul.f32 %v13252_v58, %v13158_v31  ;;  %v13259_v58 = vld [vmem:[#allocation180_spill] sm:$0xff]  ;;  %v13348_v31 = vld [vmem:[#allocation107_spill] sm:$0xff] }
 0x3e7   : > { %v4458_v56 = vpack.c.bf16 %v4438_v36, %v4437_v60  ;;  %v13260_v60 = vld [vmem:[#allocation136_spill] sm:$0xff]  ;;  %v13261_v36 = vld [vmem:[#allocation187_spill] sm:$0xff] }
 0x3eb   : > { %8307 = vmatmul.mubr.msk.bf16.gmra.mrb[24].mxu1 %vm3732_vm1, %v4452_v30  ;;  %v13248_v30 = vld [vmem:[#allocation119_spill] sm:$0xff] }
 0x3ec   : > { %8310 = vmatprep.mubr.msk.bf16.mxu1 %vm3732_vm1, %v4453_v49  ;;  %v13249_v49 = vld [vmem:[#allocation168_spill] sm:$0xff] }
 0x3ed   : > { %v4435_v34 = vmul.f32 %v13249_v49, %v13248_v30 }
 0x3ef   : > { %v4457_v43 = vpack.c.bf16 %v4436_v4, %v4435_v34  ;;  %v13256_v4 = vld [vmem:[#allocation131_spill] sm:$0xff]  ;;  %v13257_v34 = vmov %v11328_v2  ;;  %v13274_v2 = vld [vmem:[#allocation186_spill] sm:$0xff] }
 0x3f3   : > { %8311 = vmatmul.mubr.msk.bf16.gmra.mrb[28].mxu1 %vm3732_vm1, %v4454_v3  ;;  %v13253_v3 = vld [vmem:[#allocation177_spill] sm:$0xff] }
 0x3f4   : > { %8314 = vmatprep.mubr.msk.bf16.mxu1 %vm3732_vm1, %v4455_v48  ;;  %v4440_v48 = vmul.f32 %v13253_v3, %v13163_v22  ;;  %v4443_v3 = vmul.f32 %v13259_v58, %v13171_v59  ;;  %v13267_v59 = vld [vmem:[#allocation40_spill] sm:$0xff] }
 0x3f5   : > { %v13292_v22 = vld [vmem:[#allocation120_spill] sm:$0xff] }
 0x3f6   : > { %v4459_v49 = vpack.c.bf16 %v4440_v48, %v4439_v17  ;;  %v4445_v48 = vmul.f32 %v13261_v36, %v13260_v60  ;;  %v13262_v17 = vld [vmem:[#allocation135_spill] sm:$0xff] }
 0x3fb   : > { %8315 = vmatmul.mubr.msk.bf16.gmra.mrb[32].mxu1 %vm3732_vm1, %v4456_v16  ;;  %v4442_v16 = vmul.f32 %v13257_v34, %v13256_v4  ;;  %v13264_v34 = vld [vmem:[#allocation78_spill] sm:$0xff]  ;;  %v4760_v4 = vmul.f32 %v13278_v45, %v13277_v32  ;;  %v13285_v32 = vld [vmem:[#allocation104_spill] sm:$0xff] }
 0x3fc   : > { %8318 = vmatprep.mubr.msk.bf16.mxu1 %vm3732_vm1, %v4457_v43  ;;  %v13258_v43 = vld [vmem:[#allocation183_spill] sm:$0xff]  ;;  %v13287_v21 = vpack.c.bf16 %v13285_v32, %v13286_v40  ;;  %v13301_v32 = vld [vmem:[#allocation61_spill] sm:$0xff] }
 0x3fd   : > { %v4444_v63 = vmul.f32 %v13258_v43, %v13173_v50  ;;  %v4460_v28 = vpack.c.bf16 %v4442_v16, %v4441_v44  ;;  %v13265_v50 = vld [vmem:[#allocation79_spill] sm:$0xff]  ;;  %v13268_v44 = vld [vmem:[#allocation124_spill] sm:$0xff] }
 0x3fe   : > { %v13266_v43 = vpack.c.bf16 %v13264_v34, %v13265_v50  ;;  %v4755_v16 = vmul.f32 %v13268_v44, %v13267_v59  ;;  %v13275_v34 = vld [vmem:[#allocation49_spill] sm:$0xff] }
 0x3ff   : > { %v4461_v15 = vpack.c.bf16 %v4444_v63, %v4443_v3  ;;  %v13270_v63 = vld [vmem:[#allocation121_spill] sm:$0xff]  ;;  %v13271_v3 = vld [vmem:[#allocation46_spill] sm:$0xff] }
 0x400   : > { %v13276_v50 = vld [vmem:[#allocation145_spill] sm:$0xff] }
 0x403   : > { %8319 = vmatmul.mubr.msk.bf16.gmra.mrb[36].mxu1 %vm3732_vm1, %v4458_v56  ;;  %v13263_v56 = vld [vmem:[#allocation188_spill] sm:$0xff] }
 0x404   : > { %8322 = vmatprep.mubr.msk.bf16.mxu1 %vm3732_vm1, %v4459_v49  ;;  %v4446_v49 = vmul.f32 %v13263_v56, %v13262_v17  ;;  %v4757_v56 = vmul.f32 %v13274_v2, %v13273_v13 }
 0x406   : > { %v4462_v9 = vpack.c.bf16 %v4446_v49, %v4445_v48  ;;  %v9159_v49 = vld [vmem:[%s12421_s5 + $0x48] sm:$0xff]  }
 0x40b   : > { %8323 = vmatmul.mubr.msk.bf16.gmra.mrb[40].mxu1 %vm3732_vm1, %v4460_v28  ;;  %v13269_v28 = vld [vmem:[#allocation43_spill] sm:$0xff] }
 0x40c   : > { %8326 = vmatprep.mubr.msk.bf16.mxu1 %vm3732_vm1, %v4461_v15  ;;  %v4756_v58 = vmul.f32 %v13270_v63, %v13269_v28  ;;  %v13272_v15 = vld [vmem:[#allocation130_spill] sm:$0xff] }
 0x40d   : > { %v4758_v36 = vmul.f32 %v13272_v15, %v13271_v3 }
 0x40e   : > { %v4786_v48 = vpack.c.bf16 %v4756_v58, %v4755_v16  ;;  %v9160_v16 = vld [vmem:[%s12421_s5 + $0x50] sm:$0xff]  }
 0x413   : > { %8327 = vmatmul.mubr.msk.bf16.gmra.mrb[44].mxu1 %vm3732_vm1, %v4462_v9  ;;  %v4787_v9 = vpack.c.bf16 %v4758_v36, %v4757_v56  ;;  %v13279_v36 = vld [vmem:[#allocation92_spill] sm:$0xff] }
 0x414   : > { %8334 = vmatprep.mubr.msk.bf16.mxu1 %vm3732_vm1, %v13266_v43  ;;  %v4759_v43 = vmul.f32 %v13276_v50, %v13275_v34 }
 0x416   : > { %v4788_v58 = vpack.c.bf16 %v4760_v4, %v4759_v43  ;;  %v13289_v4 = vld [vmem:[#allocation113_spill] sm:$0xff] }
 0x41b   : > { %8335 = vmatmul.mubr.msk.bf16.vlgmr.msra.gmra.mrb[16].mxu1 %vm3732_vm1, %v4786_v48  ;;  %v13282_v48 = vld [vmem:[#allocation100_spill] sm:$0xff] }
 0x41c   : > { %8367 = vmatpush3.bf16.msra.mxu1 %v9158_v25  ;;  %8338 = vmatprep.mubr.msk.bf16.mxu1 %vm3732_vm1, %v4787_v9  ;;  %v13280_v25 = vld [vmem:[#allocation96_spill] sm:$0xff]  ;;  %v13283_v9 = vld [vmem:[#allocation101_spill] sm:$0xff] }
 0x41d   : > { %8368 = vmatprep.subr.bf16.mxu1 %v9159_v49  ;;  %v13281_v56 = vpack.c.bf16 %v13279_v36, %v13280_v25  ;;  %v13284_v34 = vpack.c.bf16 %v13282_v48, %v13283_v9  ;;  %v13294_v25 = vld [vmem:[#allocation54_spill] sm:$0xff] }
 0x41e   : > { %v13297_v9 = vld [vmem:[#allocation58_spill] sm:$0xff] }
 0x420   : > { %8369 = vmatpush3.bf16.msra.mxu1 %v9159_v49  ;;  %v13288_v49 = vld [vmem:[#allocation117_spill] sm:$0xff] }
 0x421   : > { %8402 = vmatprep.subr.bf16.mxu1 %v9160_v16  ;;  %v13290_v43 = vpack.c.bf16 %v13288_v49, %v13289_v4  ;;  %v13303_v4 = vld [vmem:[#allocation72_spill] sm:$0xff] }
 0x423   : > { %8339 = vmatmul.mubr.msk.bf16.gmra.mrb[20].mxu1 %vm3732_vm1, %v4788_v58  ;;  %v13291_v58 = vld [vmem:[#allocation125_spill] sm:$0xff] }
 0x424   : > { %8342 = vmatprep.mubr.msk.bf16.mxu1 %vm3732_vm1, %v13281_v56  ;;  %v13293_v36 = vpack.c.bf16 %v13291_v58, %v13292_v22  ;;  %v13295_v56 = vld [vmem:[#allocation128_spill] sm:$0xff]  ;;  %v13306_v58 = vld [vmem:[#allocation85_spill] sm:$0xff] }
 0x425   : > { %v13296_v48 = vpack.c.bf16 %v13294_v25, %v13295_v56  ;;  %v13309_v56 = vld [vmem:[#allocation152_spill] sm:$0xff] }
 0x42b   : > { %8343 = vmatmul.mubr.msk.bf16.gmra.mrb[24].mxu1 %vm3732_vm1, %v13284_v34  ;;  %v13298_v34 = vld [vmem:[#allocation59_spill] sm:$0xff] }
 0x42c   : > { %8346 = vmatprep.mubr.msk.bf16.mxu1 %vm3732_vm1, %v13287_v21  ;;  %v13299_v40 = vpack.c.bf16 %v13297_v9, %v13298_v34  ;;  %v13300_v21 = vld [vmem:[#allocation60_spill] sm:$0xff]  ;;  %v13312_v34 = vld [vmem:[#allocation207_spill] sm:$0xff] }
 0x42d   : > { %v13302_v49 = vpack.c.bf16 %v13300_v21, %v13301_v32  ;;  %v4784_v21 = vmul.f32 %v11519_v11, %v13210_v26  ;;  %v5060_v32 = vld [vmem:[#allocation3 + $0x20] sm:$0xff] }
 0x42e   : > { %v13313_v11 = vld [vmem:[#allocation82_spill] sm:$0xff] }
 0x433   : > { %8347 = vmatmul.mubr.msk.bf16.gmra.mrb[28].mxu1 %vm3732_vm1, %v13290_v43  ;;  %v13304_v43 = vld [vmem:[#allocation63_spill] sm:$0xff] }
 0x434   : > { %8350 = vmatprep.mubr.msk.bf16.mxu1 %vm3732_vm1, %v13293_v36  ;;  %v13305_v22 = vpack.c.bf16 %v13303_v4, %v13304_v43  ;;  %v13307_v36 = vld [vmem:[#allocation83_spill] sm:$0xff]  ;;  %v5059_v4 = vld [vmem:[#allocation3 + $0x18] sm:$0xff] }
 0x435   : > { %v13308_v25 = vpack.c.bf16 %v13306_v58, %v13307_v36  ;;  %v5091_v43 = vpack.c.bf16 %v5060_v32, %v5059_v4  ;;  %v5061_v58 = vld [vmem:[#allocation3 + $0x28] sm:$0xff]  ;;  %v13320_v32 = vld [vmem:[#allocation109_spill] sm:$0xff]  ;;  %v13322_v4 = vld [vmem:[#allocation116_spill] sm:$0xff] }
 0x43b   : > { %8351 = vmatmul.mubr.msk.bf16.gmra.mrb[32].mxu1 %vm3732_vm1, %v13296_v48  ;;  %v13310_v48 = vld [vmem:[#allocation151_spill] sm:$0xff] }
 0x43c   : > { %8354 = vmatprep.mubr.msk.bf16.mxu1 %vm3732_vm1, %v13299_v40  ;;  %v13311_v9 = vpack.c.bf16 %v13309_v56, %v13310_v48  ;;  %v4783_v40 = vmul.f32 %v13312_v34, %v13212_v61  ;;  %v9162_v56 = vld [vmem:[%s12421_s5 + $0x60] sm:$0xff]  }
 0x43d   : > { %v13314_v48 = vld [vmem:[#allocation84_spill] sm:$0xff] }
 0x43e   : > { %v13316_v34 = vld [vmem:[#allocation88_spill] sm:$0xff] }
 0x443   : > { %8355 = vmatmul.mubr.msk.bf16.gmra.mrb[36].mxu1 %vm3732_vm1, %v13302_v49  ;;  %v4800_v49 = vpack.c.bf16 %v4784_v21, %v4783_v40  ;;  %v13318_v40 = vld [vmem:[#allocation97_spill] sm:$0xff] }
 0x444   : > { %8358 = vmatprep.mubr.msk.bf16.mxu1 %vm3732_vm1, %v13305_v22  ;;  %v5062_v22 = vld [vmem:[#allocation3 + $0x30] sm:$0xff]  ;;  %v13319_v21 = vld [vmem:[#allocation105_spill] sm:$0xff] }
 0x445   : > { %v11794_v36 = vpack.c.bf16 %v5062_v22, %v5061_v58  ;;  %v13324_v22 = vld [vmem:[#allocation50_spill] sm:$0xff]  ;;  %v13325_v58 = vld [vmem:[#allocation144_spill] sm:$0xff] }
 0x44b   : > { %8359 = vmatmul.mubr.msk.bf16.gmra.mrb[40].mxu1 %vm3732_vm1, %v13308_v25  ;;  %v9161_v25 = vld [vmem:[%s12421_s5 + $0x58] sm:$0xff]  }
 0x44c   : > { %8362 = vmatprep.mubr.msk.bf16.mxu1 %vm3732_vm1, %v13311_v9  ;;  %v13315_v9 = vld [vmem:[#allocation89_spill] sm:$0xff] }
 0x453   : > { %8363 = vmatmul.mubr.msk.bf16.gmra.mrb[44].mxu1 %vm3732_vm1, %v4800_v49  ;;  %v13321_v49 = vld [vmem:[#allocation112_spill] sm:$0xff] }
 0x454   : > { %8370 = vmatprep.mubr.msk.bf16.mxu1 %vm3732_vm1, %v5091_v43  ;;  %v13323_v43 = vld [vmem:[#allocation45_spill] sm:$0xff] }
 0x45b   : > { %8371 = vmatmul.mubr.msk.bf16.vlgmr.msra.gmra.mrb[16].mxu1 %vm3732_vm1, %v11794_v36 }
 0x45c   : > { %8403 = vmatpush3.bf16.msra.mxu1 %v9160_v16  ;;  %8374 = vmatprep.mubr.msk.bf16.mxu1 %vm3732_vm1, %v13313_v11  ;;  %v13317_v16 = vld [vmem:[#allocation93_spill] sm:$0xff]  ;;  %v5089_v11 = vld [vmem:[#allocation3 + $0x108] sm:$0xff] }
 0x45d   : > { %8404 = vmatprep.subr.bf16.mxu1 %v9161_v25 }
 0x460   : > { %8405 = vmatpush3.bf16.msra.mxu1 %v9161_v25  ;;  %v5090_v25 = vld [vmem:[#allocation3 + $0x110] sm:$0xff] }
 0x461   : > { %8438 = vmatprep.subr.bf16.mxu1 %v9162_v56 }
 0x463   : > { %8375 = vmatmul.mubr.msk.bf16.gmra.mrb[20].mxu1 %vm3732_vm1, %v13314_v48  ;;  %v11830_v48 = vpack.c.bf16 %v5090_v25, %v5089_v11  ;;  %v9164_v25 = vld [vmem:[%s12421_s5 + $0x70] sm:$0xff]  }
 0x464   : > { %8378 = vmatprep.mubr.msk.bf16.mxu1 %vm3732_vm1, %v13315_v9  ;;  %v13326_v9 = vld [vmem:[#allocation139_spill] sm:$0xff] }
 0x46b   : > { %8379 = vmatmul.mubr.msk.bf16.gmra.mrb[24].mxu1 %vm3732_vm1, %v13316_v34  ;;  %v13327_v34 = vld [vmem:[#allocation138_spill] sm:$0xff] }
 0x46c   : > { %8382 = vmatprep.mubr.msk.bf16.mxu1 %vm3732_vm1, %v13317_v16  ;;  %v13328_v16 = vpack.c.bf16 %v13326_v9, %v13327_v34  ;;  %v13336_v9 = vld [vmem:[#allocation162_spill] sm:$0xff] }
 0x473   : > { %8383 = vmatmul.mubr.msk.bf16.gmra.mrb[28].mxu1 %vm3732_vm1, %v13318_v40  ;;  %v9163_v40 = vld [vmem:[%s12421_s5 + $0x68] sm:$0xff]  }
 0x474   : > { %8386 = vmatprep.mubr.msk.bf16.mxu1 %vm3732_vm1, %v13319_v21  ;;  %v13329_v21 = vld [vmem:[#allocation154_spill] sm:$0xff] }
 0x47b   : > { %8387 = vmatmul.mubr.msk.bf16.gmra.mrb[32].mxu1 %vm3732_vm1, %v13320_v32  ;;  %v13330_v32 = vld [vmem:[#allocation153_spill] sm:$0xff] }
 0x47c   : > { %8390 = vmatprep.mubr.msk.bf16.mxu1 %vm3732_vm1, %v13321_v49  ;;  %v13331_v49 = vpack.c.bf16 %v13329_v21, %v13330_v32  ;;  %v13339_v21 = vld [vmem:[#allocation166_spill] sm:$0xff] }
 0x483   : > { %8391 = vmatmul.mubr.msk.bf16.gmra.mrb[36].mxu1 %vm3732_vm1, %v13322_v4  ;;  %v13332_v4 = vld [vmem:[#allocation159_spill] sm:$0xff] }
 0x484   : > { %8394 = vmatprep.mubr.msk.bf16.mxu1 %vm3732_vm1, %v13323_v43  ;;  %v13333_v43 = vld [vmem:[#allocation158_spill] sm:$0xff] }
 0x48b   : > { %8395 = vmatmul.mubr.msk.bf16.gmra.mrb[40].mxu1 %vm3732_vm1, %v13324_v22  ;;  %v13334_v22 = vpack.c.bf16 %v13332_v4, %v13333_v43  ;;  %v13342_v4 = vld [vmem:[#allocation171_spill] sm:$0xff] }
 0x48c   : > { %8398 = vmatprep.mubr.msk.bf16.mxu1 %vm3732_vm1, %v13325_v58  ;;  %v6811_v58 = vld [vmem:[%s12424_s8] sm:$0x3] }
 0x48d   : > { %9104 = vmatprep.subr.msk.bf16.mxu0 %vm867_vm2, %v6811_v58  ;;  %v6868_v11 = vsel %vm867_vm2, %v6811_v58, 0  ;;  %v13345_v58 = vld [vmem:[#allocation173_spill] sm:$0xff] }
 0x48e   : > { %8547 = vmatpush3.bf16.msra.mxu0 %v6868_v11 }
 0x493   : > { %8399 = vmatmul.mubr.msk.bf16.gmra.mrb[44].mxu1 %vm3732_vm1, %v11830_v48 }
 0x494   : > { %8406 = vmatprep.mubr.msk.bf16.mxu1 %vm3732_vm1, %v13328_v16  ;;  %v13338_v16 = vld [vmem:[#allocation167_spill] sm:$0xff] }
 0x495   : > { %v13340_v32 = vpack.c.bf16 %v13338_v16, %v13339_v21  ;;  %v13353_v21 = vld [vmem:[#allocation184_spill] sm:$0xff] }
 0x49b   : > { %8407 = vmatmul.mubr.msk.bf16.vlgmr.msra.gmra.mrb[16].mxu1 %vm3732_vm1, %v13331_v49  ;;  %v13341_v49 = vld [vmem:[#allocation172_spill] sm:$0xff] }
 0x49c   : > { %8439 = vmatpush3.bf16.msra.mxu1 %v9162_v56  ;;  %8410 = vmatprep.mubr.msk.bf16.mxu1 %vm3732_vm1, %v13334_v22  ;;  %v13335_v56 = vld [vmem:[#allocation165_spill] sm:$0xff]  ;;  %v13343_v43 = vpack.c.bf16 %v13341_v49, %v13342_v4  ;;  %v13344_v22 = vld [vmem:[#allocation174_spill] sm:$0xff] }
 0x49d   : > { %8440 = vmatprep.subr.bf16.mxu1 %v9163_v40  ;;  %v13337_v34 = vpack.c.bf16 %v13335_v56, %v13336_v9  ;;  %v13346_v11 = vpack.c.bf16 %v13344_v22, %v13345_v58  ;;  %v13350_v9 = vld [vmem:[#allocation182_spill] sm:$0xff] }
 0x49e   : > { %v13356_v4 = vld [vmem:[#allocation118_spill] sm:$0xff] }
 0x49f   : > { %v13359_v58 = vld [vmem:[#allocation190_spill] sm:$0xff] }
 0x4a0   : > { %8441 = vmatpush3.bf16.msra.mxu1 %v9163_v40  ;;  %v13347_v40 = vld [vmem:[#allocation106_spill] sm:$0xff] }
 0x4a1   : > { %8474 = vmatprep.subr.bf16.mxu1 %v9164_v25  ;;  %v13349_v56 = vpack.c.bf16 %v13347_v40, %v13348_v31  ;;  %v13362_v40 = vld [vmem:[#allocation192_spill] sm:$0xff] }
 0x4a3   : > { %8411 = vmatmul.mubr.msk.bf16.gmra.mrb[20].mxu1 %vm3732_vm1, %v13337_v34  ;;  %v13351_v34 = vld [vmem:[#allocation181_spill] sm:$0xff] }
 0x4a4   : > { %8414 = vmatprep.mubr.msk.bf16.mxu1 %vm3732_vm1, %v13340_v32  ;;  %v13352_v16 = vpack.c.bf16 %v13350_v9, %v13351_v34  ;;  %v13354_v32 = vld [vmem:[#allocation115_spill] sm:$0xff]  ;;  %v13365_v34 = vld [vmem:[#allocation194_spill] sm:$0xff] }
 0x4a5   : > { %v13355_v49 = vpack.c.bf16 %v13353_v21, %v13354_v32  ;;  %v13368_v32 = vld [vmem:[#allocation133_spill] sm:$0xff] }
 0x4ab   : > { %8415 = vmatmul.mubr.msk.bf16.gmra.mrb[24].mxu1 %vm3732_vm1, %v13343_v43  ;;  %v13357_v43 = vld [vmem:[#allocation185_spill] sm:$0xff] }
 0x4ac   : > { %8418 = vmatprep.mubr.msk.bf16.mxu1 %vm3732_vm1, %v13346_v11  ;;  %v13358_v22 = vpack.c.bf16 %v13356_v4, %v13357_v43  ;;  %v13360_v11 = vld [vmem:[#allocation189_spill] sm:$0xff]  ;;  %v5427_v43 = vmul.f32 %v11585_v35, %v13260_v60  ;;  %v5739_v35 = vmul.f32 %v13276_v50, %v13273_v13  ;;  %v13375_v13 = vld [vmem:[#allocation10_spill] sm:$0xff] }
 0x4ad   : > { %v13361_v31 = vpack.c.bf16 %v13359_v58, %v13360_v11  ;;  %v13371_v58 = vld [vmem:[#allocation41_spill] sm:$0xff] }
 0x4ae   : > { %v5735_v11 = vmul.f32 %v13268_v44, %v13371_v58  ;;  %v5737_v44 = vmul.f32 %v13274_v2, %v13267_v59  ;;  %v9166_v2 = vld [vmem:[%s12421_s5 + $0x80] sm:$0xff]   ;;  %v13383_v58 = vld [vmem:[#allocation197_spill] sm:$0xff] }
 0x4af   : > { %v13377_v59 = vld [vmem:[#allocation196_spill] sm:$0xff] }
 0x4b3   : > { %8419 = vmatmul.mubr.msk.bf16.gmra.mrb[28].mxu1 %vm3732_vm1, %v13349_v56  ;;  %v13363_v56 = vld [vmem:[#allocation191_spill] sm:$0xff] }
 0x4b4   : > { %8422 = vmatprep.mubr.msk.bf16.mxu1 %vm3732_vm1, %v13352_v16  ;;  %v13364_v9 = vpack.c.bf16 %v13362_v40, %v13363_v56  ;;  %v13366_v16 = vld [vmem:[#allocation193_spill] sm:$0xff] }
 0x4b5   : > { %v13367_v21 = vpack.c.bf16 %v13365_v34, %v13366_v16  ;;  %v5738_v34 = vmul.f32 %v13272_v15, %v13269_v28  ;;  %v13376_v15 = vld [vmem:[#allocation11_spill] sm:$0xff] }
 0x4b7   : > { %v5768_v16 = vpack.c.bf16 %v5738_v34, %v5737_v44  ;;  %v13388_v34 = vld [vmem:[#allocation199_spill] sm:$0xff]  ;;  %v13391_v44 = vld [vmem:[#allocation17_spill] sm:$0xff] }
 0x4bb   : > { %8423 = vmatmul.mubr.msk.bf16.gmra.mrb[32].mxu1 %vm3732_vm1, %v13355_v49  ;;  %v13369_v49 = vld [vmem:[#allocation134_spill] sm:$0xff] }
 0x4bc   : > { %8426 = vmatprep.mubr.msk.bf16.mxu1 %vm3732_vm1, %v13358_v22  ;;  %v13370_v4 = vpack.c.bf16 %v13368_v32, %v13369_v49  ;;  %v5428_v22 = vmul.f32 %v11589_v42, %v13262_v17  ;;  %v5740_v42 = vmul.f32 %v13278_v45, %v13271_v3  ;;  %v13373_v32 = vld [vmem:[#allocation8_spill] sm:$0xff]  ;;  %v13374_v49 = vld [vmem:[#allocation9_spill] sm:$0xff]  ;;  %v6796_v45 = vpack.c.bf16 %v13376_v15, %v13375_v13  ;;  %v13378_v3 = vld [vmem:[#allocation195_spill] sm:$0xff] }
 0x4bd   : > { %v6795_v28 = vpack.c.bf16 %v13374_v49, %v13373_v32  ;;  %v13379_v50 = vpack.c.bf16 %v13377_v59, %v13378_v3  ;;  %v13395_v49 = vld [vmem:[#allocation18_spill] sm:$0xff]  ;;  %v13397_v15 = vld [vmem:[#allocation204_spill] sm:$0xff] }
 0x4be   : > { %v5444_v56 = vpack.c.bf16 %v5428_v22, %v5427_v43  ;;  %v13382_v22 = vld [vmem:[#allocation198_spill] sm:$0xff]  ;;  %v13400_v3 = vld [vmem:[#allocation20_spill] sm:$0xff] }
 0x4bf   : > { %8548 = vmatprep.mubr.msk.bf16.mxu0 %vm456_vm0, %v6795_v28  ;;  %v13396_v28 = vld [vmem:[#allocation19_spill] sm:$0xff] }
 0x4c0   : > { %8549 = vmatmul.mubr.msk.bf16.vlgmr.msra.gmra.mrb[32].mxu0 %vm456_vm0, %v6796_v45  ;;  %v6800_v13 = vpack.c.bf16 %v13396_v28, %v13395_v49  ;;  %v13398_v45 = vld [vmem:[#allocation203_spill] sm:$0xff]  ;;  %v13417_v28 = vpack.c.bf16 %v11537_v52, %v11531_v62  ;;  %v13423_v52 = vpack.c.bf16 %v11555_v55, %v11551_v53  ;;  %v13424_v62 = vld [vmem:[#allocation32_spill] sm:$0xff] }
 0x4c1   : > { %v13399_v59 = vpack.c.bf16 %v13397_v15, %v13398_v45  ;;  %v13419_v15 = vld [vmem:[#allocation29_spill] sm:$0xff] }
 0x4c3   : > { %8427 = vmatmul.mubr.msk.bf16.gmra.mrb[36].mxu1 %vm3732_vm1, %v13361_v31  ;;  %v13372_v31 = vld [vmem:[#allocation44_spill] sm:$0xff] }
 0x4c4   : > { %8430 = vmatprep.mubr.msk.bf16.mxu1 %vm3732_vm1, %v13364_v9  ;;  %v5736_v40 = vmul.f32 %v13270_v63, %v13372_v31  ;;  %v9165_v63 = vld [vmem:[%s12421_s5 + $0x78] sm:$0xff]   ;;  %v13385_v31 = vld [vmem:[#allocation14_spill] sm:$0xff] }
 0x4c6   : > { %v5767_v9 = vpack.c.bf16 %v5736_v40, %v5735_v11  ;;  %v13384_v11 = vpack.c.bf16 %v13382_v22, %v13383_v58  ;;  %v13386_v40 = vld [vmem:[#allocation15_spill] sm:$0xff]  ;;  %v13405_v58 = vld [vmem:[#allocation22_spill] sm:$0xff] }
 0x4cb   : > { %8431 = vmatmul.mubr.msk.bf16.gmra.mrb[40].mxu1 %vm3732_vm1, %v13367_v21  ;;  %v5769_v21 = vpack.c.bf16 %v5740_v42, %v5739_v35  ;;  %v13390_v42 = vld [vmem:[#allocation16_spill] sm:$0xff] }
 0x4cc   : > { %8434 = vmatprep.mubr.msk.bf16.mxu1 %vm3732_vm1, %v13370_v4  ;;  %v13381_v4 = vld [vmem:[#allocation13_spill] sm:$0xff] }
 0x4d3   : > { %8435 = vmatmul.mubr.msk.bf16.gmra.mrb[44].mxu1 %vm3732_vm1, %v5444_v56  ;;  %v6798_v56 = vpack.c.bf16 %v13386_v40, %v13385_v31  ;;  %v13407_v40 = vld [vmem:[#allocation209_spill] sm:$0xff] }
 0x4d4   : > { %8442 = vmatprep.mubr.msk.bf16.mxu1 %vm3732_vm1, %v5767_v9  ;;  %v13387_v9 = vld [vmem:[#allocation200_spill] sm:$0xff] }
 0x4d5   : > { %v13389_v35 = vpack.c.bf16 %v13387_v9, %v13388_v34  ;;  %v13410_v34 = vld [vmem:[#allocation24_spill] sm:$0xff] }
 0x4db   : > { %8443 = vmatmul.mubr.msk.bf16.vlgmr.msra.gmra.mrb[16].mxu1 %vm3732_vm1, %v5768_v16  ;;  %v6799_v16 = vpack.c.bf16 %v13391_v44, %v13390_v42  ;;  %v13412_v44 = vld [vmem:[#allocation62_spill] sm:$0xff] }
 0x4dc   : > { %8475 = vmatpush3.bf16.msra.mxu1 %v9164_v25  ;;  %8446 = vmatprep.mubr.msk.bf16.mxu1 %vm3732_vm1, %v5769_v21  ;;  %v13380_v25 = vld [vmem:[#allocation12_spill] sm:$0xff]  ;;  %v13393_v21 = vld [vmem:[#allocation201_spill] sm:$0xff] }
 0x4dd   : > { %8476 = vmatprep.subr.bf16.mxu1 %v9165_v63  ;;  %v6797_v43 = vpack.c.bf16 %v13381_v4, %v13380_v25  ;;  %v13402_v4 = vld [vmem:[#allocation206_spill] sm:$0xff] }
 0x4df   : > { %8552 = vmatprep.mubr.msk.bf16.mxu0 %vm456_vm0, %v6797_v43  ;;  %v13403_v43 = vld [vmem:[#allocation205_spill] sm:$0xff] }
 0x4e0   : > { %8477 = vmatpush3.bf16.msra.mxu1 %v9165_v63  ;;  %8553 = vmatmul.mubr.msk.bf16.gmra.mrb[36].mxu0 %vm456_vm0, %v6798_v56  ;;  %v13392_v63 = vld [vmem:[#allocation202_spill] sm:$0xff]  ;;  %v13404_v22 = vpack.c.bf16 %v13402_v4, %v13403_v43  ;;  %v13408_v56 = vld [vmem:[#allocation208_spill] sm:$0xff]  ;;  %v13425_v43 = vld [vmem:[#allocation33_spill] sm:$0xff] }
 0x4e1   : > { %8510 = vmatprep.subr.bf16.mxu1 %v9166_v2  ;;  %v13394_v32 = vpack.c.bf16 %v13392_v63, %v13393_v21  ;;  %8556 = vmatprep.mubr.msk.bf16.mxu0 %vm456_vm0, %v6799_v16  ;;  %v13409_v9 = vpack.c.bf16 %v13407_v40, %v13408_v56  ;;  %v13413_v16 = vld [vmem:[#allocation210_spill] sm:$0xff]  ;;  %v5733_v4 = vld [vmem:[#allocation3 + $0x117] sm:$0xff] }
 0x4e2   : > { %v13414_v63 = vpack.c.bf16 %v13412_v44, %v13413_v16  ;;  %v13415_v21 = vld [vmem:[#allocation26_spill] sm:$0xff]  ;;  %v5765_v40 = vmul.f32 %v5733_v4, %v13212_v61  ;;  %v13429_v56 = vld [vmem:[#allocation36_spill] sm:$0xff]  ;;  %v6043_v44 = vld [vmem:[#allocation3 + $0x38] sm:$0xff] }
 0x4e3   : > { %8447 = vmatmul.mubr.msk.bf16.gmra.mrb[20].mxu1 %vm3732_vm1, %v13379_v50  ;;  %v13401_v50 = vld [vmem:[#allocation21_spill] sm:$0xff]  ;;  %v6044_v61 = vld [vmem:[#allocation3 + $0x40] sm:$0xff]  ;;  %v6045_v16 = vld [vmem:[#allocation3 + $0x48] sm:$0xff] }
 0x4e4   : > { %8450 = vmatprep.mubr.msk.bf16.mxu1 %vm3732_vm1, %v13384_v11  ;;  %v6801_v25 = vpack.c.bf16 %v13401_v50, %v13400_v3  ;;  %v13406_v11 = vld [vmem:[#allocation23_spill] sm:$0xff]  ;;  %v13421_v3 = vld [vmem:[#allocation30_spill] sm:$0xff] }
 0x4e5   : > { %v6802_v31 = vpack.c.bf16 %v13406_v11, %v13405_v58  ;;  %v13422_v50 = vld [vmem:[#allocation31_spill] sm:$0xff]  ;;  %v13427_v58 = vld [vmem:[#allocation34_spill] sm:$0xff] }
 0x4e6   : > { %v13428_v11 = vld [vmem:[#allocation35_spill] sm:$0xff]  ;;  %v6056_v4 = vld [vmem:[#allocation3 + $0xa0] sm:$0xff] }
 0x4e8   : > { %8557 = vmatmul.mubr.msk.bf16.gmra.mrb[40].mxu0 %vm456_vm0, %v6800_v13  ;;  %v13418_v13 = vld [vmem:[#allocation28_spill] sm:$0xff] }
 0x4e9   : > { %8560 = vmatprep.mubr.msk.bf16.mxu0 %vm456_vm0, %v6801_v25  ;;  %v6805_v45 = vpack.c.bf16 %v13419_v15, %v13418_v13  ;;  %v6806_v25 = vpack.c.bf16 %v13422_v50, %v13421_v3  ;;  %v6049_v13 = vld [vmem:[#allocation3 + $0x68] sm:$0xff]  ;;  %v6051_v3 = vld [vmem:[#allocation3 + $0x78] sm:$0xff] }
 0x4eb   : > { %8451 = vmatmul.mubr.msk.bf16.gmra.mrb[24].mxu1 %vm3732_vm1, %v13389_v35  ;;  %v13411_v35 = vld [vmem:[#allocation25_spill] sm:$0xff] }
 0x4ec   : > { %8454 = vmatprep.mubr.msk.bf16.mxu1 %vm3732_vm1, %v13394_v32  ;;  %v6803_v42 = vpack.c.bf16 %v13411_v35, %v13410_v34  ;;  %v13416_v32 = vld [vmem:[#allocation27_spill] sm:$0xff] }
 0x4ed   : > { %v6804_v49 = vpack.c.bf16 %v13416_v32, %v13415_v21  ;;  %v13432_v34 = vld [vmem:[#allocation39_spill] sm:$0xff]  ;;  %v6050_v32 = vld [vmem:[#allocation3 + $0x70] sm:$0xff] }
 0x4ee   : > { %v6077_v15 = vpack.c.bf16 %v6050_v32, %v6049_v13  ;;  %v6350_v13 = vld [vmem:[#allocation3 + $0x41] sm:$0xff] }
 0x4f0   : > { %8561 = vmatmul.mubr.msk.bf16.gmra.mrb[44].mxu0 %vm456_vm0, %v6802_v31  ;;  %v6808_v31 = vpack.c.bf16 %v13428_v11, %v13427_v58  ;;  %v6062_v58 = vld [vmem:[#allocation3 + $0xd0] sm:$0xff]  ;;  %v6059_v11 = vld [vmem:[#allocation3 + $0xb8] sm:$0xff] }
 0x4f1   : > { %8564 = vmatprep.mubr.msk.bf16.mxu0 %vm456_vm0, %v6803_v42  ;;  %v6046_v42 = vld [vmem:[#allocation3 + $0x50] sm:$0xff] }
 0x4f2   : > { %v6075_v21 = vpack.c.bf16 %v6046_v42, %v6045_v16  ;;  %v6072_v16 = vld [vmem:[#allocation3 + $0x120] sm:$0xff] }
 0x4f3   : > { %8455 = vmatmul.mubr.msk.bf16.gmra.mrb[28].mxu1 %vm3732_vm1, %v13399_v59  ;;  %v13420_v59 = vpack.c.bf16 %v11545_v5, %v11541_v41  ;;  %v13426_v41 = vpack.c.bf16 %v11567_v38, %v11559_v27  ;;  %v5734_v5 = vld [vmem:[#allocation3 + $0x11f] sm:$0xff] }
 0x4f4   : > { %8458 = vmatprep.mubr.msk.bf16.mxu1 %vm3732_vm1, %v13404_v22  ;;  %v6807_v22 = vpack.c.bf16 %v13425_v43, %v13424_v62  ;;  %v5766_v53 = vmul.f32 %v5734_v5, %v13210_v26  ;;  %v13431_v38 = vld [vmem:[#allocation38_spill] sm:$0xff]  ;;  %v6074_v26 = vpack.c.bf16 %v6044_v61, %v6043_v44  ;;  %v6055_v62 = vld [vmem:[#allocation3 + $0x98] sm:$0xff] }
 0x4f5   : > { %v6810_v35 = vpack.c.bf16 %v13432_v34, %v13431_v38  ;;  %v6080_v43 = vpack.c.bf16 %v6056_v4, %v6055_v62  ;;  %v6060_v5 = vld [vmem:[#allocation3 + $0xc0] sm:$0xff]  ;;  %v6065_v38 = vld [vmem:[#allocation3 + $0xe8] sm:$0xff]  ;;  %v6067_v61 = vld [vmem:[#allocation3 + $0xf8] sm:$0xff] }
 0x4f6   : > { %v5782_v55 = vpack.c.bf16 %v5766_v53, %v5765_v40  ;;  %v6061_v40 = vld [vmem:[#allocation3 + $0xc8] sm:$0xff]  ;;  %v6348_v44 = vld [vmem:[#allocation3 + $0x31] sm:$0xff] }
 0x4f7   : > { %v6083_v53 = vpack.c.bf16 %v6062_v58, %v6061_v40  ;;  %v6356_v4 = vld [vmem:[#allocation3 + $0x71] sm:$0xff]  ;;  %v6355_v62 = vld [vmem:[#allocation3 + $0x69] sm:$0xff]  ;;  %v6361_v40 = vld [vmem:[#allocation3 + $0x99] sm:$0xff] }
 0x4f8   : > { %8565 = vmatmul.mubr.msk.bf16.gmra.mrb[48].mxu0 %vm456_vm0, %v6804_v49  ;;  %v6047_v49 = vld [vmem:[#allocation3 + $0x58] sm:$0xff] }
 0x4f9   : > { %8568 = vmatprep.mubr.msk.bf16.mxu0 %vm456_vm0, %v6805_v45  ;;  %v6052_v45 = vld [vmem:[#allocation3 + $0x80] sm:$0xff] }
 0x4fa   : > { %v6078_v50 = vpack.c.bf16 %v6052_v45, %v6051_v3 }
 0x4fb   : > { %8459 = vmatmul.mubr.msk.bf16.gmra.mrb[32].mxu1 %vm3732_vm1, %v13409_v9  ;;  %v13430_v9 = vld [vmem:[#allocation37_spill] sm:$0xff] }
 0x4fc   : > { %8462 = vmatprep.mubr.msk.bf16.mxu1 %vm3732_vm1, %v13414_v63  ;;  %v6809_v27 = vpack.c.bf16 %v13430_v9, %v13429_v56  ;;  %v9167_v63 = vld [vmem:[%s12421_s5 + $0x88] sm:$0xff]   ;;  %v6066_v56 = vld [vmem:[#allocation3 + $0xf0] sm:$0xff] }
 0x4fd   : > { %v6063_v9 = vld [vmem:[#allocation3 + $0xd8] sm:$0xff]  ;;  %v6085_v34 = vpack.c.bf16 %v6066_v56, %v6065_v38  ;;  %v6393_v56 = vmul.f32 %v6361_v40, %v13133_v1 }
 0x4fe   : > { %v6365_v38 = vld [vmem:[#allocation3 + $0xb9] sm:$0xff] }
 0x500   : > { %8569 = vmatmul.mubr.msk.bf16.gmra.mrb[52].mxu0 %vm456_vm0, %v6806_v25  ;;  %v6053_v25 = vld [vmem:[#allocation3 + $0x88] sm:$0xff] }
 0x501   : > { %8572 = vmatprep.mubr.msk.bf16.mxu0 %vm456_vm0, %v6807_v22  ;;  %v6057_v22 = vld [vmem:[#allocation3 + $0xa8] sm:$0xff] }
 0x503   : > { %8463 = vmatmul.mubr.msk.bf16.gmra.mrb[36].mxu1 %vm3732_vm1, %v13417_v28 }
 0x504   : > { %8466 = vmatprep.mubr.msk.bf16.mxu1 %vm3732_vm1, %v13420_v59  ;;  %v6054_v59 = vld [vmem:[#allocation3 + $0x90] sm:$0xff] }
 0x508   : > { %8573 = vmatmul.mubr.msk.bf16.gmra.mrb[56].mxu0 %vm456_vm0, %v6808_v31  ;;  %v6082_v31 = vpack.c.bf16 %v6060_v5, %v6059_v11  ;;  %v6360_v5 = vld [vmem:[#allocation3 + $0x91] sm:$0xff]  ;;  %v6359_v11 = vld [vmem:[#allocation3 + $0x89] sm:$0xff] }
 0x509   : > { %8576 = vmatprep.mubr.msk.bf16.mxu0 %vm456_vm0, %v6809_v27 }
 0x50b   : > { %8467 = vmatmul.mubr.msk.bf16.gmra.mrb[40].mxu1 %vm3732_vm1, %v13423_v52  ;;  %v6058_v52 = vld [vmem:[#allocation3 + $0xb0] sm:$0xff] }
 0x50c   : > { %8470 = vmatprep.mubr.msk.bf16.mxu1 %vm3732_vm1, %v13426_v41  ;;  %v6081_v41 = vpack.c.bf16 %v6058_v52, %v6057_v22  ;;  %v6357_v22 = vld [vmem:[#allocation3 + $0x79] sm:$0xff] }
 0x50d   : > { %v6389_v58 = vmul.f32 %v6357_v22, %v13230_v37 }
 0x510   : > { %8577 = vmatmul.mubr.msk.bf16.gmra.mrb[60].mxu0 %vm456_vm0, %v6810_v35  ;;  %v6068_v35 = vld [vmem:[#allocation3 + $0x100] sm:$0xff] }
 0x511   : > { %v6086_v42 = vpack.c.bf16 %v6068_v35, %v6067_v61  ;;  %v6368_v35 = vld [vmem:[#allocation3 + $0xd1] sm:$0xff]  ;;  %v6397_v61 = vmul.f32 %v6365_v38, %v13145_v19 }
 0x513   : > { %8471 = vmatmul.mubr.msk.bf16.gmra.mrb[44].mxu1 %vm3732_vm1, %v5782_v55  ;;  %v6064_v55 = vld [vmem:[#allocation3 + $0xe0] sm:$0xff] }
 0x514   : > { %8478 = vmatprep.mubr.msk.bf16.mxu1 %vm3732_vm1, %v11794_v36  ;;  %v6048_v36 = vld [vmem:[#allocation3 + $0x60] sm:$0xff]  ;;  %v6084_v27 = vpack.c.bf16 %v6064_v55, %v6063_v9  ;;  %v6364_v55 = vld [vmem:[#allocation3 + $0xb1] sm:$0xff]  ;;  %v6363_v9 = vld [vmem:[#allocation3 + $0xa9] sm:$0xff] }
 0x515   : > { %v6076_v28 = vpack.c.bf16 %v6048_v36, %v6047_v49 }
 0x51b   : > { %8479 = vmatmul.mubr.msk.bf16.vlgmr.msra.gmra.mrb[16].mxu1 %vm3732_vm1, %v6074_v26  ;;  %v6071_v26 = vld [vmem:[#allocation3 + $0x118] sm:$0xff] }
 0x51c   : > { %8511 = vmatpush3.bf16.msra.mxu1 %v9166_v2  ;;  %8482 = vmatprep.mubr.msk.bf16.mxu1 %vm3732_vm1, %v6075_v21  ;;  %v6079_v2 = vpack.c.bf16 %v6054_v59, %v6053_v25  ;;  %v6380_v21 = vmul.f32 %v6348_v44, %v13211_v57  ;;  %v6088_v36 = vpack.c.bf16 %v6072_v16, %v6071_v26  ;;  %v6351_v59 = vld [vmem:[#allocation3 + $0x49] sm:$0xff]  ;;  %v6369_v26 = vld [vmem:[#allocation3 + $0xd9] sm:$0xff]  ;;  %v6370_v16 = vld [vmem:[#allocation3 + $0xe1] sm:$0xff] }
 0x51d   : > { %8512 = vmatprep.subr.bf16.mxu1 %v9167_v63  ;;  %v6383_v57 = vmul.f32 %v6351_v59, %v13220_v12 }
 0x520   : > { %8513 = vmatpush3.bf16.msra.mxu1 %v9167_v63  ;;  %v6347_v63 = vld [vmem:[#allocation3 + $0x29] sm:$0xff] }
 0x521   : > { %v6379_v32 = vmul.f32 %v6347_v63, %v13213_v7  ;;  %v6353_v7 = vld [vmem:[#allocation3 + $0x59] sm:$0xff]  ;;  %v6372_v63 = vld [vmem:[#allocation3 + $0xf1] sm:$0xff] }
 0x522   : > { %v6385_v52 = vmul.f32 %v6353_v7, %v13222_v24  ;;  %v13438_v7 = vld [vmem:[#allocation65_spill] sm:$0xff] }
 0x523   : > { %8483 = vmatmul.mubr.msk.bf16.gmra.mrb[20].mxu1 %vm3732_vm1, %v6076_v28  ;;  %v6411_v49 = vpack.c.bf16 %v6380_v21, %v6379_v32  ;;  %v6349_v28 = vld [vmem:[#allocation3 + $0x39] sm:$0xff]  ;;  %v6401_v21 = vmul.f32 %v6369_v26, %v13250_v33  ;;  %v6371_v32 = vld [vmem:[#allocation3 + $0xe9] sm:$0xff] }
 0x524   : > { %8486 = vmatprep.mubr.msk.bf16.mxu1 %vm3732_vm1, %v6077_v15  ;;  %v6352_v15 = vld [vmem:[#allocation3 + $0x51] sm:$0xff]  ;;  %v6381_v45 = vmul.f32 %v6349_v28, %v13214_v6  ;;  %v13435_v28 = vld [vmem:[#allocation127_spill] sm:$0xff] }
 0x525   : > { %v6384_v3 = vmul.f32 %v6352_v15, %v13218_v8  ;;  %v6387_v8 = vmul.f32 %v6355_v62, %v13228_v51  ;;  %v6373_v15 = vld [vmem:[#allocation3 + $0xf9] sm:$0xff] }
 0x527   : > { %v6413_v25 = vpack.c.bf16 %v6384_v3, %v6383_v57  ;;  %v13437_v3 = vld [vmem:[#allocation131_spill] sm:$0xff] }
 0x52b   : > { %8487 = vmatmul.mubr.msk.bf16.gmra.mrb[24].mxu1 %vm3732_vm1, %v6078_v50 }
 0x52c   : > { %8490 = vmatprep.mubr.msk.bf16.mxu1 %vm3732_vm1, %v6079_v2  ;;  %v6354_v2 = vld [vmem:[#allocation3 + $0x61] sm:$0xff] }
 0x52d   : > { %v6386_v6 = vmul.f32 %v6354_v2, %v13224_v47  ;;  %v6392_v47 = vmul.f32 %v6360_v5, %v13234_v46  ;;  %v6395_v46 = vmul.f32 %v6363_v9, %v13242_v29  ;;  %v13439_v2 = vld [vmem:[#allocation42_spill] sm:$0xff] }
 0x533   : > { %8491 = vmatmul.mubr.msk.bf16.gmra.mrb[28].mxu1 %vm3732_vm1, %v6080_v43  ;;  %v6414_v43 = vpack.c.bf16 %v6386_v6, %v6385_v52 }
 0x534   : > { %8494 = vmatprep.mubr.msk.bf16.mxu1 %vm3732_vm1, %v6081_v41  ;;  %v6358_v41 = vld [vmem:[#allocation3 + $0x81] sm:$0xff] }
 0x535   : > { %v6390_v24 = vmul.f32 %v6358_v41, %v13232_v23  ;;  %v6396_v23 = vmul.f32 %v6364_v55, %v13240_v54 }
 0x53b   : > { %8495 = vmatmul.mubr.msk.bf16.gmra.mrb[32].mxu1 %vm3732_vm1, %v6082_v31  ;;  %v6416_v31 = vpack.c.bf16 %v6390_v24, %v6389_v58 }
 0x53c   : > { %8498 = vmatprep.mubr.msk.bf16.mxu1 %vm3732_vm1, %v6083_v53  ;;  %v6362_v53 = vld [vmem:[#allocation3 + $0xa1] sm:$0xff] }
 0x53d   : > { %v6394_v37 = vmul.f32 %v6362_v53, %v13135_v0  ;;  %v6400_v0 = vmul.f32 %v6368_v35, %v13154_v18  ;;  %v6403_v18 = vmul.f32 %v6371_v32, %v13435_v28 }
 0x543   : > { %8499 = vmatmul.mubr.msk.bf16.gmra.mrb[36].mxu1 %vm3732_vm1, %v6084_v27  ;;  %v6418_v27 = vpack.c.bf16 %v6394_v37, %v6393_v56 }
 0x544   : > { %8502 = vmatprep.mubr.msk.bf16.mxu1 %vm3732_vm1, %v6085_v34  ;;  %v6366_v34 = vld [vmem:[#allocation3 + $0xc1] sm:$0xff] }
 0x545   : > { %v6398_v1 = vmul.f32 %v6366_v34, %v13245_v20  ;;  %v13434_v20 = vld [vmem:[#allocation126_spill] sm:$0xff] }
 0x547   : > { %v6420_v44 = vpack.c.bf16 %v6398_v1, %v6397_v61 }
 0x54b   : > { %8503 = vmatmul.mubr.msk.bf16.gmra.mrb[40].mxu1 %vm3732_vm1, %v6086_v42  ;;  %v6367_v42 = vld [vmem:[#allocation3 + $0xc9] sm:$0xff] }
 0x54c   : > { %8506 = vmatprep.mubr.msk.bf16.mxu1 %vm3732_vm1, %v11830_v48  ;;  %v6382_v48 = vmul.f32 %v6350_v13, %v13216_v39  ;;  %v6388_v39 = vmul.f32 %v6356_v4, %v13226_v14  ;;  %v6391_v14 = vmul.f32 %v6359_v11, %v13236_v10  ;;  %v6419_v10 = vpack.c.bf16 %v6396_v23, %v6395_v46 }
 0x54d   : > { %v6399_v54 = vmul.f32 %v6367_v42, %v13248_v30  ;;  %v13440_v4 = vpack.c.bf16 %v13438_v7, %v13439_v2 }
 0x54e   : > { %v6412_v50 = vpack.c.bf16 %v6382_v48, %v6381_v45  ;;  %v6415_v12 = vpack.c.bf16 %v6388_v39, %v6387_v8  ;;  %v6417_v51 = vpack.c.bf16 %v6392_v47, %v6391_v14  ;;  %v6374_v45 = vld [vmem:[#allocation3 + $0x101] sm:$0xff]  ;;  %v13436_v48 = vld [vmem:[#allocation132_spill] sm:$0xff] }
 0x54f   : > { %v6421_v29 = vpack.c.bf16 %v6400_v0, %v6399_v54  ;;  %v6405_v59 = vmul.f32 %v6373_v15, %v13436_v48  ;;  %v6406_v57 = vmul.f32 %v6374_v45, %v13437_v3  ;;  %v12159_v0 = vld [vmem:[%s12422_s6] ss:$0 sm:$0xff] }
 0x551   : > { %v6424_v33 = vpack.c.bf16 %v6406_v57, %v6405_v59 }
 0x553   : > { %8507 = vmatmul.mubr.msk.bf16.gmra.mrb[44].mxu1 %vm3732_vm1, %v6088_v36  ;;  %v13433_v36 = vld [vmem:[#allocation122_spill] sm:$0xff] }
 0x554   : > { %8514 = vmatprep.mubr.msk.bf16.mxu1 %vm3732_vm1, %v6411_v49  ;;  %v6402_v19 = vmul.f32 %v6370_v16, %v13433_v36  ;;  %v6404_v49 = vmul.f32 %v6372_v63, %v13434_v20 }
 0x556   : > { %v6422_v13 = vpack.c.bf16 %v6402_v19, %v6401_v21  ;;  %v6423_v30 = vpack.c.bf16 %v6404_v49, %v6403_v18 }
 0x55b   : > { %8515 = vmatmul.mubr.msk.bf16.vlgmr.msra.gmra.mrb[16].mxu1 %vm3732_vm1, %v6412_v50  ;;  %v6378_v50 = vld [vmem:[#allocation3 + $0x121] sm:$0xff] }
 0x55c   : > { %8518 = vmatprep.mubr.msk.bf16.mxu1 %vm3732_vm1, %v6413_v25  ;;  %v6377_v25 = vld [vmem:[#allocation3 + $0x119] sm:$0xff]  ;;  %v6410_v52 = vmul.f32 %v6378_v50, %v13262_v17 }
 0x55d   : > { %v6409_v6 = vmul.f32 %v6377_v25, %v13260_v60 }
 0x55f   : > { %v6426_v62 = vpack.c.bf16 %v6410_v52, %v6409_v6 }
 0x563   : > { %8519 = vmatmul.mubr.msk.bf16.gmra.mrb[20].mxu1 %vm3732_vm1, %v6414_v43 }
 0x564   : > { %8522 = vmatprep.mubr.msk.bf16.mxu1 %vm3732_vm1, %v6415_v12 }
 0x56b   : > { %8523 = vmatmul.mubr.msk.bf16.gmra.mrb[24].mxu1 %vm3732_vm1, %v6416_v31 }
 0x56c   : > { %8526 = vmatprep.mubr.msk.bf16.mxu1 %vm3732_vm1, %v6417_v51 }
 0x573   : > { %8527 = vmatmul.mubr.msk.bf16.gmra.mrb[28].mxu1 %vm3732_vm1, %v6418_v27 }
 0x574   : > { %8530 = vmatprep.mubr.msk.bf16.mxu1 %vm3732_vm1, %v6419_v10 }
 0x57b   : > { %8531 = vmatmul.mubr.msk.bf16.gmra.mrb[32].mxu1 %vm3732_vm1, %v6420_v44  ;;  %v12164_v44 = vld [vmem:[%s12423_s7] ss:$0 sm:$0xff] }
 0x57c   : > { %8534 = vmatprep.mubr.msk.bf16.mxu1 %vm3732_vm1, %v6421_v29  ;;  %v12170_v29 = vld [vmem:[%s12425_s9] ss:$0 sm:$0xff] }
 0x583   : > { %8535 = vmatmul.mubr.msk.bf16.gmra.mrb[36].mxu1 %vm3732_vm1, %v6422_v13 }
 0x584   : > { %8538 = vmatprep.mubr.msk.bf16.mxu1 %vm3732_vm1, %v6423_v30 }
 0x58b   : > { %8539 = vmatmul.mubr.msk.bf16.gmra.mrb[40].mxu1 %vm3732_vm1, %v6424_v33 }
 0x58c   : > { %8542 = vmatprep.mubr.msk.bf16.mxu1 %vm3732_vm1, %v13440_v4 }
 0x593   : > { %8543 = vmatmul.mubr.msk.bf16.gmra.mrb[44].mxu1 %vm3732_vm1, %v6426_v62  ;;  %v8550_v39 = vpop.f32.mrb[32].mxu0 }
 0x594   : > { %v6904_v8 = vpop.f32.mrb[33].mxu0  ;;  %v6913_v19 = vadd.f32 %v8550_v39, %v12170_v29 }
 0x595   : > { %v8551_v43 = vpop.f32.mrb[34].mxu0  ;;  %v6905_v28 = vadd.f32 %v12170_v29, %v6904_v8 }
 0x596   : > { %v6907_v12 = vpop.f32.mrb[35].mxu0  ;;  %v6916_v3 = vadd.f32 %v8551_v43, %v12170_v29 }
 0x597   : > { %v6908_v50 = vadd.f32 %v12170_v29, %v6907_v12 }
 0x5b3   : > { %v12100_v22 = vpop.f32.mrb[36].mxu0 }
 0x5b4   : > { %v12102_v41 = vpop.f32.mrb[37].mxu0  ;;  %v6929_v8 = vadd.f32 %v12100_v22, %v12170_v29 }
 0x5b5   : > { %v12104_v5 = vpop.f32.mrb[38].mxu0 }
 0x5b6   : > { %v12106_v58 = vpop.f32.mrb[39].mxu0 }
 0x5bb   : > { %v12108_v24 = vpop.f32.mrb[40].mxu0 }
 0x5bc   : > { %v12110_v17 = vpop.f32.mrb[41].mxu0 }
 0x5bd   : > { %v12112_v60 = vpop.f32.mrb[42].mxu0 }
 0x5be   : > { %v12114_v11 = vpop.f32.mrb[43].mxu0 }
 0x5c3   : > { %v12116_v47 = vpop.f32.mrb[44].mxu0 }
 0x5c4   : > { %v12118_v14 = vpop.f32.mrb[45].mxu0 }
 0x5c5   : > { %v12120_v31 = vpop.f32.mrb[46].mxu0 }
 0x5c6   : > { %v12122_v51 = vpop.f32.mrb[47].mxu0 }
 0x5cb   : > { %v12124_v40 = vpop.f32.mrb[48].mxu0 }
 0x5cc   : > { %v12126_v53 = vpop.f32.mrb[49].mxu0 }
 0x5cd   : > { %v12128_v55 = vpop.f32.mrb[50].mxu0 }
 0x5ce   : > { %v12130_v56 = vpop.f32.mrb[51].mxu0 }
 0x5d3   : > { %v12132_v37 = vpop.f32.mrb[52].mxu0 }
 0x5d4   : > { %v12134_v9 = vpop.f32.mrb[53].mxu0 }
 0x5d5   : > { %v12136_v23 = vpop.f32.mrb[54].mxu0 }
 0x5d6   : > { %v12138_v46 = vpop.f32.mrb[55].mxu0 }
 0x5db   : > { %v12140_v27 = vpop.f32.mrb[56].mxu0 }
 0x5dc   : > { %v12142_v10 = vpop.f32.mrb[57].mxu0 }
 0x5dd   : > { %v12144_v38 = vpop.f32.mrb[58].mxu0 }
 0x5de   : > { %v12146_v34 = vpop.f32.mrb[59].mxu0 }
 0x5e3   : > { %v12148_v35 = vpop.f32.mrb[60].mxu0 }
 0x5e4   : > { %v12150_v61 = vpop.f32.mrb[61].mxu0 }
 0x5e5   : > { %v12152_v1 = vpop.f32.mrb[62].mxu0 }
 0x5e6   : > { %v12154_v42 = vpop.f32.mrb[63].mxu0 }
 0x62e   : > { %v8516_v54 = vpop.f32.mrb[16].mxu1 }
 0x62f   : > { %v6694_v26 = vmul.f32 %v8516_v54, %v12159_v0  ;;  %v6526_v16 = vpop.f32.mrb[17].mxu1 }
 0x630   : > { %v6692_v63 = vmul.f32 %v12159_v0, %v6526_v16  ;;  %v8517_v21 = vpop.f32.mrb[18].mxu1 }
 0x631   : > { %v6733_v36 = vadd.f32 %v12164_v44, %v6694_v26  ;;  %v6695_v32 = vmul.f32 %v8517_v21, %v12159_v0  ;;  %v6529_v20 = vpop.f32.mrb[19].mxu1  ;;  %v6921_v26 = vadd.f32 %v12170_v29, %v12102_v41  ;;  %v6924_v41 = vadd.f32 %v12170_v29, %v12106_v58 }
 0x632   : > { %v6731_v49 = vadd.f32 %v12164_v44, %v6692_v63  ;;  %v6693_v18 = vmul.f32 %v12159_v0, %v6529_v20  ;;  %v6932_v20 = vadd.f32 %v12104_v5, %v12170_v29  ;;  %v6945_v58 = vadd.f32 %v12108_v24, %v12170_v29 }
 0x633   : > { %v6765_v13 = vmax.f32 %v6733_v36, 0.0  ;;  %v6734_v30 = vadd.f32 %v12164_v44, %v6695_v32 }
 0x634   : > { %v6763_v15 = vmax.f32 %v6731_v49, 0.0  ;;  %v6732_v45 = vadd.f32 %v12164_v44, %v6693_v18 }
 0x635   : > { %v7033_v48 = vadd.f32 %v6913_v19, %v6765_v13  ;;  %v6766_v59 = vmax.f32 %v6734_v30, 0.0 }
 0x636   : > { %v7031_v57 = vadd.f32 %v6905_v28, %v6763_v15  ;;  %v6764_v33 = vmax.f32 %v6732_v45, 0.0  ;;  %v8520_v25 = vpop.f32.mrb[20].mxu1 }
 0x637   : > { %7065 = vst.msk [vmem:[%s12186_s25 + $0x10] sm:$0xff] %vm3732_vm1, %v7033_v48  ;;  %v7034_v7 = vadd.f32 %v6916_v3, %v6766_v59  ;;  %v6698_v2 = vmul.f32 %v8520_v25, %v12159_v0  ;;  %v6542_v4 = vpop.f32.mrb[21].mxu1 }
 0x638   : > { %7063 = vst.msk [vmem:[%s12186_s25] sm:$0xff] %vm3732_vm1, %v7031_v57  ;;  %v7032_v52 = vadd.f32 %v6908_v50, %v6764_v33  ;;  %v6696_v6 = vmul.f32 %v12159_v0, %v6542_v4  ;;  %v8521_v62 = vpop.f32.mrb[22].mxu1  ;;  %v6937_v50 = vadd.f32 %v12170_v29, %v12110_v17  ;;  %v6940_v17 = vadd.f32 %v12170_v29, %v12114_v11 }
 0x639   : > { %7066 = vst.msk [vmem:[%s12186_s25 + $0x18] sm:$0xff] %vm3732_vm1, %v7034_v7  ;;  %v6737_v39 = vadd.f32 %v12164_v44, %v6698_v2  ;;  %v6699_v43 = vmul.f32 %v8521_v62, %v12159_v0  ;;  %v6545_v12 = vpop.f32.mrb[23].mxu1  ;;  %v6948_v62 = vadd.f32 %v12112_v60, %v12170_v29  ;;  %v6961_v11 = vadd.f32 %v12116_v47, %v12170_v29 }
 0x63a   : > { %7064 = vst.msk [vmem:[%s12186_s25 + $0x8] sm:$0xff] %vm3732_vm1, %v7032_v52  ;;  %v6735_v54 = vadd.f32 %v12164_v44, %v6696_v6  ;;  %v6697_v16 = vmul.f32 %v12159_v0, %v6545_v12 }
 0x63b   : > { %v6769_v63 = vmax.f32 %v6737_v39, 0.0  ;;  %v6738_v21 = vadd.f32 %v12164_v44, %v6699_v43 }
 0x63c   : > { %v6767_v36 = vmax.f32 %v6735_v54, 0.0  ;;  %v6736_v22 = vadd.f32 %v12164_v44, %v6697_v16 }
 0x63d   : > { %v7037_v19 = vadd.f32 %v6929_v8, %v6769_v63  ;;  %v6770_v32 = vmax.f32 %v6738_v21, 0.0 }
 0x63e   : > { %v7035_v49 = vadd.f32 %v6921_v26, %v6767_v36  ;;  %v6768_v28 = vmax.f32 %v6736_v22, 0.0  ;;  %v8524_v18 = vpop.f32.mrb[24].mxu1 }
 0x63f   : > { %7069 = vst.msk [vmem:[%s12186_s25 + $0x30] sm:$0xff] %vm3732_vm1, %v7037_v19  ;;  %v7038_v13 = vadd.f32 %v6932_v20, %v6770_v32  ;;  %v6702_v30 = vmul.f32 %v8524_v18, %v12159_v0  ;;  %v6558_v15 = vpop.f32.mrb[25].mxu1  ;;  %v6953_v32 = vadd.f32 %v12170_v29, %v12118_v14  ;;  %v6956_v14 = vadd.f32 %v12170_v29, %v12122_v51 }
 0x640   : > { %7067 = vst.msk [vmem:[%s12186_s25 + $0x20] sm:$0xff] %vm3732_vm1, %v7035_v49  ;;  %v7036_v45 = vadd.f32 %v6924_v41, %v6768_v28  ;;  %v6700_v48 = vmul.f32 %v12159_v0, %v6558_v15  ;;  %v8525_v59 = vpop.f32.mrb[26].mxu1  ;;  %v6977_v51 = vadd.f32 %v12124_v40, %v12170_v29 }
 0x641   : > { %7070 = vst.msk [vmem:[%s12186_s25 + $0x38] sm:$0xff] %vm3732_vm1, %v7038_v13  ;;  %v6741_v5 = vadd.f32 %v12164_v44, %v6702_v30  ;;  %v6703_v3 = vmul.f32 %v8525_v59, %v12159_v0  ;;  %v6561_v57 = vpop.f32.mrb[27].mxu1  ;;  %v6964_v30 = vadd.f32 %v12120_v31, %v12170_v29 }
 0x642   : > { %7068 = vst.msk [vmem:[%s12186_s25 + $0x28] sm:$0xff] %vm3732_vm1, %v7036_v45  ;;  %v6739_v33 = vadd.f32 %v12164_v44, %v6700_v48  ;;  %v6701_v25 = vmul.f32 %v12159_v0, %v6561_v57 }
 0x643   : > { %v6773_v7 = vmax.f32 %v6741_v5, 0.0  ;;  %v6742_v2 = vadd.f32 %v12164_v44, %v6703_v3 }
 0x644   : > { %v6771_v4 = vmax.f32 %v6739_v33, 0.0  ;;  %v6740_v24 = vadd.f32 %v12164_v44, %v6701_v25 }
 0x645   : > { %v7041_v52 = vadd.f32 %v6945_v58, %v6773_v7  ;;  %v6774_v6 = vmax.f32 %v6742_v2, 0.0  ;;  %v6969_v2 = vadd.f32 %v12170_v29, %v12126_v53  ;;  %v6972_v53 = vadd.f32 %v12170_v29, %v12130_v56 }
 0x646   : > { %v7039_v39 = vadd.f32 %v6937_v50, %v6771_v4  ;;  %v6772_v8 = vmax.f32 %v6740_v24, 0.0  ;;  %v8528_v43 = vpop.f32.mrb[28].mxu1  ;;  %v6993_v56 = vadd.f32 %v12132_v37, %v12170_v29 }
 0x647   : > { %7073 = vst.msk [vmem:[%s12186_s25 + $0x50] sm:$0xff] %vm3732_vm1, %v7041_v52  ;;  %v7042_v12 = vadd.f32 %v6948_v62, %v6774_v6  ;;  %v6706_v54 = vmul.f32 %v8528_v43, %v12159_v0  ;;  %v6574_v26 = vpop.f32.mrb[29].mxu1 }
 0x648   : > { %7071 = vst.msk [vmem:[%s12186_s25 + $0x40] sm:$0xff] %vm3732_vm1, %v7039_v39  ;;  %v7040_v16 = vadd.f32 %v6940_v17, %v6772_v8  ;;  %v6704_v63 = vmul.f32 %v12159_v0, %v6574_v26  ;;  %v8529_v21 = vpop.f32.mrb[30].mxu1  ;;  %v6980_v8 = vadd.f32 %v12128_v55, %v12170_v29 }
 0x649   : > { %7074 = vst.msk [vmem:[%s12186_s25 + $0x58] sm:$0xff] %vm3732_vm1, %v7042_v12  ;;  %v6745_v60 = vadd.f32 %v12164_v44, %v6706_v54  ;;  %v6707_v36 = vmul.f32 %v8529_v21, %v12159_v0  ;;  %v6577_v22 = vpop.f32.mrb[31].mxu1 }
 0x64a   : > { %7072 = vst.msk [vmem:[%s12186_s25 + $0x48] sm:$0xff] %vm3732_vm1, %v7040_v16  ;;  %v6743_v19 = vadd.f32 %v12164_v44, %v6704_v63  ;;  %v6705_v20 = vmul.f32 %v12159_v0, %v6577_v22 }
 0x64b   : > { %v6777_v49 = vmax.f32 %v6745_v60, 0.0  ;;  %v6746_v28 = vadd.f32 %v12164_v44, %v6707_v36 }
 0x64c   : > { %v6775_v41 = vmax.f32 %v6743_v19, 0.0  ;;  %v6744_v47 = vadd.f32 %v12164_v44, %v6705_v20  ;;  %v6985_v19 = vadd.f32 %v12170_v29, %v12134_v9  ;;  %v6988_v9 = vadd.f32 %v12170_v29, %v12138_v46 }
 0x64d   : > { %v7045_v18 = vadd.f32 %v6961_v11, %v6777_v49  ;;  %v6778_v13 = vmax.f32 %v6746_v28, 0.0  ;;  %v7009_v46 = vadd.f32 %v12140_v27, %v12170_v29 }
 0x64e   : > { %v7043_v15 = vadd.f32 %v6953_v32, %v6775_v41  ;;  %v6776_v45 = vmax.f32 %v6744_v47, 0.0  ;;  %v8532_v48 = vpop.f32.mrb[32].mxu1 }
 0x64f   : > { %7077 = vst.msk [vmem:[%s12186_s25 + $0x70] sm:$0xff] %vm3732_vm1, %v7045_v18  ;;  %v7046_v59 = vadd.f32 %v6964_v30, %v6778_v13  ;;  %v6710_v5 = vmul.f32 %v8532_v48, %v12159_v0  ;;  %v6590_v58 = vpop.f32.mrb[33].mxu1  ;;  %v6996_v18 = vadd.f32 %v12136_v23, %v12170_v29 }
 0x650   : > { %7075 = vst.msk [vmem:[%s12186_s25 + $0x60] sm:$0xff] %vm3732_vm1, %v7043_v15  ;;  %v7044_v3 = vadd.f32 %v6956_v14, %v6776_v45  ;;  %v6708_v57 = vmul.f32 %v12159_v0, %v6590_v58  ;;  %v8533_v33 = vpop.f32.mrb[34].mxu1 }
 0x651   : > { %7078 = vst.msk [vmem:[%s12186_s25 + $0x78] sm:$0xff] %vm3732_vm1, %v7046_v59  ;;  %v6749_v31 = vadd.f32 %v12164_v44, %v6710_v5  ;;  %v6711_v50 = vmul.f32 %v8533_v33, %v12159_v0  ;;  %v6593_v25 = vpop.f32.mrb[35].mxu1 }
 0x652   : > { %7076 = vst.msk [vmem:[%s12186_s25 + $0x68] sm:$0xff] %vm3732_vm1, %v7044_v3  ;;  %v6747_v7 = vadd.f32 %v12164_v44, %v6708_v57  ;;  %v6709_v4 = vmul.f32 %v12159_v0, %v6593_v25 }
 0x653   : > { %v6781_v24 = vmax.f32 %v6749_v31, 0.0  ;;  %v6750_v52 = vadd.f32 %v12164_v44, %v6711_v50  ;;  %v7001_v31 = vadd.f32 %v12170_v29, %v12142_v10  ;;  %v7004_v10 = vadd.f32 %v12170_v29, %v12146_v34 }
 0x654   : > { %v6779_v6 = vmax.f32 %v6747_v7, 0.0  ;;  %v6748_v40 = vadd.f32 %v12164_v44, %v6709_v4  ;;  %v7025_v34 = vadd.f32 %v12148_v35, %v12170_v29 }
 0x655   : > { %v7049_v62 = vadd.f32 %v6977_v51, %v6781_v24  ;;  %v6782_v39 = vmax.f32 %v6750_v52, 0.0  ;;  %v7012_v24 = vadd.f32 %v12144_v38, %v12170_v29 }
 0x656   : > { %v7047_v17 = vadd.f32 %v6969_v2, %v6779_v6  ;;  %v6780_v43 = vmax.f32 %v6748_v40, 0.0  ;;  %v8536_v12 = vpop.f32.mrb[36].mxu1 }
 0x657   : > { %7081 = vst.msk [vmem:[%s12186_s25 + $0x90] sm:$0xff] %vm3732_vm1, %v7049_v62  ;;  %v7050_v54 = vadd.f32 %v6980_v8, %v6782_v39  ;;  %v6714_v26 = vmul.f32 %v8536_v12, %v12159_v0  ;;  %v6606_v16 = vpop.f32.mrb[37].mxu1 }
 0x658   : > { %7079 = vst.msk [vmem:[%s12186_s25 + $0x80] sm:$0xff] %vm3732_vm1, %v7047_v17  ;;  %v7048_v63 = vadd.f32 %v6972_v53, %v6780_v43  ;;  %v6712_v21 = vmul.f32 %v12159_v0, %v6606_v16  ;;  %v8537_v60 = vpop.f32.mrb[38].mxu1  ;;  %v7017_v16 = vadd.f32 %v12170_v29, %v12150_v61  ;;  %v7028_v61 = vadd.f32 %v12152_v1, %v12170_v29 }
 0x659   : > { %7082 = vst.msk [vmem:[%s12186_s25 + $0x98] sm:$0xff] %vm3732_vm1, %v7050_v54  ;;  %v6753_v55 = vadd.f32 %v12164_v44, %v6714_v26  ;;  %v6715_v11 = vmul.f32 %v8537_v60, %v12159_v0  ;;  %v6609_v36 = vpop.f32.mrb[39].mxu1 }
 0x65a   : > { %7080 = vst.msk [vmem:[%s12186_s25 + $0x88] sm:$0xff] %vm3732_vm1, %v7048_v63  ;;  %v6751_v22 = vadd.f32 %v12164_v44, %v6712_v21  ;;  %v6713_v32 = vmul.f32 %v12159_v0, %v6609_v36 }
 0x65b   : > { %v6785_v20 = vmax.f32 %v6753_v55, 0.0  ;;  %v6754_v49 = vadd.f32 %v12164_v44, %v6715_v11 }
 0x65c   : > { %v6783_v28 = vmax.f32 %v6751_v22, 0.0  ;;  %v6752_v37 = vadd.f32 %v12164_v44, %v6713_v32  ;;  %v7020_v22 = vadd.f32 %v12170_v29, %v12154_v42 }
 0x65d   : > { %v7053_v41 = vadd.f32 %v6993_v56, %v6785_v20  ;;  %v6786_v47 = vmax.f32 %v6754_v49, 0.0 }
 0x65e   : > { %v7051_v13 = vadd.f32 %v6985_v19, %v6783_v28  ;;  %v6784_v30 = vmax.f32 %v6752_v37, 0.0  ;;  %v8540_v15 = vpop.f32.mrb[40].mxu1 }
 0x65f   : > { %7085 = vst.msk [vmem:[%s12186_s25 + $0xb0] sm:$0xff] %vm3732_vm1, %v7053_v41  ;;  %v7054_v45 = vadd.f32 %v6996_v18, %v6786_v47  ;;  %v6718_v14 = vmul.f32 %v8540_v15, %v12159_v0  ;;  %v6622_v48 = vpop.f32.mrb[41].mxu1 }
 0x660   : > { %7083 = vst.msk [vmem:[%s12186_s25 + $0xa0] sm:$0xff] %vm3732_vm1, %v7051_v13  ;;  %v7052_v59 = vadd.f32 %v6988_v9, %v6784_v30  ;;  %v6716_v5 = vmul.f32 %v12159_v0, %v6622_v48  ;;  %v8541_v58 = vpop.f32.mrb[42].mxu1 }
 0x661   : > { %7086 = vst.msk [vmem:[%s12186_s25 + $0xb8] sm:$0xff] %vm3732_vm1, %v7054_v45  ;;  %v6757_v23 = vadd.f32 %v12164_v44, %v6718_v14  ;;  %v6719_v3 = vmul.f32 %v8541_v58, %v12159_v0  ;;  %v6625_v57 = vpop.f32.mrb[43].mxu1 }
 0x662   : > { %7084 = vst.msk [vmem:[%s12186_s25 + $0xa8] sm:$0xff] %vm3732_vm1, %v7052_v59  ;;  %v6755_v33 = vadd.f32 %v12164_v44, %v6716_v5  ;;  %v6717_v51 = vmul.f32 %v12159_v0, %v6625_v57 }
 0x663   : > { %v6789_v50 = vmax.f32 %v6757_v23, 0.0  ;;  %v6758_v25 = vadd.f32 %v12164_v44, %v6719_v3 }
 0x664   : > { %v6787_v7 = vmax.f32 %v6755_v33, 0.0  ;;  %v6756_v27 = vadd.f32 %v12164_v44, %v6717_v51 }
 0x665   : > { %v7057_v2 = vadd.f32 %v7009_v46, %v6789_v50  ;;  %v6790_v4 = vmax.f32 %v6758_v25, 0.0 }
 0x666   : > { %v7055_v52 = vadd.f32 %v7001_v31, %v6787_v7  ;;  %v6788_v6 = vmax.f32 %v6756_v27, 0.0  ;;  %v8544_v40 = vpop.f32.mrb[44].mxu1 }
 0x667   : > { %7089 = vst.msk [vmem:[%s12186_s25 + $0xd0] sm:$0xff] %vm3732_vm1, %v7057_v2  ;;  %v7058_v62 = vadd.f32 %v7012_v24, %v6790_v4  ;;  %v6722_v39 = vmul.f32 %v8544_v40, %v12159_v0  ;;  %v6638_v8 = vpop.f32.mrb[45].mxu1 }
 0x668   : > { %7087 = vst.msk [vmem:[%s12186_s25 + $0xc0] sm:$0xff] %vm3732_vm1, %v7055_v52  ;;  %v7056_v17 = vadd.f32 %v7004_v10, %v6788_v6  ;;  %v6720_v43 = vmul.f32 %v12159_v0, %v6638_v8  ;;  %v8545_v38 = vpop.f32.mrb[46].mxu1 }
 0x669   : > { %7090 = vst.msk [vmem:[%s12186_s25 + $0xd8] sm:$0xff] %vm3732_vm1, %v7058_v62  ;;  %v6761_v53 = vadd.f32 %v12164_v44, %v6722_v39  ;;  %v6723_v12 = vmul.f32 %v8545_v38, %v12159_v0  ;;  %v6641_v54 = vpop.f32.mrb[47].mxu1 }
 0x66a   : > { %7088 = vst.msk [vmem:[%s12186_s25 + $0xc8] sm:$0xff] %vm3732_vm1, %v7056_v17  ;;  %v6759_v26 = vadd.f32 %v12164_v44, %v6720_v43  ;;  %v6721_v63 = vmul.f32 %v12159_v0, %v6641_v54 }
 0x66b   : > { %v6793_v21 = vmax.f32 %v6761_v53, 0.0  ;;  %v6762_v60 = vadd.f32 %v12164_v44, %v6723_v12 }
 0x66c   : > { %v6791_v55 = vmax.f32 %v6759_v26, 0.0  ;;  %v6760_v35 = vadd.f32 %v12164_v44, %v6721_v63 }
 0x66d   : > { %v7061_v56 = vadd.f32 %v7025_v34, %v6793_v21  ;;  %v6794_v11 = vmax.f32 %v6762_v60, 0.0 }
 0x66e   : > { %v7059_v36 = vadd.f32 %v7017_v16, %v6791_v55  ;;  %v6792_v0 = vmax.f32 %v6760_v35, 0.0 }
 0x66f   : > { %7093 = vst.msk [vmem:[%s12186_s25 + $0xf0] sm:$0xff] %vm3732_vm1, %v7061_v56  ;;  %v7062_v19 = vadd.f32 %v7028_v61, %v6794_v11 }
 0x670   : > { %7091 = vst.msk [vmem:[%s12186_s25 + $0xe0] sm:$0xff] %vm3732_vm1, %v7059_v36  ;;  %v7060_v1 = vadd.f32 %v7020_v22, %v6792_v0 }
 0x671   : > { %7094 = vst.msk [vmem:[%s12186_s25 + $0xf8] sm:$0xff] %vm3732_vm1, %v7062_v19 }
 0x672   : > { %7092 = vst.msk [vmem:[%s12186_s25 + $0xe8] sm:$0xff] %vm3732_vm1, %v7060_v1 }
 0x673   : > { %9181 = shalt.err (!%p9178_p3)
}
 0x674   : > { %s9182_s18 = scalar_lea.hbm %s12363_s17, 4096  ;;  %s9186_s27 = scalar_lea.hbm %s12426_s10, 8192 }
 0x675   : > { %p9183_p4 = scmp.ne.s32.totalorder %s12363_s17, %s9182_s18  ;;  %p9187_p9 = scmp.lt.u32.totalorder %s12363_s17, %s12426_s10 }
 0x676   : > { %p9188_p10 = scmp.lt.u32.totalorder %s9186_s27, %s9182_s18  ;;  %p9190_p12 = scmp.lt.u32.totalorder %s9182_s18, %s12363_s17 }
 0x677   : > { %p9184_p7 = pnand %p9183_p4, %p9330_p5 }
 0x678   : > { %p9189_p11 = por %p9188_p10, %p9187_p9 }
 0x679   : > { %p9185_p8 = pneg %p9184_p7 }
 0x67a   : > { %p9191_p13 = por %p9190_p12, %p9189_p11 }
 0x67c   : > { %p9192_p0 = pnand %p9191_p13, %p9185_p8 }
 0x67e   : > { %9195 = shalt.err (!%p9192_p0)
}
 0x67f   : > { %s9235_s11 = smov 128   ;;  %s9236_s12 = smov 8  }
 0x680   : > { %9105 = dma.vmem_to_hbm [thread:$0]  (%p9330_p5), %s12365_s28, 4096, %s12363_s17, %s12375_s30, %s9235_s11, %s9235_s11, %s9236_s12  }
 0x681 PF: > { %p9111_p1 = scmp.ge.s32.totalorder %s9230_s16, 2  ;;  %s7124_s20 = sand.u32 1, %s9218_s13  }
 0x682   : > { %s7125_s29 = scalar_lea.sflag [#allocation5], %s7124_s20 }
 0x683   : > { %p9108_p2 = pnand %p9111_p1, %p9334_p6 }
 0x685   : > { %9213 = dma.done.wait (!%p9108_p2), %s7125_s29, 4096  }
 0x686   : > { %9215 = vsyncadd (!%p9108_p2), %s7125_s29, 4294963200  ;;  %s13441_s18 = sld [smem:[#allocation7_spill]]  ;;  %p20_p3 = scmp.ge.s32.totalorder %s9317_s19, 4  }
 0x687   : > { %s13442_s13 = smov %s9222_s14  ;;  %s13443_s14 = smov %s9226_s15 }
 0x688   : > { %s13445_s16 = smov %s9317_s19  ;;  %22 = sbr.rel (!%p20_p3) target bundleno = 3 (0x3), region = 112 }
 0x68c   : > { %s13444_s15 = smov %s13441_s18 }
 0x68f   :  { %7130 = vsyncpa [#allocation5], 1 }
 0x690   :  { %7132 = vsyncpa [#allocation5 + $0x1], 1 }

</bundles_post_ra>
